<compile_context>
chip_gen: v7x
topology: tpu7x:2x2x1
jax: 0.10.0
libtpu: 0.0.40
codegen_flags: <defaults>
</compile_context>

<pallas_src>
import functools
import math

import jax
import jax.numpy as jnp
from jax.experimental import pallas as pl
from jax.experimental.pallas import tpu as pltpu


def _round_up(x, m):
    return (x + m - 1) // m * m


# ---------------------------------------------------------------------------
# Fused bottleneck kernel (one row tile per grid step)
# ---------------------------------------------------------------------------
def _bottleneck_kernel(*refs, tm, halo, wp, hp, h, w, nrows, has_ds):
    if has_ds:
        (xp_ref, xc_ref, xn_ref, w1_ref, b1_ref, w2_ref, b2_ref,
         w3_ref, b3_ref, wd_ref, bd_ref, o_ref) = refs
    else:
        (xp_ref, xc_ref, xn_ref, w1_ref, b1_ref, w2_ref, b2_ref,
         w3_ref, b3_ref, o_ref) = refs

    slab = tm + 2 * halo

    # --- conv1 (1x1) + bn1 + relu on the halo slab --------------------------
    # Slab row s corresponds to pixel-row q = i*tm - halo + s.
    xs = jnp.concatenate(
        [xp_ref[tm - halo:, :], xc_ref[...], xn_ref[:halo, :]], axis=0)
    a1 = jnp.dot(xs, w1_ref[...], preferred_element_type=jnp.float32) + b1_ref[...]
    a1 = jnp.maximum(a1, 0.0)

    # Zero out rows that are not interior image pixels (spatial border / guard /
    # alignment-tail rows) so the 3x3 taps see exact conv zero-padding.  The
    # (row, col) decode uses f32 division (exact for q < 2^22) — vector integer
    # div/rem is avoided for safe Mosaic lowering.
    q0 = pl.program_id(0) * tm - halo
    q = q0 + jax.lax.broadcasted_iota(jnp.int32, (slab, 1), 0)
    qf = q.astype(jnp.float32)
    rowf = jnp.floor(qf / float(wp))                        # q // wp
    px = q - rowf.astype(jnp.int32) * wp                    # q %  wp
    pyf = rowf - jnp.floor(rowf / float(hp)) * float(hp)    # (q // wp) % hp
    py = pyf.astype(jnp.int32)
    valid = ((q >= 0) & (q < nrows) &
             (px >= 1) & (px <= w) & (py >= 1) & (py <= h))
    a1 = jnp.where(valid, a1, 0.0).astype(jnp.bfloat16)

    # --- conv2 (3x3) as 9 static row-shifted MXU matmuls + bn2 + relu -------
    wpd = w2_ref.shape[2]
    acc2 = jnp.zeros((tm, wpd), jnp.float32)
    for ky in range(3):
        for kx in range(3):
            off = halo + (ky - 1) * wp + (kx - 1)           # static slab offset
            acc2 += jnp.dot(a1[off:off + tm, :], w2_ref[ky * 3 + kx],
                            preferred_element_type=jnp.float32)
    y2 = jnp.maximum(acc2 + b2_ref[...], 0.0).astype(jnp.bfloat16)
    # F.dropout(p=0.1) is the identity in eval mode.

    # --- conv3 (1x1) + bn3 + residual branch + relu --------------------------
    out = jnp.dot(y2, w3_ref[...], preferred_element_type=jnp.float32) + b3_ref[...]
    if has_ds:
        out += jnp.dot(xc_ref[...], wd_ref[...],
                       preferred_element_type=jnp.float32) + bd_ref[...]
    else:
        # Identity shortcut from the bf16-cast streamed input (documented
        # precision deviation from an f32 reference; fine for inference).
        out += xc_ref[...].astype(jnp.float32)
    o_ref[...] = jnp.maximum(out, 0.0)


def _bottleneck_call(x_flat, params, *, tm, halo, wp, hp, h, w, nrows, mid):
    cin_p = x_flat.shape[1]
    wpd = params["w2"].shape[2]
    cout_p = params["w3"].shape[1]
    has_ds = "wd" in params
    n_int = mid // tm

    kernel = functools.partial(_bottleneck_kernel, tm=tm, halo=halo, wp=wp,
                               hp=hp, h=h, w=w, nrows=nrows, has_ds=has_ds)

    in_specs = [
        pl.BlockSpec((tm, cin_p), lambda i: (i, 0)),        # rows above (halo)
        pl.BlockSpec((tm, cin_p), lambda i: (i + 1, 0)),    # this tile's rows
        pl.BlockSpec((tm, cin_p), lambda i: (i + 2, 0)),    # rows below (halo)
        pl.BlockSpec((cin_p, wpd), lambda i: (0, 0)),       # w1 (bn1 folded)
        pl.BlockSpec((1, wpd), lambda i: (0, 0)),           # b1
        pl.BlockSpec((9, wpd, wpd), lambda i: (0, 0, 0)),   # w2 (9 taps, bn2 folded)
        pl.BlockSpec((1, wpd), lambda i: (0, 0)),           # b2
        pl.BlockSpec((wpd, cout_p), lambda i: (0, 0)),      # w3 (bn3 folded)
        pl.BlockSpec((1, cout_p), lambda i: (0, 0)),        # b3
    ]
    args = [x_flat, x_flat, x_flat, params["w1"], params["b1"], params["w2"],
            params["b2"], params["w3"], params["b3"]]
    if has_ds:
        in_specs += [pl.BlockSpec((cin_p, cout_p), lambda i: (0, 0)),
                     pl.BlockSpec((1, cout_p), lambda i: (0, 0))]
        args += [params["wd"], params["bd"]]

    flops = n_int * (
        2 * (tm + 2 * halo) * cin_p * wpd          # conv1 (incl. halo recompute)
        + 2 * 9 * tm * wpd * wpd                   # conv2 (9 taps)
        + 2 * tm * wpd * cout_p                    # conv3
        + (2 * tm * cin_p * cout_p if has_ds else 0))
    weight_bytes = sum(int(a.size) * a.dtype.itemsize for a in args[3:])
    bytes_accessed = (3 * n_int * tm * cin_p * 2   # x halo streams (bf16)
                      + mid * cout_p * 4           # output (f32)
                      + weight_bytes)

    return pl.pallas_call(
        kernel,
        out_shape=jax.ShapeDtypeStruct((mid, cout_p), jnp.float32),
        grid=(n_int,),
        in_specs=in_specs,
        out_specs=pl.BlockSpec((tm, cout_p), lambda i: (i, 0)),
        compiler_params=pltpu.CompilerParams(
            dimension_semantics=("parallel",)),    # megacore-splittable row tiles
        cost_estimate=pl.CostEstimate(flops=flops, transcendentals=0,
                                      bytes_accessed=bytes_accessed),
    )(*args)


# ---------------------------------------------------------------------------
# Plain-JAX layout glue
# ---------------------------------------------------------------------------
def avgpool2_nhwc(x):
    n, h, w, c = x.shape
    assert h % 2 == 0 and w % 2 == 0, "avg_pool2d(2) path requires even H and W"
    return x.reshape(n, h // 2, 2, w // 2, 2, c).mean(axis=(2, 4))


def bottleneck_forward(x_nchw, params, tm=256):
    """Forward of _ResnetBottleneck (eval mode). NCHW in / NCHW f32 out.

    tm = output rows per grid step; sweep 256-512 per TPU generation (v7x: keep
    the resulting grid even/>=2 for 2-TensorCore balance when shapes allow).
    """
    x = jnp.transpose(x_nchw, (0, 2, 3, 1)).astype(jnp.float32)   # NHWC
    has_ds = "wd" in params
    if params["stride"] == 2:
        assert has_ds, "stride-2 bottleneck requires a downsample branch"
        # F.avg_pool2d(x, 2).  The PANNs-style downsample branch pools the same
        # tensor, so the pooled activation is computed once and shared.
        x = avgpool2_nhwc(x)

    n, h, w, cin = x.shape
    assert cin == params["cin"]
    cin_p = params["w1"].shape[0]
    cout, cout_p = params["cout"], params["w3"].shape[1]
    hp, wp = h + 2, w + 2
    halo = _round_up(wp + 1, 16)          # halo rows needed for the 3x3 taps
    assert tm % 8 == 0 and tm >= halo, "row tile must cover the 3x3 halo"
    nrows = n * hp * wp
    mid = _round_up(nrows, tm)
    mg = tm + mid + tm                    # [guard block | pixel rows + tail | guard block]
    assert mid + tm < (1 << 22)           # keeps the in-kernel f32 row decode exact

    # Embed NHWC into the padded-flat row matrix: zero 1-pixel spatial border,
    # zero guard blocks, channels zero-padded to a lane-dense multiple of 128.
    xp = jnp.pad(x, ((0, 0), (1, 1), (1, 1), (0, 0))).reshape(nrows, cin)
    x_flat = jnp.pad(xp, ((tm, mg - tm - nrows), (0, cin_p - cin))).astype(jnp.bfloat16)

    out = _bottleneck_call(x_flat, params, tm=tm, halo=halo, wp=wp, hp=hp,
                           h=h, w=w, nrows=nrows, mid=mid)

    y = out[:nrows, :cout].reshape(n, hp, wp, cout)[:, 1:h + 1, 1:w + 1, :]
    return jnp.transpose(y, (0, 3, 1, 2))


# ---------------------------------------------------------------------------
# Parameters (deterministic synthetic init matching init_layer / init_bn),
# BN folded, channels zero-padded to multiples of 128 for lane density.
# ---------------------------------------------------------------------------
def _fold_bn(c, gamma, eps):
    # Eval-mode BatchNorm with default running stats (mean=0, var=1) and
    # init_bn parameters (weight=gamma, bias=0) folded to scale / bias.
    scale = jnp.full((c,), gamma / math.sqrt(1.0 + eps), jnp.float32)
    bias = jnp.zeros((1, c), jnp.float32)
    return scale, bias


def make_bottleneck_params(key, inplanes, planes, stride=1, base_width=64,
                           groups=1, expansion=4, eps=1e-5, bn3_gamma=0.0,
                           dtype=jnp.bfloat16):
    width = int(planes * (base_width / 64.0)) * groups
    outp = planes * expansion
    cin_p, wpd, cout_p = (_round_up(c, 128) for c in (inplanes, width, outp))
    k1, k2, k3, kd = jax.random.split(key, 4)

    def xavier(k, shape, fan_in, fan_out):
        a = math.sqrt(6.0 / (fan_in + fan_out))
        return jax.random.uniform(k, shape, jnp.float32, -a, a)

    def padw(a, rows, cols):
        return jnp.pad(a, ((0, rows - a.shape[0]), (0, cols - a.shape[1])))

    p = {"stride": stride, "cin": inplanes, "width": width, "cout": outp}
    s1, b1 = _fold_bn(width, 1.0, eps)
    p["w1"] = padw(xavier(k1, (inplanes, width), inplanes, width) * s1,
                   cin_p, wpd).astype(dtype)
    p["b1"] = jnp.pad(b1, ((0, 0), (0, wpd - width)))
    s2, b2 = _fold_bn(width, 1.0, eps)
    w2 = xavier(k2, (9, width, width), 9 * width, 9 * width) * s2
    p["w2"] = jnp.pad(w2, ((0, 0), (0, wpd - width), (0, wpd - width))).astype(dtype)
    p["b2"] = jnp.pad(b2, ((0, 0), (0, wpd - width)))
    # bn3.weight is zero-initialized by the module; bn3_gamma!=0 is only used by
    # the self-test to exercise the conv3+bn3 numerics.
    s3, b3 = _fold_bn(outp, bn3_gamma, eps)
    p["w3"] = padw(xavier(k3, (width, outp), width, outp) * s3,
                   wpd, cout_p).astype(dtype)
    p["b3"] = jnp.pad(b3, ((0, 0), (0, cout_p - outp)))
    if stride != 1 or inplanes != outp:
        # TODO(synk): `downsample` is supplied externally in the spec; we use the
        # standard PANNs/_make_layer form: [AvgPool2d(2) if stride==2] + conv1x1 + BN.
        sd, bd = _fold_bn(outp, 1.0, eps)
        p["wd"] = padw(xavier(kd, (inplanes, outp), inplanes, outp) * sd,
                       cin_p, cout_p).astype(dtype)
        p["bd"] = jnp.pad(bd, ((0, 0), (0, cout_p - outp)))
    else:
        assert cin_p == cout_p
    return p


# ---------------------------------------------------------------------------
# Pure-JAX f32 reference (sanity check only)
# ---------------------------------------------------------------------------
def reference_forward(x_nchw, p):
    cin, width, cout = p["cin"], p["width"], p["cout"]
    f32 = lambda a: a.astype(jnp.float32)
    x = jnp.transpose(x_nchw, (0, 2, 3, 1)).astype(jnp.float32)
    if p["stride"] == 2:
        x = avgpool2_nhwc(x)
    w1 = f32(p["w1"])[:cin, :width]
    h1 = jnp.maximum(jnp.einsum("nhwc,cd->nhwd", x, w1) + p["b1"][0, :width], 0.0)
    n, hh, ww, _ = h1.shape
    h1p = jnp.pad(h1, ((0, 0), (1, 1), (1, 1), (0, 0)))
    w2 = f32(p["w2"])[:, :width, :width]
    acc = jnp.zeros((n, hh, ww, width), jnp.float32)
    for ky in range(3):
        for kx in range(3):
            acc = acc + jnp.einsum("nhwc,cd->nhwd",
                                   h1p[:, ky:ky + hh, kx:kx + ww, :], w2[ky * 3 + kx])
    h2 = jnp.maximum(acc + p["b2"][0, :width], 0.0)
    h3 = jnp.einsum("nhwc,cd->nhwd", h2, f32(p["w3"])[:width, :cout]) + p["b3"][0, :cout]
    if "wd" in p:
        ident = jnp.einsum("nhwc,cd->nhwd", x, f32(p["wd"])[:cin, :cout]) + p["bd"][0, :cout]
    else:
        ident = x
    y = jnp.maximum(h3 + ident, 0.0)
    return jnp.transpose(y, (0, 3, 1, 2))


# ---------------------------------------------------------------------------
if __name__ == "__main__":
    key = jax.random.PRNGKey(0)
    kp1, kp2, kp3, kx1, kx2, kx3 = jax.random.split(key, 6)

    # Case 1: stride-2 bottleneck with downsample (avg-pool + conv1x1 + bn).
    p1 = make_bottleneck_params(kp1, inplanes=64, planes=32, stride=2)
    x1 = jax.random.normal(kx1, (2, 64, 16, 16), jnp.float32)
    o1 = jax.block_until_ready(jax.jit(lambda v: bottleneck_forward(v, p1))(x1))
    assert o1.shape == (2, 128, 8, 8), o1.shape
    assert bool(jnp.all(jnp.isfinite(o1)))
    assert bool(jnp.allclose(o1, reference_forward(x1, p1), rtol=5e-2, atol=5e-2))

    # Case 2: stride-1 bottleneck with identity shortcut (inplanes == planes*4).
    p2 = make_bottleneck_params(kp2, inplanes=128, planes=32, stride=1)
    x2 = jax.random.normal(kx2, (2, 128, 16, 16), jnp.float32)
    o2 = jax.block_until_ready(jax.jit(lambda v: bottleneck_forward(v, p2))(x2))
    assert o2.shape == (2, 128, 16, 16), o2.shape
    assert bool(jnp.all(jnp.isfinite(o2)))
    assert bool(jnp.allclose(o2, reference_forward(x2, p2), rtol=5e-2, atol=5e-2))

    # Case 3: stride-1 with 1x1 downsample and a nonzero bn3 gamma, so the
    # conv3+bn3 path actually contributes (numerics check; module default is 0).
    p3 = make_bottleneck_params(kp3, inplanes=64, planes=32, stride=1, bn3_gamma=1.0)
    x3 = jax.random.normal(kx3, (2, 64, 16, 16), jnp.float32)
    o3 = jax.block_until_ready(jax.jit(lambda v: bottleneck_forward(v, p3))(x3))
    assert o3.shape == (2, 128, 16, 16), o3.shape
    assert bool(jnp.all(jnp.isfinite(o3)))
    assert bool(jnp.allclose(o3, reference_forward(x3, p3), rtol=5e-2, atol=5e-2))

    print("KERNEL_OK")
</pallas_src>

<mosaic_0001>
module attributes {stable_mosaic.version = 11 : i64} {
  func.func @_bottleneck_kernel(%arg0: i32, %arg1: memref<256x128xbf16, #tpu.memory_space<vmem>>, %arg2: memref<256x128xbf16, #tpu.memory_space<vmem>>, %arg3: memref<256x128xbf16, #tpu.memory_space<vmem>>, %arg4: memref<128x128xbf16, #tpu.memory_space<vmem>>, %arg5: memref<1x128xf32, #tpu.memory_space<vmem>>, %arg6: memref<9x128x128xbf16, #tpu.memory_space<vmem>>, %arg7: memref<1x128xf32, #tpu.memory_space<vmem>>, %arg8: memref<128x128xbf16, #tpu.memory_space<vmem>>, %arg9: memref<1x128xf32, #tpu.memory_space<vmem>>, %arg10: memref<128x128xbf16, #tpu.memory_space<vmem>>, %arg11: memref<1x128xf32, #tpu.memory_space<vmem>>, %arg12: memref<256x128xf32, #tpu.memory_space<vmem>>) attributes {dimension_semantics = [#tpu.dimension_semantics<parallel>], iteration_bounds = array<i64: 1>, scalar_prefetch = 0 : i64, scratch_operands = 0 : i64, tpu.core_type = #tpu.core_type<tc>, window_params = [{transform_indices = @transform_0, window_bounds = array<i64: 256, 128>}, {transform_indices = @transform_1, window_bounds = array<i64: 256, 128>}, {transform_indices = @transform_2, window_bounds = array<i64: 256, 128>}, {pipeline_mode = #tpu.pipeline_mode<synchronous>, transform_indices = @transform_3, window_bounds = array<i64: 128, 128>}, {pipeline_mode = #tpu.pipeline_mode<synchronous>, transform_indices = @transform_4, window_bounds = array<i64: 1, 128>}, {pipeline_mode = #tpu.pipeline_mode<synchronous>, transform_indices = @transform_5, window_bounds = array<i64: 9, 128, 128>}, {pipeline_mode = #tpu.pipeline_mode<synchronous>, transform_indices = @transform_6, window_bounds = array<i64: 1, 128>}, {pipeline_mode = #tpu.pipeline_mode<synchronous>, transform_indices = @transform_7, window_bounds = array<i64: 128, 128>}, {pipeline_mode = #tpu.pipeline_mode<synchronous>, transform_indices = @transform_8, window_bounds = array<i64: 1, 128>}, {pipeline_mode = #tpu.pipeline_mode<synchronous>, transform_indices = @transform_9, window_bounds = array<i64: 128, 128>}, {pipeline_mode = #tpu.pipeline_mode<synchronous>, transform_indices = @transform_10, window_bounds = array<i64: 1, 128>}, {transform_indices = @transform_11, window_bounds = array<i64: 256, 128>}]} {
    %c240 = arith.constant 240 : index
    %c0 = arith.constant 0 : index
    %0 = vector.load %arg1[%c240, %c0] : memref<256x128xbf16, #tpu.memory_space<vmem>>, vector<16x128xbf16>
    %c0_0 = arith.constant 0 : index
    %c0_1 = arith.constant 0 : index
    %1 = vector.load %arg2[%c0_0, %c0_1] : memref<256x128xbf16, #tpu.memory_space<vmem>>, vector<256x128xbf16>
    %c0_2 = arith.constant 0 : index
    %c0_3 = arith.constant 0 : index
    %2 = vector.load %arg3[%c0_2, %c0_3] : memref<256x128xbf16, #tpu.memory_space<vmem>>, vector<16x128xbf16>
    %3 = tpu.concatenate %0, %1, %2 in 0 : vector<16x128xbf16>, vector<256x128xbf16>, vector<16x128xbf16> -> vector<288x128xbf16>
    %c0_4 = arith.constant 0 : index
    %c0_5 = arith.constant 0 : index
    %4 = vector.load %arg4[%c0_4, %c0_5] : memref<128x128xbf16, #tpu.memory_space<vmem>>, vector<128x128xbf16>
    %cst = arith.constant dense<0.000000e+00> : vector<288x128xf32>
    %5 = tpu.matmul %3, %4, %cst {dimension_numbers = #tpu.dot_dimension_numbers<[1], [0], [0], [1], [0, 0, 1, 1], [], []>} : vector<288x128xbf16>, vector<128x128xbf16>, vector<288x128xf32> -> vector<288x128xf32>
    %c0_6 = arith.constant 0 : index
    %c0_7 = arith.constant 0 : index
    %6 = vector.load %arg5[%c0_6, %c0_7] : memref<1x128xf32, #tpu.memory_space<vmem>>, vector<1x128xf32>
    %7 = vector.broadcast %6 : vector<1x128xf32> to vector<288x128xf32>
    %8 = arith.addf %5, %7 : vector<288x128xf32>
    %cst_8 = arith.constant 0.000000e+00 : f32
    %9 = vector.broadcast %cst_8 : f32 to vector<288x128xf32>
    %10 = arith.maximumf %8, %9 : vector<288x128xf32>
    %c256_i32 = arith.constant 256 : i32
    %11 = arith.muli %arg0, %c256_i32 : i32
    %c16_i32 = arith.constant 16 : i32
    %12 = arith.subi %11, %c16_i32 : i32
    %13 = tpu.iota {dimensions = array<i32: 0>} : vector<288x1xi32>
    %14 = vector.broadcast %12 : i32 to vector<288x1xi32>
    %15 = arith.addi %14, %13 : vector<288x1xi32>
    %16 = arith.sitofp %15 : vector<288x1xi32> to vector<288x1xf32>
    %cst_9 = arith.constant 1.000000e+01 : f32
    %17 = vector.broadcast %cst_9 : f32 to vector<288x1xf32>
    %18 = arith.divf %16, %17 : vector<288x1xf32>
    %19 = math.floor %18 : vector<288x1xf32>
    %20 = arith.fptosi %19 : vector<288x1xf32> to vector<288x1xi32>
    %c10_i32 = arith.constant 10 : i32
    %21 = vector.broadcast %c10_i32 : i32 to vector<288x1xi32>
    %22 = arith.muli %20, %21 : vector<288x1xi32>
    %23 = arith.subi %15, %22 : vector<288x1xi32>
    %cst_10 = arith.constant 1.000000e+01 : f32
    %24 = vector.broadcast %cst_10 : f32 to vector<288x1xf32>
    %25 = arith.divf %19, %24 : vector<288x1xf32>
    %26 = math.floor %25 : vector<288x1xf32>
    %cst_11 = arith.constant 1.000000e+01 : f32
    %27 = vector.broadcast %cst_11 : f32 to vector<288x1xf32>
    %28 = arith.mulf %26, %27 : vector<288x1xf32>
    %29 = arith.subf %19, %28 : vector<288x1xf32>
    %30 = arith.fptosi %29 : vector<288x1xf32> to vector<288x1xi32>
    %c0_i32 = arith.constant 0 : i32
    %31 = vector.broadcast %c0_i32 : i32 to vector<288x1xi32>
    %32 = arith.cmpi sge, %15, %31 : vector<288x1xi32>
    %c200_i32 = arith.constant 200 : i32
    %33 = vector.broadcast %c200_i32 : i32 to vector<288x1xi32>
    %34 = arith.cmpi slt, %15, %33 : vector<288x1xi32>
    %35 = arith.andi %32, %34 : vector<288x1xi1>
    %c1_i32 = arith.constant 1 : i32
    %36 = vector.broadcast %c1_i32 : i32 to vector<288x1xi32>
    %37 = arith.cmpi sge, %23, %36 : vector<288x1xi32>
    %38 = arith.andi %35, %37 : vector<288x1xi1>
    %c8_i32 = arith.constant 8 : i32
    %39 = vector.broadcast %c8_i32 : i32 to vector<288x1xi32>
    %40 = arith.cmpi sle, %23, %39 : vector<288x1xi32>
    %41 = arith.andi %38, %40 : vector<288x1xi1>
    %c1_i32_12 = arith.constant 1 : i32
    %42 = vector.broadcast %c1_i32_12 : i32 to vector<288x1xi32>
    %43 = arith.cmpi sge, %30, %42 : vector<288x1xi32>
    %44 = arith.andi %41, %43 : vector<288x1xi1>
    %c8_i32_13 = arith.constant 8 : i32
    %45 = vector.broadcast %c8_i32_13 : i32 to vector<288x1xi32>
    %46 = arith.cmpi sle, %30, %45 : vector<288x1xi32>
    %47 = arith.andi %44, %46 : vector<288x1xi1>
    %cst_14 = arith.constant 0.000000e+00 : f32
    %48 = vector.shape_cast %47 : vector<288x1xi1> to vector<288x1xi1>
    %49 = vector.broadcast %48 : vector<288x1xi1> to vector<288x128xi1>
    %50 = vector.broadcast %cst_14 : f32 to vector<288x128xf32>
    %51 = arith.select %49, %10, %50 : vector<288x128xi1>, vector<288x128xf32>
    %52 = arith.truncf %51 : vector<288x128xf32> to vector<288x128xbf16>
    %cst_15 = arith.constant 0.000000e+00 : f32
    %53 = vector.broadcast %cst_15 : f32 to vector<256x128xf32>
    %54 = vector.extract_strided_slice %52 {offsets = [5, 0], sizes = [256, 128], strides = [1, 1]} : vector<288x128xbf16> to vector<256x128xbf16>
    %c0_16 = arith.constant 0 : index
    %c0_17 = arith.constant 0 : index
    %c0_18 = arith.constant 0 : index
    %55 = vector.load %arg6[%c0_16, %c0_17, %c0_18] : memref<9x128x128xbf16, #tpu.memory_space<vmem>>, vector<1x128x128xbf16>
    %56 = vector.shape_cast %55 : vector<1x128x128xbf16> to vector<128x128xbf16>
    %cst_19 = arith.constant dense<0.000000e+00> : vector<256x128xf32>
    %57 = tpu.matmul %54, %56, %cst_19 {dimension_numbers = #tpu.dot_dimension_numbers<[1], [0], [0], [1], [0, 0, 1, 1], [], []>} : vector<256x128xbf16>, vector<128x128xbf16>, vector<256x128xf32> -> vector<256x128xf32>
    %58 = arith.addf %53, %57 : vector<256x128xf32>
    %59 = vector.extract_strided_slice %52 {offsets = [6, 0], sizes = [256, 128], strides = [1, 1]} : vector<288x128xbf16> to vector<256x128xbf16>
    %c1 = arith.constant 1 : index
    %c0_20 = arith.constant 0 : index
    %c0_21 = arith.constant 0 : index
    %60 = vector.load %arg6[%c1, %c0_20, %c0_21] : memref<9x128x128xbf16, #tpu.memory_space<vmem>>, vector<1x128x128xbf16>
    %61 = vector.shape_cast %60 : vector<1x128x128xbf16> to vector<128x128xbf16>
    %cst_22 = arith.constant dense<0.000000e+00> : vector<256x128xf32>
    %62 = tpu.matmul %59, %61, %cst_22 {dimension_numbers = #tpu.dot_dimension_numbers<[1], [0], [0], [1], [0, 0, 1, 1], [], []>} : vector<256x128xbf16>, vector<128x128xbf16>, vector<256x128xf32> -> vector<256x128xf32>
    %63 = arith.addf %58, %62 : vector<256x128xf32>
    %64 = vector.extract_strided_slice %52 {offsets = [7, 0], sizes = [256, 128], strides = [1, 1]} : vector<288x128xbf16> to vector<256x128xbf16>
    %c2 = arith.constant 2 : index
    %c0_23 = arith.constant 0 : index
    %c0_24 = arith.constant 0 : index
    %65 = vector.load %arg6[%c2, %c0_23, %c0_24] : memref<9x128x128xbf16, #tpu.memory_space<vmem>>, vector<1x128x128xbf16>
    %66 = vector.shape_cast %65 : vector<1x128x128xbf16> to vector<128x128xbf16>
    %cst_25 = arith.constant dense<0.000000e+00> : vector<256x128xf32>
    %67 = tpu.matmul %64, %66, %cst_25 {dimension_numbers = #tpu.dot_dimension_numbers<[1], [0], [0], [1], [0, 0, 1, 1], [], []>} : vector<256x128xbf16>, vector<128x128xbf16>, vector<256x128xf32> -> vector<256x128xf32>
    %68 = arith.addf %63, %67 : vector<256x128xf32>
    %69 = vector.extract_strided_slice %52 {offsets = [15, 0], sizes = [256, 128], strides = [1, 1]} : vector<288x128xbf16> to vector<256x128xbf16>
    %c3 = arith.constant 3 : index
    %c0_26 = arith.constant 0 : index
    %c0_27 = arith.constant 0 : index
    %70 = vector.load %arg6[%c3, %c0_26, %c0_27] : memref<9x128x128xbf16, #tpu.memory_space<vmem>>, vector<1x128x128xbf16>
    %71 = vector.shape_cast %70 : vector<1x128x128xbf16> to vector<128x128xbf16>
    %cst_28 = arith.constant dense<0.000000e+00> : vector<256x128xf32>
    %72 = tpu.matmul %69, %71, %cst_28 {dimension_numbers = #tpu.dot_dimension_numbers<[1], [0], [0], [1], [0, 0, 1, 1], [], []>} : vector<256x128xbf16>, vector<128x128xbf16>, vector<256x128xf32> -> vector<256x128xf32>
    %73 = arith.addf %68, %72 : vector<256x128xf32>
    %74 = vector.extract_strided_slice %52 {offsets = [16, 0], sizes = [256, 128], strides = [1, 1]} : vector<288x128xbf16> to vector<256x128xbf16>
    %c4 = arith.constant 4 : index
    %c0_29 = arith.constant 0 : index
    %c0_30 = arith.constant 0 : index
    %75 = vector.load %arg6[%c4, %c0_29, %c0_30] : memref<9x128x128xbf16, #tpu.memory_space<vmem>>, vector<1x128x128xbf16>
    %76 = vector.shape_cast %75 : vector<1x128x128xbf16> to vector<128x128xbf16>
    %cst_31 = arith.constant dense<0.000000e+00> : vector<256x128xf32>
    %77 = tpu.matmul %74, %76, %cst_31 {dimension_numbers = #tpu.dot_dimension_numbers<[1], [0], [0], [1], [0, 0, 1, 1], [], []>} : vector<256x128xbf16>, vector<128x128xbf16>, vector<256x128xf32> -> vector<256x128xf32>
    %78 = arith.addf %73, %77 : vector<256x128xf32>
    %79 = vector.extract_strided_slice %52 {offsets = [17, 0], sizes = [256, 128], strides = [1, 1]} : vector<288x128xbf16> to vector<256x128xbf16>
    %c5 = arith.constant 5 : index
    %c0_32 = arith.constant 0 : index
    %c0_33 = arith.constant 0 : index
    %80 = vector.load %arg6[%c5, %c0_32, %c0_33] : memref<9x128x128xbf16, #tpu.memory_space<vmem>>, vector<1x128x128xbf16>
    %81 = vector.shape_cast %80 : vector<1x128x128xbf16> to vector<128x128xbf16>
    %cst_34 = arith.constant dense<0.000000e+00> : vector<256x128xf32>
    %82 = tpu.matmul %79, %81, %cst_34 {dimension_numbers = #tpu.dot_dimension_numbers<[1], [0], [0], [1], [0, 0, 1, 1], [], []>} : vector<256x128xbf16>, vector<128x128xbf16>, vector<256x128xf32> -> vector<256x128xf32>
    %83 = arith.addf %78, %82 : vector<256x128xf32>
    %84 = vector.extract_strided_slice %52 {offsets = [25, 0], sizes = [256, 128], strides = [1, 1]} : vector<288x128xbf16> to vector<256x128xbf16>
    %c6 = arith.constant 6 : index
    %c0_35 = arith.constant 0 : index
    %c0_36 = arith.constant 0 : index
    %85 = vector.load %arg6[%c6, %c0_35, %c0_36] : memref<9x128x128xbf16, #tpu.memory_space<vmem>>, vector<1x128x128xbf16>
    %86 = vector.shape_cast %85 : vector<1x128x128xbf16> to vector<128x128xbf16>
    %cst_37 = arith.constant dense<0.000000e+00> : vector<256x128xf32>
    %87 = tpu.matmul %84, %86, %cst_37 {dimension_numbers = #tpu.dot_dimension_numbers<[1], [0], [0], [1], [0, 0, 1, 1], [], []>} : vector<256x128xbf16>, vector<128x128xbf16>, vector<256x128xf32> -> vector<256x128xf32>
    %88 = arith.addf %83, %87 : vector<256x128xf32>
    %89 = vector.extract_strided_slice %52 {offsets = [26, 0], sizes = [256, 128], strides = [1, 1]} : vector<288x128xbf16> to vector<256x128xbf16>
    %c7 = arith.constant 7 : index
    %c0_38 = arith.constant 0 : index
    %c0_39 = arith.constant 0 : index
    %90 = vector.load %arg6[%c7, %c0_38, %c0_39] : memref<9x128x128xbf16, #tpu.memory_space<vmem>>, vector<1x128x128xbf16>
    %91 = vector.shape_cast %90 : vector<1x128x128xbf16> to vector<128x128xbf16>
    %cst_40 = arith.constant dense<0.000000e+00> : vector<256x128xf32>
    %92 = tpu.matmul %89, %91, %cst_40 {dimension_numbers = #tpu.dot_dimension_numbers<[1], [0], [0], [1], [0, 0, 1, 1], [], []>} : vector<256x128xbf16>, vector<128x128xbf16>, vector<256x128xf32> -> vector<256x128xf32>
    %93 = arith.addf %88, %92 : vector<256x128xf32>
    %94 = vector.extract_strided_slice %52 {offsets = [27, 0], sizes = [256, 128], strides = [1, 1]} : vector<288x128xbf16> to vector<256x128xbf16>
    %c8 = arith.constant 8 : index
    %c0_41 = arith.constant 0 : index
    %c0_42 = arith.constant 0 : index
    %95 = vector.load %arg6[%c8, %c0_41, %c0_42] : memref<9x128x128xbf16, #tpu.memory_space<vmem>>, vector<1x128x128xbf16>
    %96 = vector.shape_cast %95 : vector<1x128x128xbf16> to vector<128x128xbf16>
    %cst_43 = arith.constant dense<0.000000e+00> : vector<256x128xf32>
    %97 = tpu.matmul %94, %96, %cst_43 {dimension_numbers = #tpu.dot_dimension_numbers<[1], [0], [0], [1], [0, 0, 1, 1], [], []>} : vector<256x128xbf16>, vector<128x128xbf16>, vector<256x128xf32> -> vector<256x128xf32>
    %98 = arith.addf %93, %97 : vector<256x128xf32>
    %c0_44 = arith.constant 0 : index
    %c0_45 = arith.constant 0 : index
    %99 = vector.load %arg7[%c0_44, %c0_45] : memref<1x128xf32, #tpu.memory_space<vmem>>, vector<1x128xf32>
    %100 = vector.broadcast %99 : vector<1x128xf32> to vector<256x128xf32>
    %101 = arith.addf %98, %100 : vector<256x128xf32>
    %cst_46 = arith.constant 0.000000e+00 : f32
    %102 = vector.broadcast %cst_46 : f32 to vector<256x128xf32>
    %103 = arith.maximumf %101, %102 : vector<256x128xf32>
    %104 = arith.truncf %103 : vector<256x128xf32> to vector<256x128xbf16>
    %c0_47 = arith.constant 0 : index
    %c0_48 = arith.constant 0 : index
    %105 = vector.load %arg8[%c0_47, %c0_48] : memref<128x128xbf16, #tpu.memory_space<vmem>>, vector<128x128xbf16>
    %cst_49 = arith.constant dense<0.000000e+00> : vector<256x128xf32>
    %106 = tpu.matmul %104, %105, %cst_49 {dimension_numbers = #tpu.dot_dimension_numbers<[1], [0], [0], [1], [0, 0, 1, 1], [], []>} : vector<256x128xbf16>, vector<128x128xbf16>, vector<256x128xf32> -> vector<256x128xf32>
    %c0_50 = arith.constant 0 : index
    %c0_51 = arith.constant 0 : index
    %107 = vector.load %arg9[%c0_50, %c0_51] : memref<1x128xf32, #tpu.memory_space<vmem>>, vector<1x128xf32>
    %108 = vector.broadcast %107 : vector<1x128xf32> to vector<256x128xf32>
    %109 = arith.addf %106, %108 : vector<256x128xf32>
    %c0_52 = arith.constant 0 : index
    %c0_53 = arith.constant 0 : index
    %110 = vector.load %arg2[%c0_52, %c0_53] : memref<256x128xbf16, #tpu.memory_space<vmem>>, vector<256x128xbf16>
    %c0_54 = arith.constant 0 : index
    %c0_55 = arith.constant 0 : index
    %111 = vector.load %arg10[%c0_54, %c0_55] : memref<128x128xbf16, #tpu.memory_space<vmem>>, vector<128x128xbf16>
    %cst_56 = arith.constant dense<0.000000e+00> : vector<256x128xf32>
    %112 = tpu.matmul %110, %111, %cst_56 {dimension_numbers = #tpu.dot_dimension_numbers<[1], [0], [0], [1], [0, 0, 1, 1], [], []>} : vector<256x128xbf16>, vector<128x128xbf16>, vector<256x128xf32> -> vector<256x128xf32>
    %c0_57 = arith.constant 0 : index
    %c0_58 = arith.constant 0 : index
    %113 = vector.load %arg11[%c0_57, %c0_58] : memref<1x128xf32, #tpu.memory_space<vmem>>, vector<1x128xf32>
    %114 = vector.broadcast %113 : vector<1x128xf32> to vector<256x128xf32>
    %115 = arith.addf %112, %114 : vector<256x128xf32>
    %116 = arith.addf %109, %115 : vector<256x128xf32>
    %cst_59 = arith.constant 0.000000e+00 : f32
    %117 = vector.broadcast %cst_59 : f32 to vector<256x128xf32>
    %118 = arith.maximumf %116, %117 : vector<256x128xf32>
    %c0_60 = arith.constant 0 : index
    %c0_61 = arith.constant 0 : index
    %119 = vector.load %arg12[%c0_60, %c0_61] : memref<256x128xf32, #tpu.memory_space<vmem>>, vector<256x128xf32>
    tpu.vector_store %arg12[%c0_60, %c0_61], %118 {strides = array<i32>} : memref<256x128xf32, #tpu.memory_space<vmem>>, vector<256x128xf32>,
    return
  }
  func.func @transform_0(%arg0: i32) -> (i32, i32) {
    %c0_i32 = arith.constant 0 : i32
    %c0_i32_0 = arith.constant 0 : i32
    return %arg0, %c0_i32 : i32, i32
  }
  func.func @transform_1(%arg0: i32) -> (i32, i32) {
    %c1_i32 = arith.constant 1 : i32
    %0 = arith.addi %arg0, %c1_i32 : i32
    %c0_i32 = arith.constant 0 : i32
    %c0_i32_0 = arith.constant 0 : i32
    return %0, %c0_i32 : i32, i32
  }
  func.func @transform_2(%arg0: i32) -> (i32, i32) {
    %c2_i32 = arith.constant 2 : i32
    %0 = arith.addi %arg0, %c2_i32 : i32
    %c0_i32 = arith.constant 0 : i32
    %c0_i32_0 = arith.constant 0 : i32
    return %0, %c0_i32 : i32, i32
  }
  func.func @transform_3(%arg0: i32) -> (i32, i32) {
    %c0_i32 = arith.constant 0 : i32
    %c0_i32_0 = arith.constant 0 : i32
    %c0_i32_1 = arith.constant 0 : i32
    return %c0_i32, %c0_i32_0 : i32, i32
  }
  func.func @transform_4(%arg0: i32) -> (i32, i32) {
    %c0_i32 = arith.constant 0 : i32
    %c0_i32_0 = arith.constant 0 : i32
    %c0_i32_1 = arith.constant 0 : i32
    return %c0_i32, %c0_i32_0 : i32, i32
  }
  func.func @transform_5(%arg0: i32) -> (i32, i32, i32) {
    %c0_i32 = arith.constant 0 : i32
    %c0_i32_0 = arith.constant 0 : i32
    %c0_i32_1 = arith.constant 0 : i32
    %c0_i32_2 = arith.constant 0 : i32
    return %c0_i32, %c0_i32_0, %c0_i32_1 : i32, i32, i32
  }
  func.func @transform_6(%arg0: i32) -> (i32, i32) {
    %c0_i32 = arith.constant 0 : i32
    %c0_i32_0 = arith.constant 0 : i32
    %c0_i32_1 = arith.constant 0 : i32
    return %c0_i32, %c0_i32_0 : i32, i32
  }
  func.func @transform_7(%arg0: i32) -> (i32, i32) {
    %c0_i32 = arith.constant 0 : i32
    %c0_i32_0 = arith.constant 0 : i32
    %c0_i32_1 = arith.constant 0 : i32
    return %c0_i32, %c0_i32_0 : i32, i32
  }
  func.func @transform_8(%arg0: i32) -> (i32, i32) {
    %c0_i32 = arith.constant 0 : i32
    %c0_i32_0 = arith.constant 0 : i32
    %c0_i32_1 = arith.constant 0 : i32
    return %c0_i32, %c0_i32_0 : i32, i32
  }
  func.func @transform_9(%arg0: i32) -> (i32, i32) {
    %c0_i32 = arith.constant 0 : i32
    %c0_i32_0 = arith.constant 0 : i32
    %c0_i32_1 = arith.constant 0 : i32
    return %c0_i32, %c0_i32_0 : i32, i32
  }
  func.func @transform_10(%arg0: i32) -> (i32, i32) {
    %c0_i32 = arith.constant 0 : i32
    %c0_i32_0 = arith.constant 0 : i32
    %c0_i32_1 = arith.constant 0 : i32
    return %c0_i32, %c0_i32_0 : i32, i32
  }
  func.func @transform_11(%arg0: i32) -> (i32, i32) {
    %c0_i32 = arith.constant 0 : i32
    %c0_i32_0 = arith.constant 0 : i32
    return %arg0, %c0_i32 : i32, i32
  }
}

</mosaic_0001>

<bundles_post_ra>
// kernel: _lambda_.1
= control target key start
LH: loop header
LB: loop body
LE: loop exit
PB: predicated region body
PF: predicated region fallthrough
CT: control target
= control target key end

     0   :  { %v513_v27 = vlaneseq  ;;  %s9503_s3 = inlined_call_operand.vmem [shape: bf16[128,128], index: 3, kind: input, shape index: {}]   ;;  %s9504_s0 = inlined_call_operand.vmem [shape: bf16[768,128], index: 0, kind: input, shape index: {}, may-alias: {0,1,2}]   ;;  %s9505_s1 = inlined_call_operand.vmem [shape: bf16[768,128], index: 1, kind: input, shape index: {}, may-alias: {0,1,2}]   ;;  %s9506_s5 = inlined_call_operand.vmem [shape: bf16[9,128,128], index: 5, kind: input, shape index: {}]   ;;  %s9507_s2 = inlined_call_operand.vmem [shape: bf16[768,128], index: 2, kind: input, shape index: {}, may-alias: {0,1,2}]   ;;  %s9508_s4 = inlined_call_operand.vmem [shape: f32[1,128], index: 4, kind: input, shape index: {}, may-alias: {4,6,8,10}]   ;;  %s9509_s7 = inlined_call_operand.vmem [shape: bf16[128,128], index: 7, kind: input, shape index: {}]   ;;  %s9510_s9 = inlined_call_operand.vmem [shape: bf16[128,128], index: 9, kind: input, shape index: {}]   ;;  %s9511_s6 = inlined_call_operand.vmem [shape: f32[1,128], index: 6, kind: input, shape index: {}, may-alias: {4,6,8,10}]   ;;  %s9512_s8 = inlined_call_operand.vmem [shape: f32[1,128], index: 8, kind: input, shape index: {}, may-alias: {4,6,8,10}]   ;;  %s9513_s10 = inlined_call_operand.vmem [shape: f32[1,128], index: 10, kind: input, shape index: {}, may-alias: {4,6,8,10}]   ;;  %s9514_s11 = inlined_call_operand.vmem [shape: f32[256,128], index: 11, kind: output, shape index: {}]  }
   0x1   :  { %v6747_v0 = vld [vmem:[%s9503_s3] sm:$0xff]   ;;  %v6748_v1 = vld [vmem:[%s9503_s3 + $0x8] sm:$0xff]   ;;  %v6749_v2 = vld [vmem:[%s9503_s3 + $0x10] sm:$0xff]  }
   0x2   :  { %5711 = vmatprep.subr.bf16.mxu0 %v6747_v0  ;;  %v6750_v3 = vld [vmem:[%s9503_s3 + $0x18] sm:$0xff]   ;;  %v6751_v5 = vld [vmem:[%s9503_s3 + $0x20] sm:$0xff]   ;;  %v6752_v6 = vld [vmem:[%s9503_s3 + $0x28] sm:$0xff]   ;;  %v7023_v28 = vshrl.u32 %v513_v27, 7 }
   0x3   :  { %5712 = vmatpush3.bf16.msra.mxu0 %v6747_v0  ;;  %v6755_v4 = vld [vmem:[%s9504_s0 + $0x78] sm:$0xff]   ;;  %v6753_v7 = vld [vmem:[%s9503_s3 + $0x30] sm:$0xff]   ;;  %v6770_v8 = vld [vmem:[%s9506_s5 + $0xc0] sm:$0xff]  }
   0x4   :  { %5713 = vmatprep.subr.bf16.mxu0 %v6748_v1  ;;  %5727 = vmatprep.mubr.bf16.mxu0 %v6755_v4  ;;  %v6754_v9 = vld [vmem:[%s9503_s3 + $0x38] sm:$0xff]   ;;  %v6772_v10 = vld [vmem:[%s9506_s5 + $0xc8] sm:$0xff]   ;;  %v6769_v11 = vld [vmem:[%s9506_s5 + $0x40] sm:$0xff]   ;;  %v516_v29 = vadd.s32 16, %v7023_v28  ;;  %v517_v30 = vadd.s32 24, %v7023_v28  ;;  %v520_v39 = vadd.s32 48, %v7023_v28 }
   0x5   :  { %5907 = vmatprep.subr.bf16.mxu1 %v6770_v8  ;;  %v6756_v12 = vld [vmem:[%s9505_s1 + $0x80] sm:$0xff]   ;;  %v6757_v13 = vld [vmem:[%s9505_s1 + $0x88] sm:$0xff]   ;;  %v6773_v15 = vld [vmem:[%s9506_s5 + $0x50] sm:$0xff]   ;;  %v521_v50 = vadd.s32 56, %v7023_v28  ;;  %v524_v60 = vadd.s32 80, %v7023_v28  ;;  %v522_v62 = vadd.s32 64, %v7023_v28 }
   0x6   :  { %5908 = vmatpush3.bf16.msra.mxu1 %v6770_v8  ;;  %v6771_v14 = vld [vmem:[%s9506_s5 + $0x48] sm:$0xff]   ;;  %v6758_v16 = vld [vmem:[%s9505_s1 + $0x90] sm:$0xff]   ;;  %v6759_v17 = vld [vmem:[%s9505_s1 + $0x98] sm:$0xff]   ;;  %v7033_v33 = vadd.s32 4294967280, %v516_v29  ;;  %v7041_v36 = vadd.s32 4294967280, %v517_v30  ;;  %v7052_v42 = vadd.s32 4294967280, %v520_v39 }
   0x7   :  { %5714 = vmatpush3.bf16.msra.mxu0 %v6748_v1  ;;  %5909 = vmatprep.subr.bf16.mxu1 %v6772_v10  ;;  %v6760_v18 = vld [vmem:[%s9505_s1 + $0xa0] sm:$0xff]   ;;  %v6761_v19 = vld [vmem:[%s9505_s1 + $0xa8] sm:$0xff]   ;;  %v6762_v20 = vld [vmem:[%s9505_s1 + $0xb0] sm:$0xff]   ;;  %v7076_v56 = vadd.s32 4294967280, %v521_v50  ;;  %v518_v4 = vadd.s32 32, %v7023_v28  ;;  %v7098_v8 = vadd.s32 4294967280, %v522_v62 }
   0x8   :  { %5715 = vmatprep.subr.bf16.mxu0 %v6749_v2  ;;  %v6763_v21 = vld [vmem:[%s9505_s1 + $0xb8] sm:$0xff]   ;;  %v6764_v22 = vld [vmem:[%s9505_s1 + $0xc0] sm:$0xff]   ;;  %v6765_v23 = vld [vmem:[%s9505_s1 + $0xc8] sm:$0xff]   ;;  %v589_v40 = vcvt.s32.f32 %v7033_v33  ;;  %v590_v41 = vcvt.s32.f32 %v7041_v36  ;;  %v593_v49 = vcvt.s32.f32 %v7052_v42 }
   0x9   :  { %v6766_v24 = vld [vmem:[%s9505_s1 + $0xd0] sm:$0xff]   ;;  %v6767_v25 = vld [vmem:[%s9505_s1 + $0xd8] sm:$0xff]   ;;  %v6768_v26 = vld [vmem:[%s9505_s1 + $0xe0] sm:$0xff]   ;;  %v594_v0 = vcvt.s32.f32 %v7076_v56 }
   0xa   :  { %5910 = vmatpush3.bf16.msra.mxu1 %v6772_v10  ;;  %v6774_v31 = vld [vmem:[%s9506_s5 + $0xd0] sm:$0xff]   ;;  %v6775_v32 = vld [vmem:[%s9506_s5 + $0x58] sm:$0xff]   ;;  %v6776_v34 = vld [vmem:[%s9505_s1 + $0xe8] sm:$0xff]   ;;  %v626_v45 = vmul.f32 0.1, %v589_v40 }
   0xb   :  { %5716 = vmatpush3.bf16.msra.mxu0 %v6749_v2  ;;  %5911 = vmatprep.subr.bf16.mxu1 %v6774_v31  ;;  %v6777_v35 = vld [vmem:[%s9505_s1 + $0xf0] sm:$0xff]   ;;  %v6778_v37 = vld [vmem:[%s9506_s5 + $0xd8] sm:$0xff]   ;;  %v6779_v38 = vld [vmem:[%s9506_s5 + $0x60] sm:$0xff]   ;;  %v627_v48 = vmul.f32 0.1, %v590_v41 }
   0xc   :  { %5717 = vmatprep.subr.bf16.mxu0 %v6750_v3  ;;  %v6780_v43 = vld [vmem:[%s9506_s5 + $0xe0] sm:$0xff]   ;;  %v6781_v44 = vld [vmem:[%s9506_s5 + $0x68] sm:$0xff]   ;;  %v6782_v46 = vld [vmem:[%s9505_s1 + $0xf8] sm:$0xff]   ;;  %v662_v53 = vfloor.f32 %v626_v45  ;;  %v630_v55 = vmul.f32 0.1, %v593_v49 }
   0xd   :  { %v6783_v47 = vld [vmem:[%s9507_s2 + $0x100] sm:$0xff]   ;;  %v6784_v51 = vld [vmem:[%s9506_s5 + $0xe8] sm:$0xff]   ;;  %v6785_v52 = vld [vmem:[%s9506_s5 + $0x70] sm:$0xff]   ;;  %v7074_v54 = vfloor.f32 %v627_v48  ;;  %v631_v10 = vmul.f32 0.1, %v594_v0 }
   0xe   :  { %5912 = vmatpush3.bf16.msra.mxu1 %v6774_v31  ;;  %v6786_v57 = vld [vmem:[%s9506_s5 + $0xf0] sm:$0xff]   ;;  %v6787_v58 = vld [vmem:[%s9506_s5 + $0x78] sm:$0xff]   ;;  %v806_v59 = vmul.f32 0.1, %v662_v53  ;;  %v7087_v63 = vfloor.f32 %v630_v55  ;;  %v526_v55 = vadd.s32 96, %v7023_v28 }
   0xf   :  { %5718 = vmatpush3.bf16.msra.mxu0 %v6750_v3  ;;  %5913 = vmatprep.subr.bf16.mxu1 %v6778_v37  ;;  %v807_v61 = vmul.f32 0.1, %v7074_v54  ;;  %v6788_v1 = vld [vmem:[%s9506_s5 + $0xf8] sm:$0xff]   ;;  %v525_v3 = vadd.s32 88, %v7023_v28 }
  0x10   :  { %5719 = vmatprep.subr.bf16.mxu0 %v6751_v5  ;;  %v842_v2 = vfloor.f32 %v806_v59 }
  0x12   :  { %5914 = vmatpush3.bf16.msra.mxu1 %v6778_v37 }
  0x13   :  { %5720 = vmatpush3.bf16.msra.mxu0 %v6751_v5  ;;  %5915 = vmatprep.subr.bf16.mxu1 %v6780_v43  ;;  %v519_v5 = vadd.s32 40, %v7023_v28 }
  0x14   :  { %5721 = vmatprep.subr.bf16.mxu0 %v6752_v6 }
  0x16   :  { %5916 = vmatpush3.bf16.msra.mxu1 %v6780_v43 }
  0x17   :  { %5722 = vmatpush3.bf16.msra.mxu0 %v6752_v6  ;;  %5917 = vmatprep.subr.bf16.mxu1 %v6784_v51  ;;  %v7096_v6 = vadd.s32 4294967280, %v524_v60 }
  0x18   :  { %5723 = vmatprep.subr.bf16.mxu0 %v6753_v7 }
  0x1a   :  { %5918 = vmatpush3.bf16.msra.mxu1 %v6784_v51 }
  0x1b   :  { %5724 = vmatpush3.bf16.msra.mxu0 %v6753_v7  ;;  %5919 = vmatprep.subr.bf16.mxu1 %v6786_v57  ;;  %v843_v7 = vfloor.f32 %v807_v61 }
  0x1c   :  { %5725 = vmatprep.subr.bf16.mxu0 %v6754_v9 }
  0x1e   :  { %5920 = vmatpush3.bf16.msra.mxu1 %v6786_v57  ;;  %v529_v57 = vadd.s32 120, %v7023_v28 }
  0x1f   :  { %5726 = vmatpush3.bf16.msra.mxu0 %v6754_v9  ;;  %5921 = vmatprep.subr.bf16.mxu1 %v6788_v1  ;;  %v810_v9 = vmul.f32 0.1, %v7087_v63 }
  0x20   :  { %5763 = vmatprep.subr.bf16.mxu0 %v6769_v11 }
  0x22   :  { %5728 = vmatmul.mubr.bf16.vlgmr.msra.gmra.mrb[0].mxu0 %v6756_v12  ;;  %5922 = vmatpush3.bf16.msra.mxu1 %v6788_v1  ;;  %v878_v12 = vmul.f32 10.0, %v842_v2  ;;  %v527_v1 = vadd.s32 104, %v7023_v28 }
  0x23   :  { %5731 = vmatprep.mubr.bf16.mxu0 %v6757_v13  ;;  %5764 = vmatpush3.bf16.msra.mxu0 %v6769_v11  ;;  %v6643_v11 = vtrunc.f32 %v662_v53  ;;  %v7101_v13 = vadd.s32 4294967280, %v525_v3 }
  0x24   :  { %5765 = vmatprep.subr.bf16.mxu0 %v6771_v14 }
  0x27   :  { %5766 = vmatpush3.bf16.msra.mxu0 %v6771_v14  ;;  %v523_v14 = vadd.s32 72, %v7023_v28 }
  0x28   :  { %5767 = vmatprep.subr.bf16.mxu0 %v6773_v15 }
  0x2a   :  { %5732 = vmatmul.mubr.bf16.gmra.mrb[4].mxu0 %v6758_v16  ;;  %v7105_v16 = vadd.s32 4294967280, %v518_v4 }
  0x2b   :  { %5735 = vmatprep.mubr.bf16.mxu0 %v6759_v17  ;;  %5768 = vmatpush3.bf16.msra.mxu0 %v6773_v15  ;;  %v6645_v15 = vtrunc.f32 %v7074_v54  ;;  %v7107_v17 = vadd.s32 4294967280, %v519_v5 }
  0x2c   :  { %5769 = vmatprep.subr.bf16.mxu0 %v6775_v32  ;;  %9613 = vst [vmem:[#allocation2_spill] sm:$0xff] %v7105_v16  ;;  %v591_v29 = vcvt.s32.f32 %v7105_v16 }
  0x2d   :  { %9614 = vst [vmem:[#allocation3_spill] sm:$0xff] %v7107_v17  ;;  %v6646_v27 = vcvt.f32.s32 %v6645_v15  ;;  %v592_v30 = vcvt.s32.f32 %v7107_v17  ;;  %v535_v17 = vadd.s32 168, %v7023_v28 }
  0x2f   :  { %5770 = vmatpush3.bf16.msra.mxu0 %v6775_v32  ;;  %v6789_v32 = vld [vmem:[%s9506_s5 + $0x100] sm:$0xff]   ;;  %v735_v45 = vmul.u32 10, %v6646_v27 }
  0x30   :  { %5771 = vmatprep.subr.bf16.mxu0 %v6779_v38  ;;  %5955 = vmatprep.subr.bf16.mxu1 %v6789_v32 }
  0x31   :  { %v7148_v62 = vsub.s32 %v7041_v36, %v735_v45  ;;  %v7161_v36 = vadd.s32 4294967280, %v529_v57 }
  0x32   :  { %5736 = vmatmul.mubr.bf16.gmra.mrb[8].mxu0 %v6760_v18  ;;  %v597_v18 = vcvt.s32.f32 %v7096_v6 }
  0x33   :  { %5739 = vmatprep.mubr.bf16.mxu0 %v6761_v19  ;;  %5772 = vmatpush3.bf16.msra.mxu0 %v6779_v38  ;;  %v879_v19 = vmul.f32 10.0, %v843_v7  ;;  %vm1095_vm3 = vcmp.ge.s32.totalorder %v7148_v62, 1  ;;  %vm1167_vm4 = vcmp.le.s32.totalorder %v7148_v62, 8 }
  0x34   :  { %5773 = vmatprep.subr.bf16.mxu0 %v6781_v44  ;;  %v634_v31 = vmul.f32 0.1, %v597_v18 }
  0x36   :  { %v7131_v48 = vfloor.f32 %v634_v31  ;;  %v602_v31 = vcvt.s32.f32 %v7161_v36 }
  0x37   :  { %5774 = vmatpush3.bf16.msra.mxu0 %v6781_v44 }
  0x38   :  { %5775 = vmatprep.subr.bf16.mxu0 %v6785_v52 }
  0x3a   :  { %5740 = vmatmul.mubr.bf16.gmra.mrb[12].mxu0 %v6762_v20  ;;  %v595_v20 = vcvt.s32.f32 %v7098_v8 }
  0x3b   :  { %5743 = vmatprep.mubr.bf16.mxu0 %v6763_v21  ;;  %5776 = vmatpush3.bf16.msra.mxu0 %v6785_v52  ;;  %v846_v21 = vfloor.f32 %v810_v9  ;;  %v528_v52 = vadd.s32 112, %v7023_v28  ;;  %v7159_v9 = vadd.s32 4294967280, %v526_v55 }
  0x3c   :  { %5777 = vmatprep.subr.bf16.mxu0 %v6787_v58  ;;  %v632_v37 = vmul.f32 0.1, %v595_v20  ;;  %v7169_v20 = vadd.s32 4294967280, %v527_v1 }
  0x3d   :  { %v882_v38 = vmul.f32 10.0, %v846_v21  ;;  %v7155_v4 = vadd.s32 4294967280, %v528_v52 }
  0x3e   :  { %v7135_v51 = vfloor.f32 %v632_v37 }
  0x3f   :  { %5778 = vmatpush3.bf16.msra.mxu0 %v6787_v58 }
  0x42   :  { %5744 = vmatmul.mubr.bf16.gmra.mrb[16].mxu0 %v6764_v22  ;;  %v7111_v22 = vfloor.f32 %v631_v10  ;;  %v6659_v10 = vtrunc.f32 %v7131_v48 }
  0x43   :  { %5747 = vmatprep.mubr.bf16.mxu0 %v6765_v23  ;;  %v6644_v23 = vcvt.f32.s32 %v6643_v11 }
  0x44   :  { %v811_v39 = vmul.f32 0.1, %v7111_v22  ;;  %v6653_v0 = vtrunc.f32 %v7111_v22  ;;  %v6660_v32 = vcvt.f32.s32 %v6659_v10 }
  0x45   :  { %v734_v40 = vmul.u32 10, %v6644_v23 }
  0x46   :  { %v6654_v15 = vcvt.f32.s32 %v6653_v0  ;;  %v742_v55 = vmul.u32 10, %v6660_v32 }
  0x47   :  { %v7142_v58 = vsub.s32 %v7033_v33, %v734_v40  ;;  %v812_v33 = vmul.f32 0.1, %v7135_v51  ;;  %v600_v40 = vcvt.s32.f32 %v7169_v20 }
  0x49   :  { %v848_v23 = vfloor.f32 %v812_v33  ;;  %v637_v33 = vmul.f32 0.1, %v600_v40  ;;  %vm1094_vm0 = vcmp.ge.s32.totalorder %v7142_v58, 1  ;;  %vm1166_vm1 = vcmp.le.s32.totalorder %v7142_v58, 8 }
  0x4a   :  { %5748 = vmatmul.mubr.bf16.gmra.mrb[20].mxu0 %v6766_v24  ;;  %v914_v24 = vsub.f32 %v662_v53, %v878_v12  ;;  %v918_v53 = vsub.f32 %v7087_v63, %v882_v38  ;;  %vm7325_vm7 = vmand %vm1094_vm0, %vm1166_vm1 }
  0x4b   :  { %5751 = vmatprep.mubr.bf16.mxu0 %v6767_v25  ;;  %v598_v25 = vcvt.s32.f32 %v7101_v13  ;;  %vm7369_vm0 = vmand %vm1095_vm3, %vm1167_vm4 }
  0x4c   :  { %v7124_v41 = vtrunc.f32 %v914_v24  ;;  %v7157_v5 = vtrunc.f32 %v918_v53 }
  0x4d   :  { %v635_v43 = vmul.f32 0.1, %v598_v25  ;;  %v601_v25 = vcvt.s32.f32 %v7155_v4 }
  0x4e   :  { %v6694_v59 = vcvt.f32.s32 %v7124_v41 }
  0x4f   :  { %v7145_v60 = vfloor.f32 %v635_v43  ;;  %v9515_v43 = vcvt.f32.s32 %v7157_v5  ;;  %v638_v45 = vmul.f32 0.1, %v601_v25 }
  0x50   :  { %vm7256_vm2 = vcmp.ge.s32.totalorder %v6694_v59, 1  ;;  %vm7307_vm12 = vcmp.le.s32.totalorder %v6694_v59, 8 }
  0x51   :  { %v815_v11 = vmul.f32 0.1, %v7145_v60  ;;  %v6661_v24 = vtrunc.f32 %v7145_v60  ;;  %vm7288_vm10 = vcmp.ge.s32.totalorder %v9515_v43, 1 }
  0x52   :  { %5752 = vmatmul.mubr.bf16.gmra.mrb[24].mxu0 %v6768_v26  ;;  %v7114_v26 = vadd.s32 4294967280, %v523_v14  ;;  %v532_v14 = vadd.s32 144, %v7023_v28 }
  0x53   :  { %5755 = vmatprep.mubr.bf16.mxu0 %v6776_v34  ;;  %v915_v34 = vsub.f32 %v7074_v54, %v879_v19  ;;  %v847_v54 = vfloor.f32 %v811_v39  ;;  %v6655_v19 = vtrunc.f32 %v7135_v51 }
  0x54   :  { %v596_v44 = vcvt.s32.f32 %v7114_v26  ;;  %v7181_v37 = vadd.s32 4294967280, %v532_v14  ;;  %v530_v14 = vadd.s32 128, %v7023_v28 }
  0x55   :  { %v7133_v49 = vtrunc.f32 %v915_v34  ;;  %v883_v7 = vmul.f32 10.0, %v847_v54  ;;  %v851_v34 = vfloor.f32 %v815_v11  ;;  %v6656_v39 = vcvt.f32.s32 %v6655_v19 }
  0x56   :  { %v633_v61 = vmul.f32 0.1, %v596_v44  ;;  %v6662_v44 = vcvt.f32.s32 %v6661_v24  ;;  %v639_v54 = vmul.f32 0.1, %v602_v31  ;;  %v605_v0 = vcvt.s32.f32 %v7181_v37 }
  0x57   :  { %v9516_v2 = vcvt.f32.s32 %v7133_v49  ;;  %v919_v27 = vsub.f32 %v7111_v22, %v883_v7  ;;  %v884_v22 = vmul.f32 10.0, %v848_v23  ;;  %v887_v57 = vmul.f32 10.0, %v851_v34 }
  0x58   :  { %v7165_v12 = vfloor.f32 %v633_v61  ;;  %v743_v10 = vmul.u32 10, %v6662_v44  ;;  %v7193_v11 = vfloor.f32 %v638_v45  ;;  %v7199_v23 = vfloor.f32 %v639_v54 }
  0x59   :  { %v920_v7 = vsub.f32 %v7135_v51, %v884_v22  ;;  %v642_v25 = vmul.f32 0.1, %v605_v0  ;;  %v7208_v51 = vld [vmem:[%s9506_s5] sm:$0xff]   ;;  %v7216_v31 = vfloor.f32 %v637_v33  ;;  %v7224_v34 = vadd.s32 4294967280, %v530_v14 }
  0x5a   :  { %5756 = vmatmul.mubr.bf16.gmra.mrb[28].mxu0 %v6777_v35  ;;  %v6651_v35 = vtrunc.f32 %v7087_v63  ;;  %v814_v63 = vmul.f32 0.1, %v7131_v48  ;;  %9617 = vst [vmem:[#allocation6_spill] sm:$0xff] %v7208_v51  ;;  %v818_v32 = vmul.f32 0.1, %v7193_v11  ;;  %5811 = vmatprep.subr.bf16.mxu0 %v7208_v51  ;;  %vm7280_vm9 = vcmp.ge.s32.totalorder %v9516_v2, 1 }
  0x5b   :  { %5759 = vmatprep.mubr.bf16.mxu0 %v6782_v46  ;;  %v7127_v46 = vmul.f32 0.1, %v591_v29  ;;  %v6657_v29 = vtrunc.f32 %v7165_v12  ;;  %v7237_v22 = vfloor.f32 %v642_v25  ;;  %v9673_v14 = vmov 0 }
  0x5c   :  { %v6652_v50 = vcvt.f32.s32 %v6651_v35  ;;  %v850_v18 = vfloor.f32 %v814_v63  ;;  %v813_v35 = vmul.f32 0.1, %v7165_v12  ;;  %v854_v54 = vfloor.f32 %v818_v32 }
  0x5d   :  { %9615 = vst [vmem:[#allocation4_spill] sm:$0xff] %v7127_v46  ;;  %v6658_v52 = vcvt.f32.s32 %v6657_v29  ;;  %v822_v33 = vmul.f32 0.1, %v7237_v22 }
  0x5e   :  { %v738_v3 = vmul.u32 10, %v6652_v50  ;;  %v886_v38 = vmul.f32 10.0, %v850_v18  ;;  %v7185_v50 = vtrunc.f32 %v919_v27  ;;  %v849_v61 = vfloor.f32 %v813_v35 }
  0x5f   :  { %v741_v18 = vmul.u32 10, %v6658_v52  ;;  %v817_v52 = vmul.f32 0.1, %v7216_v31  ;;  %v890_v32 = vmul.f32 10.0, %v854_v54 }
  0x60   :  { %v7172_v21 = vsub.s32 %v7052_v42, %v738_v3  ;;  %v739_v42 = vmul.u32 10, %v6654_v15  ;;  %v922_v1 = vsub.f32 %v7131_v48, %v886_v38  ;;  %v740_v3 = vmul.u32 10, %v6656_v39 }
  0x61   :  { %v6704_v15 = vcvt.f32.s32 %v7185_v50  ;;  %v923_v48 = vsub.f32 %v7145_v60, %v887_v57  ;;  %v885_v24 = vmul.f32 10.0, %v849_v61  ;;  %v7221_v60 = vsub.s32 %v7101_v13, %v743_v10 }
  0x62   :  { %5760 = vmatmul.mubr.bf16.gmra.mrb[32].mxu0 %v6783_v47  ;;  %v7129_v47 = vmul.f32 0.1, %v592_v30  ;;  %v599_v30 = vcvt.s32.f32 %v7159_v9  ;;  %v7189_v63 = vsub.s32 %v7076_v56, %v739_v42  ;;  %v7202_v56 = vsub.s32 %v7096_v6, %v742_v55 }
  0x63   :  { %v7210_v27 = vtrunc.f32 %v922_v1  ;;  %v7213_v29 = vsub.s32 %v7098_v8, %v740_v3  ;;  %v7218_v6 = vtrunc.f32 %v920_v7  ;;  %v819_v8 = vmul.f32 0.1, %v7199_v23 }
  0x64   :  { %9616 = vst [vmem:[#allocation5_spill] sm:$0xff] %v7129_v47  ;;  %v636_v53 = vmul.f32 0.1, %v599_v30  ;;  %v6667_v30 = vtrunc.f32 %v7193_v11  ;;  %v533_v42 = vadd.s32 152, %v7023_v28  ;;  %v531_v38 = vadd.s32 136, %v7023_v28 }
  0x65   :  { %v7231_v39 = vtrunc.f32 %v923_v48  ;;  %v7234_v40 = vsub.s32 %v7114_v26, %v741_v18  ;;  %v921_v13 = vsub.f32 %v7165_v12, %v885_v24  ;;  %v855_v0 = vfloor.f32 %v819_v8 }
  0x66   :  { %v7197_v19 = vfloor.f32 %v636_v53  ;;  %v6668_v45 = vcvt.f32.s32 %v6667_v30  ;;  %v603_v53 = vcvt.s32.f32 %v7224_v34  ;;  %v7245_v26 = vadd.s32 4294967280, %v533_v42 }
  0x67   :  { %v7247_v57 = vadd.s32 4294967280, %v531_v38  ;;  %v536_v1 = vadd.s32 176, %v7023_v28  ;;  %v6669_v3 = vtrunc.f32 %v7199_v23  ;;  %v534_v10 = vadd.s32 160, %v7023_v28 }
  0x68   :  { %v816_v35 = vmul.f32 0.1, %v7197_v19  ;;  %v6663_v55 = vtrunc.f32 %v7197_v19  ;;  %v640_v7 = vmul.f32 0.1, %v603_v53  ;;  %v7261_v48 = vtrunc.f32 %v921_v13 }
  0x69   :  { %v853_v24 = vfloor.f32 %v817_v52  ;;  %v604_v25 = vcvt.s32.f32 %v7247_v57  ;;  %v746_v30 = vmul.u32 10, %v6668_v45  ;;  %v606_v8 = vcvt.s32.f32 %v7245_v26 }
  0x6a   :  { %v852_v61 = vfloor.f32 %v816_v35  ;;  %v6664_v35 = vcvt.f32.s32 %v6663_v55  ;;  %vm1170_vm6 = vcmp.le.s32.totalorder %v7172_v21, 8  ;;  %v891_v38 = vmul.f32 10.0, %v855_v0 }
  0x6b   :  { %v6665_v13 = vtrunc.f32 %v7216_v31  ;;  %v7270_v52 = vadd.s32 4294967280, %v536_v1  ;;  %v6670_v53 = vcvt.f32.s32 %v6669_v3  ;;  %v858_v45 = vfloor.f32 %v822_v33 }
  0x6c   :  { %v888_v42 = vmul.f32 10.0, %v852_v61  ;;  %v7274_v54 = vfloor.f32 %v640_v7  ;;  %v7276_v55 = vadd.s32 4294967280, %v534_v10  ;;  %v889_v0 = vmul.f32 10.0, %v853_v24 }
  0x6d   :  { %v6675_v1 = vtrunc.f32 %v7237_v22  ;;  %v641_v44 = vmul.f32 0.1, %v604_v25  ;;  %v7293_v33 = vsub.s32 %v7155_v4, %v746_v30  ;;  %v926_v7 = vsub.f32 %v7193_v11, %v890_v32 }
  0x6e   :  { %v744_v10 = vmul.u32 10, %v6664_v35  ;;  %v643_v12 = vmul.f32 0.1, %v606_v8  ;;  %vm7298_vm11 = vcmp.ge.s32.totalorder %v6704_v15, 1  ;;  %v9624_v24 = vmov 0 }
  0x6f   :  { %v9625_v24 = vsel %vm7298_vm11, 4294967295, %v9624_v24  ;;  %v924_v25 = vsub.f32 %v7197_v19, %v888_v42  ;;  %v927_v43 = vsub.f32 %v7199_v23, %v891_v38  ;;  %v6666_v61 = vcvt.f32.s32 %v6665_v13 }
  0x70   :  { %v609_v2 = vcvt.s32.f32 %v7270_v52  ;;  %v9628_v11 = vcvt.f32.s32 %v7133_v49  ;;  %v747_v19 = vmul.u32 10, %v6670_v53  ;;  %v894_v23 = vmul.f32 10.0, %v858_v45 }
  0x71   :  { %v820_v32 = vmul.f32 0.1, %v7274_v54  ;;  %v607_v41 = vcvt.s32.f32 %v7276_v55  ;;  %v925_v59 = vsub.f32 %v7216_v31, %v889_v0  ;;  %v6676_v35 = vcvt.f32.s32 %v6675_v1 }
  0x72   :  { %vm7313_vm13 = vcmp.le.s32.totalorder %v9628_v11, 8  ;;  %v6671_v8 = vtrunc.f32 %v7274_v54  ;;  %v7333_v42 = vfloor.f32 %v641_v44  ;;  %v7337_v58 = vtrunc.f32 %v926_v7 }
  0x73   :  { %v7340_v38 = vsub.s32 %v7159_v9, %v744_v10  ;;  %v7342_v13 = vfloor.f32 %v643_v12  ;;  %v537_v53 = vadd.s32 184, %v7023_v28  ;;  %v7347_v31 = vtrunc.f32 %v924_v25 }
  0x74   :  { %v7349_v44 = vtrunc.f32 %v927_v43  ;;  %v745_v45 = vmul.u32 10, %v6666_v61  ;;  %v646_v0 = vmul.f32 0.1, %v609_v2  ;;  %v9633_v9 = vcvt.f32.s32 %v7218_v6 }
  0x75   :  { %v7362_v1 = vsub.s32 %v7161_v36, %v747_v19  ;;  %v930_v7 = vsub.f32 %v7237_v22, %v894_v23  ;;  %v856_v43 = vfloor.f32 %v820_v32  ;;  %v644_v10 = vmul.f32 0.1, %v607_v41 }
  0x76   :  { %vm7357_vm5 = vcmp.ge.s32.totalorder %v9633_v9, 1  ;;  %v9638_v61 = vcvt.f32.s32 %v7261_v48  ;;  %v9639_v25 = vmov 0  ;;  %v7379_v36 = vtrunc.f32 %v925_v59 }
  0x77   :  { %v750_v11 = vmul.u32 10, %v6676_v35  ;;  %v6672_v22 = vcvt.f32.s32 %v6671_v8  ;;  %v821_v19 = vmul.f32 0.1, %v7333_v42  ;;  %vm9641_vm8 = vcmp.ge.s32.totalorder %v7172_v21, 1 }
  0x78   :  { %vm7375_vm1 = vcmp.ge.s32.totalorder %v9638_v61, 1  ;;  %vm7386_vm3 = vmand %vm9641_vm8, %vm1170_vm6  ;;  %v9644_v23 = vcvt.f32.s32 %v7210_v27  ;;  %v9645_v32 = vmov 0  ;;  %v9647_v41 = vcvt.f32.s32 %v7231_v39 }
  0x79   :  { %v9640_v25 = vsel %vm7375_vm1, 4294967295, %v9639_v25  ;;  %v9648_v59 = vmov 0  ;;  %v6677_v21 = vtrunc.f32 %v7342_v13  ;;  %v823_v8 = vmul.f32 0.1, %v7342_v13 }
  0x7a   :  { %vm7392_vm4 = vcmp.ge.s32.totalorder %v9644_v23, 1  ;;  %vm7398_vm14 = vcmp.ge.s32.totalorder %v9647_v41, 1  ;;  %v7407_v9 = vadd.s32 4294967280, %v537_v53  ;;  %v9650_v61 = vcvt.f32.s32 %v7157_v5 }
  0x7b   :  { %v9646_v32 = vsel %vm7392_vm4, 4294967295, %v9645_v32  ;;  %v9649_v59 = vsel %vm7398_vm14, 4294967295, %v9648_v59  ;;  %v9651_v23 = vmov 0  ;;  %vm9653_vm14 = vcmp.le.s32.totalorder %v7189_v63, 8 }
  0x7c   :  { %vm7411_vm8 = vcmp.le.s32.totalorder %v9650_v61, 8  ;;  %vm9654_vm4 = vcmp.ge.s32.totalorder %v7189_v63, 1  ;;  %vm7425_vm15 = vcmp.le.s32.totalorder %v6704_v15, 8  ;;  %v9657_v35 = vmov 0 }
  0x7d   :  { %v9652_v23 = vsel %vm7411_vm8, 4294967295, %v9651_v23  ;;  %vm7419_vm1 = vmand %vm9654_vm4, %vm9653_vm14  ;;  %v9658_v35 = vsel %vm7425_vm15, 4294967295, %v9657_v35  ;;  %v7434_v63 = vsub.s32 %v7169_v20, %v745_v45  ;;  %v7436_v61 = vfloor.f32 %v646_v0 }
  0x7e   :  { %v9659_v50 = vcvt.f32.s32 %v7218_v6  ;;  %v9660_v15 = vmov 0  ;;  %v9662_v5 = vcvt.f32.s32 %v7261_v48  ;;  %v9663_v53 = vmov 0  ;;  %vm9665_vm15 = vmand %vm7325_vm7, %vm7256_vm2 }
  0x7f   :  { %v7456_v20 = vtrunc.f32 %v930_v7  ;;  %v892_v45 = vmul.f32 10.0, %v856_v43  ;;  %v6673_v0 = vtrunc.f32 %v7333_v42  ;;  %v7459_v6 = vfloor.f32 %v644_v10  ;;  %vm7482_vm14 = vmand %vm9665_vm15, %vm7307_vm12 }
  0x80   :  { %vm7444_vm4 = vcmp.le.s32.totalorder %v9659_v50, 8  ;;  %vm7450_vm6 = vcmp.le.s32.totalorder %v9662_v5, 8  ;;  %v9525_v48 = vcvt.f32.s32 %v7379_v36  ;;  %v7467_v5 = vsub.s32 %v7181_v37, %v750_v11  ;;  %vm9668_vm8 = vmand %vm7369_vm0, %vm7280_vm9 }
  0x81   :  { %v9661_v15 = vsel %vm7444_vm4, 4294967295, %v9660_v15  ;;  %v9664_v53 = vsel %vm7450_vm6, 4294967295, %v9663_v53  ;;  %v748_v50 = vmul.u32 10, %v6672_v22  ;;  %v857_v51 = vfloor.f32 %v821_v19  ;;  %vm7493_vm6 = vmand %vm9668_vm8, %vm7313_vm13 }
  0x82   :  { %v6678_v7 = vcvt.f32.s32 %v6677_v21  ;;  %v859_v43 = vfloor.f32 %v823_v8  ;;  %v610_v10 = vcvt.s32.f32 %v7407_v9  ;;  %v9666_v37 = vmov 0 }
  0x83   :  { %v9667_v37 = vsel %vm7482_vm14, 4294967295, %v9666_v37  ;;  %v9669_v11 = vmov 0  ;;  %vm9671_vm4 = vcmp.le.s32.totalorder %v7202_v56, 8  ;;  %vm9672_vm11 = vcmp.ge.s32.totalorder %v7202_v56, 1 }
  0x84   :  { %v9670_v11 = vsel %vm7493_vm6, 4294967295, %v9669_v11  ;;  %vm7501_vm2 = vmand %vm9672_vm11, %vm9671_vm4  ;;  %v9675_v4 = vcvt.f32.s32 %v7347_v31  ;;  %v9676_v30 = vmov 0  ;;  %v826_v18 = vmul.f32 0.1, %v7436_v61 }
  0x85   :  { %v9674_v14 = vsel %vm7501_vm2, 4294967295, %v9673_v14  ;;  %vm9678_vm13 = vcmp.le.s32.totalorder %v7213_v29, 8  ;;  %vm9679_vm15 = vcmp.ge.s32.totalorder %v7213_v29, 1  ;;  %v9682_v49 = vcvt.f32.s32 %v7337_v58 }
  0x86   :  { %vm7507_vm7 = vcmp.ge.s32.totalorder %v9675_v4, 1  ;;  %vm7518_vm11 = vmand %vm9679_vm15, %vm9678_vm13  ;;  %v9683_v2 = vmov 0  ;;  %v9685_v22 = vcvt.f32.s32 %v7349_v44  ;;  %v9686_v19 = vmov 0 }
  0x87   :  { %v9677_v30 = vsel %vm7507_vm7, 4294967295, %v9676_v30  ;;  %vm7524_vm0 = vcmp.ge.s32.totalorder %v9682_v49, 1  ;;  %v928_v29 = vsub.f32 %v7274_v54, %v892_v45  ;;  %v6674_v8 = vcvt.f32.s32 %v6673_v0  ;;  %vm9712_vm7 = vmand %vm7386_vm3, %vm7288_vm10 }
  0x88   :  { %v9684_v2 = vsel %vm7524_vm0, 4294967295, %v9683_v2  ;;  %vm7530_vm8 = vcmp.ge.s32.totalorder %v9685_v22, 1  ;;  %v824_v4 = vmul.f32 0.1, %v7459_v6  ;;  %vm9688_vm4 = vcmp.le.s32.totalorder %v7234_v40, 8 }
  0x89   :  { %v9687_v19 = vsel %vm7530_vm8, 4294967295, %v9686_v19  ;;  %vm9689_vm13 = vcmp.ge.s32.totalorder %v7234_v40, 1  ;;  %vm7547_vm9 = vcmp.ge.s32.totalorder %v9525_v48, 1  ;;  %v9692_v22 = vmov 0 }
  0x8a   :  { %vm7541_vm15 = vmand %vm9689_vm13, %vm9688_vm4  ;;  %v9693_v22 = vsel %vm7547_vm9, 4294967295, %v9692_v22  ;;  %v7552_v21 = vsub.s32 %v7224_v34, %v748_v50  ;;  %v893_v54 = vmul.f32 10.0, %v857_v51  ;;  %v647_v45 = vmul.f32 0.1, %v610_v10 }
  0x8b   :  { %v7554_v0 = vadd.s32 4294967280, %v535_v17  ;;  %vm9694_vm12 = vcmp.le.s32.totalorder %v7221_v60, 8  ;;  %vm9695_vm4 = vcmp.ge.s32.totalorder %v7221_v60, 1  ;;  %v9696_v40 = vmov 0 }
  0x8c   :  { %vm7560_vm13 = vmand %vm9695_vm4, %vm9694_vm12  ;;  %v751_v48 = vmul.u32 10, %v6678_v7  ;;  %v895_v16 = vmul.f32 10.0, %v859_v43  ;;  %v6683_v34 = vtrunc.f32 %v7436_v61  ;;  %v538_v51 = vadd.s32 192, %v7023_v28 }
  0x8d   :  { %v9697_v40 = vsel %vm7560_vm13, 4294967295, %v9696_v40  ;;  %v862_v17 = vfloor.f32 %v826_v18  ;;  %v6679_v60 = vtrunc.f32 %v7459_v6  ;;  %v7573_v50 = vfloor.f32 %v647_v45 }
  0x8e   :  { %v608_v10 = vcvt.s32.f32 %v7554_v0  ;;  %vm9698_vm12 = vnez %v9640_v25  ;;  %v7580_v7 = vtrunc.f32 %v928_v29  ;;  %v749_v43 = vmul.u32 10, %v6674_v8 }
  0x8f   :  { %v860_v47 = vfloor.f32 %v824_v4  ;;  %v7582_v46 = vadd.s32 4294967280, %v538_v51  ;;  %v9700_v18 = vcvt.f32.s32 %v7210_v27  ;;  %v9701_v45 = vmov 0 }
  0x90   :  { %v9704_v29 = vcvt.f32.s32 %v7231_v39  ;;  %v9705_v8 = vmov 0  ;;  %vm9707_vm14 = vcmp.le.s32.totalorder %v7293_v33, 8  ;;  %vm9708_vm0 = vcmp.ge.s32.totalorder %v7293_v33, 1 }
  0x91   :  { %vm7590_vm9 = vcmp.le.s32.totalorder %v9700_v18, 8  ;;  %vm7608_vm8 = vmand %vm9708_vm0, %vm9707_vm14  ;;  %v9709_v27 = vmov 0  ;;  %v929_v4 = vsub.f32 %v7333_v42, %v893_v54  ;;  %v827_v51 = vmul.f32 0.1, %v7573_v50 }
  0x92   :  { %v9702_v45 = vsel %vm7590_vm9, 4294967295, %v9701_v45  ;;  %vm7600_vm6 = vcmp.le.s32.totalorder %v9704_v29, 8  ;;  %v9710_v27 = vsel %vm7608_vm8, 4294967295, %v9709_v27  ;;  %v645_v18 = vmul.f32 0.1, %v608_v10 }
  0x93   :  { %v9706_v8 = vsel %vm7600_vm6, 4294967295, %v9705_v8  ;;  %vm9711_vm4 = vnez %v9652_v23  ;;  %v9713_v39 = vmov 0  ;;  %vm9715_vm14 = vnez %v9658_v35 }
  0x94   :  { %vm7622_vm13 = vmand %vm9712_vm7, %vm9711_vm4  ;;  %vm9716_vm0 = vnez %v9625_v24  ;;  %v9718_v33 = vmov 0  ;;  %vm9720_vm9 = vcmp.le.s32.totalorder %v7340_v38, 8  ;;  %vm9721_vm8 = vcmp.ge.s32.totalorder %v7340_v38, 1 }
  0x95   :  { %v9714_v39 = vsel %vm7622_vm13, 4294967295, %v9713_v39  ;;  %vm9717_vm2 = vmand %vm7419_vm1, %vm9716_vm0  ;;  %v9722_v3 = vmov 0  ;;  %v931_v42 = vsub.f32 %v7342_v13, %v895_v16  ;;  %v6684_v62 = vcvt.f32.s32 %v6683_v34 }
  0x96   :  { %vm7633_vm6 = vmand %vm9717_vm2, %vm9715_vm14  ;;  %v611_v24 = vcvt.s32.f32 %v7582_v46  ;;  %vm9724_vm1 = vnez %v9661_v15  ;;  %v9726_v38 = vmov 0  ;;  %v9730_v16 = vmov 0 }
  0x97   :  { %v9719_v33 = vsel %vm7633_vm6, 4294967295, %v9718_v33  ;;  %vm7641_vm10 = vmand %vm9721_vm8, %vm9720_vm9  ;;  %vm9728_vm9 = vnez %v9664_v53  ;;  %vm9732_vm14 = vcmp.le.s32.totalorder %v7362_v1, 8  ;;  %vm9733_vm0 = vcmp.ge.s32.totalorder %v7362_v1, 1 }
  0x98   :  { %v9723_v3 = vsel %vm7641_vm10, 4294967295, %v9722_v3  ;;  %vm9725_vm2 = vmand %vm7518_vm11, %vm7357_vm5  ;;  %v9734_v13 = vmov 0  ;;  %v7679_v12 = vsub.s32 %v7245_v26, %v751_v48  ;;  %v898_v35 = vmul.f32 10.0, %v862_v17 }
  0x99   :  { %vm7655_vm7 = vmand %vm9725_vm2, %vm9724_vm1  ;;  %v6680_v23 = vcvt.f32.s32 %v6679_v60  ;;  %v7681_v41 = vfloor.f32 %v645_v18  ;;  %v896_v25 = vmul.f32 10.0, %v860_v47  ;;  %v6685_v53 = vtrunc.f32 %v7573_v50 }
  0x9a   :  { %v9727_v38 = vsel %vm7655_vm7, 4294967295, %v9726_v38  ;;  %vm9729_vm8 = vmand %vm7541_vm15, %vm9698_vm12  ;;  %v648_v15 = vmul.f32 0.1, %v611_v24  ;;  %v539_v56 = vadd.s32 200, %v7023_v28  ;;  %vm9738_vm1 = vcmp.le.s32.totalorder %v7434_v63, 8 }
  0x9b   :  { %vm7666_vm4 = vmand %vm9729_vm8, %vm9728_vm9  ;;  %vm9739_vm2 = vcmp.ge.s32.totalorder %v7434_v63, 1  ;;  %v9740_v26 = vmov 0  ;;  %v785_v47 = vsub.s32 %v7247_v57, %v749_v43  ;;  %v6723_v1 = vtrunc.f32 %v929_v4 }
  0x9c   :  { %v9731_v16 = vsel %vm7666_vm4, 4294967295, %v9730_v16  ;;  %vm7674_vm5 = vmand %vm9733_vm0, %vm9732_vm14  ;;  %v863_v48 = vfloor.f32 %v827_v51  ;;  %v6681_v49 = vtrunc.f32 %v7681_v41  ;;  %v9743_v54 = vcvt.f32.s32 %v7347_v31 }
  0x9d   :  { %v9735_v13 = vsel %vm7674_vm5, 4294967295, %v9734_v13  ;;  %vm7693_vm9 = vmand %vm9739_vm2, %vm9738_vm1  ;;  %v9744_v34 = vmov 0  ;;  %v9746_v63 = vcvt.f32.s32 %v7379_v36  ;;  %v9747_v17 = vmov 0 }
  0x9e   :  { %v9741_v26 = vsel %vm7693_vm9, 4294967295, %v9740_v26  ;;  %vm7705_vm0 = vcmp.le.s32.totalorder %v9743_v54, 8  ;;  %v9749_v57 = vcvt.f32.s32 %v7456_v20  ;;  %v9750_v60 = vmov 0 }
  0x9f   :  { %v9745_v34 = vsel %vm7705_vm0, 4294967295, %v9744_v34  ;;  %vm7711_vm1 = vcmp.le.s32.totalorder %v9746_v63, 8  ;;  %v6722_v10 = vcvt.f32.s32 %v7580_v7  ;;  %v7722_v43 = vtrunc.f32 %v931_v42 }
  0xa0   :  { %v9748_v17 = vsel %vm7711_vm1, 4294967295, %v9747_v17  ;;  %vm7717_vm2 = vcmp.ge.s32.totalorder %v9749_v57, 1  ;;  %v754_v31 = vmul.u32 10, %v6684_v62  ;;  %v825_v29 = vmul.f32 0.1, %v7681_v41 }
  0xa1   :  { %v9751_v60 = vsel %vm7717_vm2, 4294967295, %v9750_v60  ;;  %v9754_v36 = vcvt.f32.s32 %v7337_v58  ;;  %v9755_v4 = vmov 0  ;;  %v9758_v7 = vcvt.f32.s32 %v7349_v44 }
  0xa2   :  { %v9759_v51 = vmov 0  ;;  %v934_v18 = vsub.f32 %v7436_v61, %v898_v35  ;;  %v7747_v58 = vfloor.f32 %v648_v15  ;;  %v7749_v42 = vadd.s32 4294967280, %v539_v56 }
  0xa3   :  { %vm7731_vm15 = vcmp.le.s32.totalorder %v9754_v36, 8  ;;  %vm7741_vm1 = vcmp.le.s32.totalorder %v9758_v7, 8  ;;  %v752_v62 = vmul.u32 10, %v6680_v23  ;;  %v932_v44 = vsub.f32 %v7459_v6, %v896_v25 }
  0xa4   :  { %v9756_v4 = vsel %vm7731_vm15, 4294967295, %v9755_v4  ;;  %v9760_v51 = vsel %vm7741_vm1, 4294967295, %v9759_v51  ;;  %v6686_v24 = vcvt.f32.s32 %v6685_v53  ;;  %v861_v54 = vfloor.f32 %v825_v29 }
  0xa5   :  { %vm9762_vm2 = vcmp.le.s32.totalorder %v7467_v5, 8  ;;  %vm9763_vm8 = vcmp.ge.s32.totalorder %v7467_v5, 1  ;;  %v9764_v61 = vmov 0  ;;  %v6724_v35 = vcvt.f32.s32 %v6723_v1 }
  0xa6   :  { %vm7760_vm11 = vmand %vm9763_vm8, %vm9762_vm2  ;;  %v899_v15 = vmul.f32 10.0, %v863_v48  ;;  %v6682_v56 = vcvt.f32.s32 %v6681_v49  ;;  %vm9766_vm12 = vcmp.le.s32.totalorder %v7552_v21, 8  ;;  %vm9767_vm1 = vcmp.ge.s32.totalorder %v7552_v21, 1 }
  0xa7   :  { %v9765_v61 = vsel %vm7760_vm11, 4294967295, %v9764_v61  ;;  %vm7769_vm14 = vmand %vm9767_vm1, %vm9766_vm12  ;;  %v9768_v6 = vmov 0  ;;  %v6728_v23 = vcvt.f32.s32 %v7722_v43  ;;  %vm1181_vm8 = vcmp.le.s32.totalorder %v785_v47, 8 }
  0xa8   :  { %v9769_v6 = vsel %vm7769_vm14, 4294967295, %v9768_v6  ;;  %v790_v5 = vsub.s32 %v7270_v52, %v754_v31  ;;  %v7775_v25 = vtrunc.f32 %v934_v18  ;;  %v897_v53 = vmul.f32 10.0, %v861_v54 }
  0xa9   :  { %v828_v1 = vmul.f32 0.1, %v7747_v58  ;;  %v612_v48 = vcvt.s32.f32 %v7749_v42  ;;  %vm9770_vm1 = vnez %v9702_v45  ;;  %vm9771_vm2 = vnez %v9674_v14 }
  0xaa   :  { %vm9772_vm5 = vnez %v9646_v32  ;;  %v9774_v52 = vmov 0  ;;  %vm9777_vm3 = vnez %v9706_v8  ;;  %vm9778_vm9 = vnez %v9697_v40 }
  0xab   :  { %vm9773_vm15 = vmand %vm9771_vm2, %vm9772_vm5  ;;  %vm9779_vm10 = vnez %v9649_v59  ;;  %v9781_v21 = vmov 0  ;;  %vm7805_vm12 = vcmp.ge.s32.totalorder %v6722_v10, 1  ;;  %v9783_v14 = vmov 0 }
  0xac   :  { %vm7790_vm11 = vmand %vm9773_vm15, %vm9770_vm1  ;;  %v9784_v14 = vsel %vm7805_vm12, 4294967295, %v9783_v14  ;;  %v788_v32 = vsub.s32 %v7276_v55, %v752_v62  ;;  %v6729_v45 = vtrunc.f32 %v932_v44  ;;  %v755_v49 = vmul.u32 10, %v6686_v24 }
  0xad   :  { %v9775_v52 = vsel %vm7790_vm11, 4294967295, %v9774_v52  ;;  %vm9780_vm0 = vmand %vm9778_vm9, %vm9779_vm10  ;;  %vm9785_vm15 = vcmp.ge.s32.totalorder %v785_v47, 1  ;;  %v9786_v59 = vmov 0  ;;  %vm7819_vm10 = vcmp.ge.s32.totalorder %v6724_v35, 1 }
  0xae   :  { %9776 = vst [vmem:[#allocation7_spill] sm:$0xff] %v9775_v52  ;;  %vm7801_vm14 = vmand %vm9780_vm0, %vm9777_vm3  ;;  %v9788_v40 = vmov 0  ;;  %v935_v8 = vsub.f32 %v7573_v50, %v899_v15  ;;  %v753_v63 = vmul.u32 10, %v6682_v56  ;;  %v6687_v55 = vtrunc.f32 %v7747_v58 }
  0xaf   :  { %v9782_v21 = vsel %vm7801_vm14, 4294967295, %v9781_v21  ;;  %vm7815_vm1 = vmand %vm9785_vm15, %vm1181_vm8  ;;  %v9789_v40 = vsel %vm7819_vm10, 4294967295, %v9788_v40  ;;  %vm7825_vm3 = vcmp.le.s32.totalorder %v6722_v10, 8  ;;  %vm9792_vm9 = vcmp.le.s32.totalorder %v7679_v12, 8 }
  0xb0   :  { %v9787_v59 = vsel %vm7815_vm1, 4294967295, %v9786_v59  ;;  %vm9793_vm0 = vcmp.ge.s32.totalorder %v7679_v12, 1  ;;  %v9794_v47 = vmov 0  ;;  %vm7837_vm2 = vcmp.ge.s32.totalorder %v6728_v23, 1 }
  0xb1   :  { %vm7833_vm8 = vmand %vm9793_vm0, %vm9792_vm9  ;;  %v9796_v43 = vmov 0  ;;  %vm7841_vm15 = vcmp.le.s32.totalorder %v6724_v35, 8  ;;  %v9798_v50 = vmov 0  ;;  %v864_v10 = vfloor.f32 %v828_v1 }
  0xb2   :  { %v9795_v47 = vsel %vm7833_vm8, 4294967295, %v9794_v47  ;;  %v9797_v43 = vsel %vm7837_vm2, 4294967295, %v9796_v43  ;;  %v9799_v50 = vsel %vm7841_vm15, 4294967295, %v9798_v50  ;;  %vm9800_vm5 = vnez %v9769_v6 }
  0xb3   :  { %v6734_v12 = vcvt.f32.s32 %v7775_v25  ;;  %v933_v31 = vsub.f32 %v7681_v41, %v897_v53  ;;  %v649_v29 = vmul.f32 0.1, %v612_v48  ;;  %v6730_v36 = vcvt.f32.s32 %v6729_v45 }
  0xb4   :  { %v791_v7 = vsub.s32 %v7407_v9, %v755_v49  ;;  %vm9801_vm13 = vnez %v9745_v34  ;;  %vm9802_vm4 = vnez %v9723_v3  ;;  %vm9803_vm14 = vnez %v9677_v30 }
  0xb5   :  { %vm9804_vm9 = vmand %vm9802_vm4, %vm9803_vm14  ;;  %v9805_v41 = vmov 0  ;;  %vm9808_vm15 = vnez %v9748_v17  ;;  %vm9809_vm0 = vnez %v9741_v26  ;;  %vm9810_vm7 = vnez %v9693_v22  ;;  %v9817_v17 = vld [vmem:[#allocation4_spill] sm:$0xff]  ;;  %v9818_v22 = vld [vmem:[#allocation5_spill] sm:$0xff] }
  0xb6   :  { %vm7863_vm11 = vmand %vm9804_vm9, %vm9801_vm13  ;;  %v9812_v9 = vmov 0  ;;  %vm9815_vm1 = vnez %v9751_v60  ;;  %vm9816_vm12 = vnez %v9765_v61  ;;  %v7882_v30 = vtrunc.f32 %v935_v8 }
  0xb7   :  { %v9806_v41 = vsel %vm7863_vm11, 4294967295, %v9805_v41  ;;  %vm9811_vm6 = vmand %vm9809_vm0, %vm9810_vm7  ;;  %v789_v3 = vsub.s32 %v7554_v0, %v753_v63  ;;  %v6688_v34 = vcvt.f32.s32 %v6687_v55  ;;  %v7886_v26 = vfloor.f32 %v9817_v17 }
  0xb8   :  { %9807 = vst [vmem:[#allocation8_spill] sm:$0xff] %v9806_v41  ;;  %vm7874_vm10 = vmand %vm9811_vm6, %vm9808_vm15  ;;  %v7889_v18 = vfloor.f32 %v9818_v22  ;;  %vm9819_vm6 = vnez %v9756_v4  ;;  %vm9820_vm7 = vnez %v9710_v27  ;;  %vm9821_vm14 = vnez %v9684_v2 }
  0xb9   :  { %v9813_v9 = vsel %vm7874_vm10, 4294967295, %v9812_v9  ;;  %vm9822_vm15 = vmand %vm9820_vm7, %vm9821_vm14  ;;  %v9823_v62 = vmov 0  ;;  %vm9826_vm0 = vnez %v9760_v51  ;;  %vm9827_vm4 = vnez %v9735_v13 }
  0xba   :  { %9814 = vst [vmem:[#allocation9_spill] sm:$0xff] %v9813_v9  ;;  %vm7898_vm9 = vmand %vm9822_vm15, %vm9819_vm6  ;;  %vm9828_vm13 = vnez %v9687_v19  ;;  %v9830_v0 = vmov 0  ;;  %v900_v2 = vmul.f32 10.0, %v864_v10  ;;  %v685_v27 = vfloor.f32 %v649_v29 }
  0xbb   :  { %v9824_v62 = vsel %vm7898_vm9, 4294967295, %v9823_v62  ;;  %vm9829_vm10 = vmand %vm9827_vm4, %vm9828_vm13  ;;  %v9833_v4 = vcvt.f32.s32 %v7456_v20  ;;  %v9838_v19 = vmov 0  ;;  %vm7934_vm14 = vcmp.le.s32.totalorder %v6728_v23, 8 }
  0xbc   :  { %9825 = vst [vmem:[#allocation4_spill] sm:$0xff] %v9824_v62  ;;  %vm7909_vm11 = vmand %vm9829_vm10, %vm9826_vm0  ;;  %vm9836_vm10 = vnez %v9784_v14  ;;  %vm9843_vm15 = vnez %v9799_v50  ;;  %vm9844_vm0 = vnez %v9787_v59  ;;  %vm9845_vm7 = vnez %v9789_v40 }
  0xbd   :  { %v9831_v0 = vsel %vm7909_vm11, 4294967295, %v9830_v0  ;;  %vm7919_vm6 = vcmp.le.s32.totalorder %v9833_v4, 8  ;;  %vm9837_vm4 = vmand %vm9800_vm5, %vm9836_vm10  ;;  %v9847_v20 = vmov 0  ;;  %vm9850_vm5 = vcmp.le.s32.totalorder %v790_v5, 8 }
  0xbe   :  { %9832 = vst [vmem:[#allocation5_spill] sm:$0xff] %v9831_v0  ;;  %vm7930_vm13 = vmand %vm9837_vm4, %vm7825_vm3  ;;  %vm9851_vm3 = vcmp.ge.s32.totalorder %v790_v5, 1  ;;  %vm7955_vm4 = vcmp.ge.s32.totalorder %v6734_v12, 1  ;;  %v6731_v54 = vtrunc.f32 %v933_v31  ;;  %vm9857_vm2 = vcmp.ge.s32.totalorder %v788_v32, 1 }
  0xbf   :  { %v9839_v19 = vsel %vm7930_vm13, 4294967295, %v9838_v19  ;;  %vm9846_vm11 = vmand %vm9844_vm0, %vm9845_vm7  ;;  %vm9856_vm13 = vcmp.le.s32.totalorder %v788_v32, 8  ;;  %v9858_v35 = vmov 0  ;;  %v9860_v15 = vmov 0 }
  0xc0   :  { %9840 = vst [vmem:[#allocation10_spill] sm:$0xff] %v9839_v19  ;;  %vm7945_vm9 = vmand %vm9846_vm11, %vm9843_vm15  ;;  %vm7965_vm11 = vcmp.ge.s32.totalorder %v6730_v36, 1  ;;  %v6689_v56 = vtrunc.f32 %v685_v27  ;;  %v829_v6 = vmul.f32 0.1, %v685_v27  ;;  %v6736_v23 = vcvt.f32.s32 %v7882_v30 }
  0xc1   :  { %v9848_v20 = vsel %vm7945_vm9, 4294967295, %v9847_v20  ;;  %vm7951_vm10 = vmand %vm9851_vm3, %vm9850_vm5  ;;  %v9861_v15 = vsel %vm7965_vm11, 4294967295, %v9860_v15  ;;  %vm1187_vm15 = vcmp.le.s32.totalorder %v791_v7, 8  ;;  %v756_v5 = vmul.u32 10, %v6688_v34 }
  0xc2   :  { %9849 = vst [vmem:[#allocation11_spill] sm:$0xff] %v9848_v20  ;;  %vm7961_vm8 = vmand %vm9857_vm2, %vm9856_vm13  ;;  %v9865_v25 = vmov 0  ;;  %vm9868_vm0 = vnez %v9795_v47  ;;  %vm9869_vm9 = vnez %v9797_v43  ;;  %v9871_v53 = vmov 0 }
  0xc3   :  { %v9859_v35 = vsel %vm7961_vm8, 4294967295, %v9858_v35  ;;  %vm9864_vm13 = vmand %vm9816_vm12, %vm9815_vm1  ;;  %vm1185_vm1 = vcmp.le.s32.totalorder %v789_v3, 8  ;;  %v936_v60 = vsub.f32 %v7747_v58, %v900_v2  ;;  %v6690_v61 = vcvt.f32.s32 %v6689_v56  ;;  %v9918_v56 = vld [vmem:[#allocation2_spill] sm:$0xff] }
  0xc4   :  { %vm7981_vm7 = vmand %vm9864_vm13, %vm7919_vm6  ;;  %v865_v1 = vfloor.f32 %v829_v6  ;;  %vm9874_vm6 = vnez %v9861_v15  ;;  %vm9875_vm13 = vnez %v9859_v35  ;;  %v6732_v48 = vcvt.f32.s32 %v6731_v54 }
  0xc5   :  { %v9866_v25 = vsel %vm7981_vm7, 4294967295, %v9865_v25  ;;  %vm9870_vm8 = vmand %vm9868_vm0, %vm9869_vm9  ;;  %vm1328_vm9 = vcmp.le.s32.totalorder %v6730_v36, 8  ;;  %v757_v32 = vmul.u32 10, %v6690_v61  ;;  %v808_v49 = vmul.f32 0.1, %v7886_v26 }
  0xc6   :  { %9867 = vst [vmem:[#allocation12_spill] sm:$0xff] %v9866_v25  ;;  %vm7992_vm11 = vmand %vm9870_vm8, %vm7934_vm14  ;;  %vm9876_vm8 = vcmp.ge.s32.totalorder %v791_v7, 1  ;;  %v901_v45 = vmul.f32 10.0, %v865_v1  ;;  %vm9879_vm0 = vcmp.ge.s32.totalorder %v789_v3, 1  ;;  %v792_v59 = vsub.s32 %v7582_v46, %v756_v5 }
  0xc7   :  { %v9872_v53 = vsel %vm7992_vm11, 4294967295, %v9871_v53  ;;  %vm1292_vm2 = vmand %vm9875_vm13, %vm9874_vm6  ;;  %v809_v40 = vmul.f32 0.1, %v7889_v18  ;;  %v9882_v8 = vmov 0  ;;  %v6737_v55 = vtrunc.f32 %v936_v60 }
  0xc8   :  { %9873 = vst [vmem:[#allocation13_spill] sm:$0xff] %v9872_v53  ;;  %vm8006_vm14 = vmand %vm9876_vm8, %vm1187_vm15  ;;  %vm8022_vm15 = vcmp.ge.s32.totalorder %v6736_v23, 1  ;;  %v937_v57 = vsub.f32 %v685_v27, %v901_v45  ;;  %vm8030_vm3 = vcmp.ge.s32.totalorder %v6732_v48, 1  ;;  %v793_v47 = vsub.s32 %v7749_v42, %v757_v32 }
  0xc9   :  { %vm8012_vm12 = vmand %vm9879_vm0, %vm1185_vm1  ;;  %vm1330_vm0 = vcmp.le.s32.totalorder %v6734_v12, 8  ;;  %v6647_v43 = vtrunc.f32 %v7886_v26  ;;  %v844_v10 = vfloor.f32 %v808_v49  ;;  %v540_v42 = vadd.s32 208, %v7023_v28 }
  0xca   :  { %vm8018_vm6 = vmand %vm1292_vm2, %vm1328_vm9  ;;  %v6739_v50 = vtrunc.f32 %v937_v57  ;;  %vm1116_vm13 = vcmp.ge.s32.totalorder %v792_v59, 1  ;;  %vm1188_vm7 = vcmp.le.s32.totalorder %v792_v59, 8  ;;  %v845_v12 = vfloor.f32 %v809_v40 }
  0xcb   :  { %v9883_v8 = vsel %vm8018_vm6, 4294967295, %v9882_v8  ;;  %vm9895_vm5 = vmand %vm7951_vm10, %vm7955_vm4  ;;  %v9896_v31 = vmov 0  ;;  %vm1329_vm1 = vcmp.le.s32.totalorder %v6732_v48, 8  ;;  %v6738_v29 = vcvt.f32.s32 %v6737_v55  ;;  %v9925_v48 = vld [vmem:[#allocation3_spill] sm:$0xff] }
  0xcc   :  { %9884 = vst [vmem:[#allocation14_spill] sm:$0xff] %v9883_v8  ;;  %vm8054_vm9 = vmand %vm9895_vm5, %vm1330_vm0  ;;  %v6649_v28 = vtrunc.f32 %v7889_v18  ;;  %v6740_v36 = vcvt.f32.s32 %v6739_v50  ;;  %vm1117_vm11 = vcmp.ge.s32.totalorder %v793_v47, 1  ;;  %vm1189_vm6 = vcmp.le.s32.totalorder %v793_v47, 8 }
  0xcd   :  { %v9897_v31 = vsel %vm8054_vm9, 4294967295, %v9896_v31  ;;  %vm1293_vm8 = vmand %vm8012_vm12, %vm8030_vm3  ;;  %vm9899_vm2 = vnez %v9866_v25  ;;  %vm9900_vm10 = vnez %v9872_v53  ;;  %v6648_v30 = vcvt.f32.s32 %v6647_v43 }
  0xce   :  { %9898 = vst [vmem:[#allocation15_spill] sm:$0xff] %v9897_v31  ;;  %vm8067_vm5 = vmand %vm1116_vm13, %vm1188_vm7  ;;  %v880_v3 = vmul.f32 10.0, %v844_v10  ;;  %vm1331_vm0 = vcmp.le.s32.totalorder %v6736_v23, 8  ;;  %v9903_v34 = vmov 0  ;;  %v8075_v17 = vadd.s32 4294967280, %v540_v42 }
  0xcf   :  { %vm8071_vm3 = vmand %vm1293_vm8, %vm1329_vm1  ;;  %v881_v22 = vmul.f32 10.0, %v845_v12  ;;  %vm8077_vm12 = vcmp.ge.s32.totalorder %v6738_v29, 1  ;;  %v6650_v4 = vcvt.f32.s32 %v6649_v28  ;;  %vm8085_vm7 = vcmp.ge.s32.totalorder %v6740_v36, 1 }
  0xd0   :  { %v9904_v34 = vsel %vm8071_vm3, 4294967295, %v9903_v34  ;;  %vm8081_vm9 = vmand %vm1117_vm11, %vm1189_vm6  ;;  %vm9912_vm13 = vnez %v9883_v8  ;;  %v9914_v13 = vmov 0  ;;  %v736_v44 = vmul.u32 10, %v6648_v30 }
  0xd1   :  { %9905 = vst [vmem:[#allocation16_spill] sm:$0xff] %v9904_v34  ;;  %vm9913_vm8 = vmand %vm8006_vm14, %vm8022_vm15  ;;  %v916_v24 = vsub.f32 %v7886_v26, %v880_v3  ;;  %v613_v54 = vcvt.s32.f32 %v8075_v17  ;;  %v917_v35 = vsub.f32 %v7889_v18, %v881_v22  ;;  %vm1332_vm6 = vcmp.le.s32.totalorder %v6738_v29, 8  ;;  %v8120_v26 = vld [vmem:[%s9508_s4] ss:$0 sm:$0xff] }
  0xd2   :  { %vm8098_vm4 = vmand %vm9913_vm8, %vm1331_vm0  ;;  %v737_v15 = vmul.u32 10, %v6650_v4  ;;  %vm1333_vm15 = vcmp.le.s32.totalorder %v6740_v36, 8  ;;  %vm9917_vm0 = vnez %v9897_v31  ;;  %v772_v18 = vsub.s32 %v9918_v56, %v736_v44  ;;  %v6803_v31 = vld [vmem:[%s9506_s5 + $0x138] sm:$0xff]  }
  0xd3   :  { %v9915_v13 = vsel %vm8098_vm4, 4294967295, %v9914_v13  ;;  %vm1296_vm11 = vmand %vm8067_vm5, %vm8077_vm12  ;;  %v6697_v6 = vtrunc.f32 %v916_v24  ;;  %v650_v23 = vmul.f32 0.1, %v613_v54  ;;  %v9919_v5 = vmov 0 }
  0xd4   :  { %9916 = vst [vmem:[#allocation17_spill] sm:$0xff] %v9915_v13  ;;  %vm1297_vm14 = vmand %vm8081_vm9, %vm8085_vm7  ;;  %v6699_v60 = vtrunc.f32 %v917_v35  ;;  %v9922_v61 = vmov 0  ;;  %v773_v14 = vsub.s32 %v9925_v48, %v737_v15  ;;  %vm1096_vm7 = vcmp.ge.s32.totalorder %v772_v18, 1 }
  0xd5   :  { %vm8123_vm5 = vmand %vm1296_vm11, %vm1332_vm6  ;;  %v6698_v58 = vcvt.f32.s32 %v6697_v6  ;;  %v8137_v59 = vfloor.f32 %v650_v23  ;;  %vm1168_vm11 = vcmp.le.s32.totalorder %v772_v18, 8  ;;  %vm9930_vm8 = vnez %v9667_v37 }
  0xd6   :  { %v9920_v5 = vsel %vm8123_vm5, 4294967295, %v9919_v5  ;;  %vm8127_vm9 = vmand %vm1297_vm14, %vm1333_vm15  ;;  %v6700_v57 = vcvt.f32.s32 %v6699_v60  ;;  %vm1097_vm6 = vcmp.ge.s32.totalorder %v773_v14, 1  ;;  %vm1169_vm14 = vcmp.le.s32.totalorder %v773_v14, 8  ;;  %v6814_v14 = vld [vmem:[%s9506_s5 + $0x98] sm:$0xff]  }
  0xd7   :  { %9921 = vst [vmem:[#allocation2_spill] sm:$0xff] %v9920_v5  ;;  %v9923_v61 = vsel %vm8127_vm9, 4294967295, %v9922_v61  ;;  %vm8140_vm15 = vmand %vm1096_vm7, %vm1168_vm11  ;;  %vm8144_vm12 = vcmp.ge.s32.totalorder %v6698_v58, 1  ;;  %v830_v50 = vmul.f32 0.1, %v8137_v59  ;;  %vm9931_vm1 = vnez %v9670_v11 }
  0xd8   :  { %9924 = vst [vmem:[#allocation18_spill] sm:$0xff] %v9923_v61  ;;  %vm8155_vm9 = vmand %vm1097_vm6, %vm1169_vm14  ;;  %vm8159_vm7 = vcmp.ge.s32.totalorder %v6700_v57, 1  ;;  %vm8165_vm11 = vcmp.le.s32.totalorder %v6698_v58, 8  ;;  %v9569_v3 = vmov 0.0|0.0   ;;  %vm8177_vm14 = vcmp.le.s32.totalorder %v6700_v57, 8 }
  0xd9   :  { %v8170_v22 = vrot.slane %v9569_v3, 3  ;;  %vm1276_vm6 = vmand %vm8140_vm15, %vm8144_vm12  ;;  %v6691_v51 = vtrunc.f32 %v8137_v59  ;;  %v866_v15 = vfloor.f32 %v830_v50  ;;  %v9571_v60 = vmov 0  }
  0xda   :  { %vm9945_vm5 = vmand %vm8155_vm9, %vm8159_vm7  ;;  %vm9574_vm15 = vsmask.f32 256  ;;  %vm9949_vm9 = vnez %v9719_v33  ;;  %vm9953_vm7 = vcmask 1044480  }
  0xdb   :  { %vm8220_vm12 = vmand %vm9945_vm5, %vm8177_vm14  ;;  %v6692_v57 = vcvt.f32.s32 %v6691_v51  ;;  %vm9952_vm5 = vnez %v9775_v52  ;;  %vm9956_vm14 = vnez %v9727_v38 }
  0xf5   :  { %v5729_v1 = vpop.f32.mrb[0].mxu0 }
  0xf6   :  { %v341_v32 = vadd.f32 %v5729_v1, %v8120_v26  ;;  %v332_v45 = vpop.f32.mrb[1].mxu0  ;;  %v8196_v1 = vrot.slane %v9571_v60, 7 }
  0xf7   :  { %v5730_v49 = vpop.f32.mrb[2].mxu0 }
  0xf8   :  { %v477_v40 = vmax.f32 %v341_v32, 0.0  ;;  %v344_v63 = vadd.f32 %v5730_v49, %v8120_v26  ;;  %v335_v55 = vpop.f32.mrb[3].mxu0 }
  0xfa   :  { %v478_v46 = vmax.f32 %v344_v63, 0.0  ;;  %v1454_v10 = vsel %vm9930_vm8, %v477_v40, 0.0  ;;  %vm8205_vm8 = vmand %vm1276_vm6, %vm8165_vm11  ;;  %vm9955_vm6 = vnez %v9782_v21 }
  0xfb   :  { %vm9954_vm11 = vmmov %vm9953_vm7 }
  0xfc   :  { %v1455_v42 = vsel %vm9931_vm1, %v478_v46, 0.0  ;;  %v8153_v12 = vpack.c.bf16 %v478_v46, %v477_v40  ;;  %vm9944_vm1 = vcmask 1044480   ;;  %v8225_v46 = vmul.f32 10.0, %v866_v15 }
  0xfd   :  { %v8163_v36 = vpack.c.bf16 %v1455_v42, %v1454_v10  ;;  %v5733_v7 = vpop.f32.mrb[4].mxu0 }
  0xfe   :  { %v357_v2 = vadd.f32 %v5733_v7, %v8120_v26  ;;  %v348_v27 = vpop.f32.mrb[5].mxu0 }
  0xff   :  { %9936 = vst [vmem:[#allocation3_spill] sm:$0xff] %v8163_v36  ;;  %v8183_v44 = vshrl.u32 %v8163_v36, 16  ;;  %v349_v24 = vadd.f32 %v8120_v26, %v348_v27  ;;  %v5734_v54 = vpop.f32.mrb[6].mxu0  ;;  %v1558_v35 = vrot.slane %v8163_v36, 3  ;;  %v8192_v56 = vshll.u32 %v8163_v36, 16 }
 0x100   :  { %v481_v18 = vmax.f32 %v357_v2, 0.0  ;;  %v360_v6 = vadd.f32 %v5734_v54, %v8120_v26  ;;  %v351_v23 = vpop.f32.mrb[7].mxu0 }
 0x101   :  { %9941 = vst [vmem:[#allocation19_spill] sm:$0xff] %v8192_v56  ;;  %v479_v48 = vmax.f32 %v349_v24, 0.0  ;;  %v352_v32 = vadd.f32 %v8120_v26, %v351_v23  ;;  %v1559_v45 = vsel %vm9944_vm1, %v8170_v22, %v1558_v35  ;;  %v2554_v49 = vrot.slane %v8183_v44, 7 }
 0x102   :  { %v482_v58 = vmax.f32 %v360_v6, 0.0  ;;  %5779 = vmatprep.mubr.bf16.mxu0 %v1559_v45  ;;  %vm9948_vm1 = vnez %v9714_v39  ;;  %v938_v45 = vsub.f32 %v8137_v59, %v8225_v46  ;;  %v6795_v59 = vld [vmem:[%s9506_s5 + $0x8] sm:$0xff]  }
 0x103   :  { %v480_v63 = vmax.f32 %v352_v32, 0.0  ;;  %v2555_v55 = vor.u32 %v2554_v49, %v8192_v56  ;;  %v1458_v47 = vsel %vm9948_vm1, %v481_v18, 0.0  ;;  %v1456_v43 = vsel %vm8205_vm8, %v479_v48, 0.0 }
 0x104   :  { %v1459_v50 = vsel %vm9949_vm9, %v482_v58, 0.0  ;;  %v8233_v10 = vpack.c.bf16 %v482_v58, %v481_v18  ;;  %v758_v18 = vmul.u32 10, %v6692_v57 }
 0x105   :  { %v8235_v42 = vpack.c.bf16 %v1459_v50, %v1458_v47  ;;  %v1457_v29 = vsel %vm8220_vm12, %v480_v63, 0.0  ;;  %v8239_v28 = vpack.c.bf16 %v480_v63, %v479_v48  ;;  %v5737_v7 = vpop.f32.mrb[8].mxu0  ;;  %v2556_v30 = vsel %vm9574_vm15, %v8196_v1, %v2555_v55 }
 0x106   :  { %v8243_v2 = vpack.c.bf16 %v1457_v29, %v1456_v43  ;;  %v373_v27 = vadd.f32 %v5737_v7, %v8120_v26  ;;  %v364_v4 = vpop.f32.mrb[9].mxu0  ;;  %5923 = vmatprep.mubr.bf16.mxu1 %v2556_v30 }
 0x107   :  { %9950 = vst [vmem:[#allocation20_spill] sm:$0xff] %v8235_v42  ;;  %v8247_v51 = vshrl.u32 %v8235_v42, 16  ;;  %v365_v24 = vadd.f32 %v8120_v26, %v364_v4  ;;  %v5738_v54 = vpop.f32.mrb[10].mxu0  ;;  %v1562_v15 = vrot.slane %v8235_v42, 3  ;;  %v8261_v43 = vshll.u32 %v8235_v42, 16 }
 0x108   :  { %9951 = vst [vmem:[#allocation21_spill] sm:$0xff] %v8243_v2  ;;  %v8252_v6 = vshrl.u32 %v8243_v2, 16  ;;  %v485_v23 = vmax.f32 %v373_v27, 0.0  ;;  %v376_v48 = vadd.f32 %v5738_v54, %v8120_v26  ;;  %v367_v32 = vpop.f32.mrb[11].mxu0  ;;  %v1560_v55 = vrot.slane %v8243_v2, 3 }
 0x109   :  { %v483_v58 = vmax.f32 %v365_v24, 0.0  ;;  %v368_v63 = vadd.f32 %v8120_v26, %v367_v32  ;;  %v9573_v47 = vrot.slane %v8247_v51, 7  ;;  %v8264_v57 = vshll.u32 %v8243_v2, 16 }
 0x10a   :  { %v486_v50 = vmax.f32 %v376_v48, 0.0  ;;  %v2557_v29 = vrot.slane %v8252_v6, 7  ;;  %v1462_v46 = vsel %vm9952_vm5, %v485_v23, 0.0  ;;  %v1561_v30 = vsel %vm9953_vm7, %v1558_v35, %v1560_v55 }
 0x10b   :  { %v484_v7 = vmax.f32 %v368_v63, 0.0  ;;  %v1563_v27 = vsel %vm9954_vm11, %v1560_v55, %v1562_v15  ;;  %5780 = vmatmul.mubr.bf16.vlgmr.msra.gmra.mrb[36].mxu0 %v1561_v30  ;;  %v2561_v48 = vor.u32 %v9573_v47, %v8261_v43  ;;  %v1460_v32 = vsel %vm9956_vm14, %v483_v58, 0.0  ;;  %v9959_v30 = vld [vmem:[#allocation6_spill] sm:$0xff] }
 0x10c   :  { %v1463_v4 = vsel %vm9955_vm6, %v486_v50, 0.0  ;;  %v8278_v24 = vpack.c.bf16 %v486_v50, %v485_v23  ;;  %v2558_v54 = vor.u32 %v2557_v29, %v8264_v57  ;;  %vm9958_vm7 = vnez %v9731_v16  ;;  %5783 = vmatprep.mubr.bf16.mxu0 %v1563_v27  ;;  %v6790_v50 = vld [vmem:[%s9506_s5 + $0x108] sm:$0xff]   ;;  %5812 = vmatpush3.bf16.msra.mxu0 %v9959_v30 }
 0x10d   :  { %v8286_v35 = vpack.c.bf16 %v1463_v4, %v1462_v46  ;;  %v1461_v63 = vsel %vm9958_vm7, %v484_v7, 0.0  ;;  %v8290_v55 = vpack.c.bf16 %v484_v7, %v483_v58  ;;  %v5741_v23 = vpop.f32.mrb[12].mxu0  ;;  %v8301_v4 = vsub.s32 %v8075_v17, %v758_v18  ;;  %5813 = vmatprep.subr.bf16.mxu0 %v6795_v59  ;;  %v6796_v58 = vld [vmem:[%s9506_s5 + $0x10] sm:$0xff]   ;;  %v6817_v16 = vld [vmem:[%s9506_s5 + $0xa8] sm:$0xff]  }
 0x10e   :  { %v8296_v3 = vpack.c.bf16 %v1461_v63, %v1460_v32  ;;  %v389_v60 = vadd.f32 %v5741_v23, %v8120_v26  ;;  %v380_v47 = vpop.f32.mrb[13].mxu0  ;;  %v2559_v46 = vsel %vm9574_vm15, %v2554_v49, %v2558_v54  ;;  %v2562_v63 = vsel %vm9574_vm15, %v2557_v29, %v2561_v48  ;;  %v6861_v54 = vld [vmem:[%s9506_s5 + $0x100] sm:$0xff]  }
 0x10f   :  { %9957 = vst [vmem:[#allocation22_spill] sm:$0xff] %v8286_v35  ;;  %v8307_v7 = vshrl.u32 %v8286_v35, 16  ;;  %v381_v27 = vadd.f32 %v8120_v26, %v380_v47  ;;  %v5742_v32 = vpop.f32.mrb[14].mxu0  ;;  %5924 = vmatmul.mubr.bf16.vlgmr.msra.gmra.mrb[0].mxu1 %v2559_v46  ;;  %v8319_v47 = vtrunc.f32 %v938_v45  ;;  %vm9965_vm11 = vnez %v9824_v62 }
 0x110   :  { %9960 = vst [vmem:[#allocation6_spill] sm:$0xff] %v8296_v3  ;;  %v8313_v49 = vshrl.u32 %v8296_v3, 16  ;;  %v489_v17 = vmax.f32 %v389_v60, 0.0  ;;  %v392_v18 = vadd.f32 %v5742_v32, %v8120_v26  ;;  %5956 = vmatpush3.bf16.msra.mxu1 %v6861_v54  ;;  %v383_v30 = vpop.f32.mrb[15].mxu0  ;;  %5927 = vmatprep.mubr.bf16.mxu1 %v2562_v63  ;;  %v1564_v48 = vrot.slane %v8296_v3, 3  ;;  %v6791_v60 = vld [vmem:[%s9506_s5 + $0x110] sm:$0xff]  }
 0x111   :  { %9961 = vst [vmem:[#allocation23_spill] sm:$0xff] %v8307_v7  ;;  %v487_v46 = vmax.f32 %v381_v27, 0.0  ;;  %v384_v29 = vadd.f32 %v8120_v26, %v383_v30  ;;  %5957 = vmatprep.subr.bf16.mxu1 %v6790_v50  ;;  %5814 = vmatpush3.bf16.msra.mxu0 %v6795_v59  ;;  %v8328_v32 = vshll.u32 %v8286_v35, 16  ;;  %v8331_v63 = vshll.u32 %v8296_v3, 16  ;;  %v6798_v3 = vld [vmem:[%s9506_s5 + $0x18] sm:$0xff]  }
 0x112   :  { %9962 = vst [vmem:[#allocation24_spill] sm:$0xff] %v8313_v49  ;;  %v490_v45 = vmax.f32 %v392_v18, 0.0  ;;  %v2563_v27 = vrot.slane %v8313_v49, 7  ;;  %5815 = vmatprep.subr.bf16.mxu0 %v6796_v58  ;;  %v1466_v54 = vsel %vm9965_vm11, %v489_v17, 0.0  ;;  %vm9966_vm15 = vcmask 1044480  }
 0x113   :  { %9963 = vst [vmem:[#allocation25_spill] sm:$0xff] %v8328_v32  ;;  %9964 = vst [vmem:[#allocation26_spill] sm:$0xff] %v8331_v63  ;;  %v488_v30 = vmax.f32 %v384_v29, 0.0  ;;  %v1565_v23 = vsel %vm9966_vm15, %v1562_v15, %v1564_v48  ;;  %v9967_v59 = vrot.slane %v8286_v35, 3  ;;  %vm9969_vm6 = vnez %v9831_v0 }
 0x114   :  { %vm9968_vm5 = vmmov %vm9966_vm15  ;;  %v1467_v18 = vsel %vm9969_vm6, %v490_v45, 0.0  ;;  %v8347_v2 = vpack.c.bf16 %v490_v45, %v489_v17  ;;  %5784 = vmatmul.mubr.bf16.gmra.mrb[40].mxu0 %v1565_v23  ;;  %v2564_v29 = vor.u32 %v2563_v27, %v8331_v63  ;;  %5958 = vmatpush3.bf16.msra.mxu1 %v6790_v50  ;;  %v9971_v15 = vrot.slane %v8307_v7, 7  ;;  %v6792_v50 = vld [vmem:[%s9506_s5 + $0x118] sm:$0xff]  }
 0x115   :  { %v1567_v36 = vsel %vm9968_vm5, %v1564_v48, %v9967_v59  ;;  %vm9972_vm15 = vnez %v9806_v41  ;;  %v8355_v59 = vpack.c.bf16 %v1467_v18, %v1466_v54  ;;  %vm9974_vm5 = vnez %v9813_v9  ;;  %v5745_v17 = vpop.f32.mrb[16].mxu0  ;;  %5959 = vmatprep.subr.bf16.mxu1 %v6791_v60  ;;  %5816 = vmatpush3.bf16.msra.mxu0 %v6796_v58  ;;  %v6794_v41 = vld [vmem:[%s9506_s5 + $0x120] sm:$0xff]  }
 0x116   :  { %9970 = vst [vmem:[#allocation27_spill] sm:$0xff] %v8347_v2  ;;  %v2567_v42 = vor.u32 %v9971_v15, %v8328_v32  ;;  %v1464_v48 = vsel %vm9972_vm15, %v487_v46, 0.0  ;;  %v1465_v62 = vsel %vm9974_vm5, %v488_v30, 0.0  ;;  %v8359_v0 = vpack.c.bf16 %v488_v30, %v487_v46  ;;  %5787 = vmatprep.mubr.bf16.mxu0 %v1567_v36  ;;  %v396_v15 = vpop.f32.mrb[17].mxu0  ;;  %5817 = vmatprep.subr.bf16.mxu0 %v6798_v3 }
 0x117   :  { %9973 = vst [vmem:[#allocation28_spill] sm:$0xff] %v8355_v59  ;;  %v8364_v23 = vpack.c.bf16 %v1465_v62, %v1464_v48  ;;  %v405_v45 = vadd.f32 %v5745_v17, %v8120_v26  ;;  %v9977_v54 = vrot.slane %v8247_v51, 7  ;;  %vm9978_vm11 = vsmask.f32 256  ;;  %v5746_v30 = vpop.f32.mrb[18].mxu0 }
 0x118   :  { %9975 = vst [vmem:[#allocation29_spill] sm:$0xff] %v8359_v0  ;;  %v8373_v36 = vshrl.u32 %v8355_v59, 16  ;;  %v397_v46 = vadd.f32 %v8120_v26, %v396_v15  ;;  %vm9979_vm5 = vmmov %vm9978_vm11  ;;  %v399_v2 = vpop.f32.mrb[19].mxu0  ;;  %5960 = vmatpush3.bf16.msra.mxu1 %v6791_v60  ;;  %v6742_v15 = vcvt.f32.s32 %v8319_v47  ;;  %v9982_v9 = vrot.slane %v8355_v59, 3 }
 0x119   :  { %9976 = vst [vmem:[#allocation30_spill] sm:$0xff] %v8364_v23  ;;  %v2565_v18 = vsel %vm9978_vm11, %v9977_v54, %v2564_v29  ;;  %v2568_v62 = vsel %vm9979_vm5, %v2563_v27, %v2567_v42  ;;  %v6799_v29 = vld [vmem:[%s9506_s5 + $0x20] sm:$0xff]   ;;  %v8382_v17 = vshrl.u32 %v8364_v23, 16  ;;  %v493_v58 = vmax.f32 %v405_v45, 0.0  ;;  %5961 = vmatprep.subr.bf16.mxu1 %v6792_v50  ;;  %5818 = vmatpush3.bf16.msra.mxu0 %v6798_v3 }
 0x11a   :  { %5928 = vmatmul.mubr.bf16.gmra.mrb[4].mxu1 %v2565_v18  ;;  %v408_v54 = vadd.f32 %v5746_v30, %v8120_v26  ;;  %v491_v18 = vmax.f32 %v397_v46, 0.0  ;;  %v400_v42 = vadd.f32 %v8120_v26, %v399_v2  ;;  %v1568_v27 = vrot.slane %v8364_v23, 3  ;;  %5819 = vmatprep.subr.bf16.mxu0 %v6799_v29 }
 0x11b   :  { %5931 = vmatprep.mubr.bf16.mxu1 %v2568_v62  ;;  %v8393_v45 = vshll.u32 %v8355_v59, 16  ;;  %v8396_v30 = vshll.u32 %v8364_v23, 16  ;;  %v2569_v47 = vrot.slane %v8382_v17, 7  ;;  %v1470_v2 = vsel %vm9899_vm2, %v493_v58, 0.0 }
 0x11c   :  { %v494_v60 = vmax.f32 %v408_v54, 0.0  ;;  %v492_v46 = vmax.f32 %v400_v42, 0.0  ;;  %v9980_v62 = vrot.slane %v8286_v35, 3  ;;  %vm9981_vm11 = vcmask 1044480   ;;  %v6801_v54 = vld [vmem:[%s9506_s5 + $0x28] sm:$0xff]   ;;  %5962 = vmatpush3.bf16.msra.mxu1 %v6792_v50 }
 0x11d   :  { %vm9983_vm5 = vmmov %vm9981_vm11  ;;  %v2570_v42 = vor.u32 %v2569_v47, %v8396_v30  ;;  %5963 = vmatprep.subr.bf16.mxu1 %v6794_v41  ;;  %vm9992_vm6 = vsmask.f32 256  ;;  %vm8435_vm15 = vcmp.ge.s32.totalorder %v6742_v15, 1  ;;  %5820 = vmatpush3.bf16.msra.mxu0 %v6799_v29  ;;  %v1872_v33 = vrot.slane %v8382_v17, 2 }
 0x11e   :  { %v1569_v48 = vsel %vm9981_vm11, %v9980_v62, %v1568_v27  ;;  %v1571_v0 = vsel %vm9983_vm5, %v1568_v27, %v9982_v9  ;;  %v1471_v3 = vsel %vm9900_vm10, %v494_v60, 0.0  ;;  %v8412_v23 = vpack.c.bf16 %v494_v60, %v493_v58  ;;  %v5749_v58 = vpop.f32.mrb[20].mxu0  ;;  %vm9995_vm2 = vmmov %vm9992_vm6  ;;  %5821 = vmatprep.subr.bf16.mxu0 %v6801_v54 }
 0x11f   :  { %5788 = vmatmul.mubr.bf16.gmra.mrb[44].mxu0 %v1569_v48  ;;  %v9985_v62 = vrot.slane %v8373_v36, 7  ;;  %vm9986_vm11 = vnez %v9839_v19  ;;  %v8420_v27 = vpack.c.bf16 %v1471_v3, %v1470_v2  ;;  %vm9988_vm5 = vnez %v9848_v20  ;;  %v6797_v48 = vld [vmem:[%s9506_s5 + $0x128] sm:$0xff]  }
 0x120   :  { %9984 = vst [vmem:[#allocation31_spill] sm:$0xff] %v8412_v23  ;;  %v1468_v9 = vsel %vm9986_vm11, %v491_v18, 0.0  ;;  %v1469_v25 = vsel %vm9988_vm5, %v492_v46, 0.0  ;;  %v8424_v53 = vpack.c.bf16 %v492_v46, %v491_v18  ;;  %5791 = vmatprep.mubr.bf16.mxu0 %v1571_v0  ;;  %v421_v50 = vadd.f32 %v5749_v58, %v8120_v26  ;;  %5964 = vmatpush3.bf16.msra.mxu1 %v6794_v41  ;;  %v6800_v41 = vld [vmem:[%s9506_s5 + $0x130] sm:$0xff]  }
 0x121   :  { %v2573_v35 = vor.u32 %v9985_v62, %v8393_v45  ;;  %9987 = vst [vmem:[#allocation32_spill] sm:$0xff] %v8420_v27  ;;  %v8429_v60 = vpack.c.bf16 %v1469_v25, %v1468_v9  ;;  %v412_v62 = vpop.f32.mrb[21].mxu0  ;;  %v9991_v2 = vrot.slane %v8307_v7, 7  ;;  %v8440_v0 = vshrl.u32 %v8420_v27, 16  ;;  %5965 = vmatprep.subr.bf16.mxu1 %v6797_v48  ;;  %5822 = vmatpush3.bf16.msra.mxu0 %v6801_v54 }
 0x122   :  { %9989 = vst [vmem:[#allocation33_spill] sm:$0xff] %v8424_v53  ;;  %v413_v18 = vadd.f32 %v8120_v26, %v412_v62  ;;  %v5750_v46 = vpop.f32.mrb[22].mxu0  ;;  %v497_v29 = vmax.f32 %v421_v50, 0.0  ;;  %vm9999_vm10 = vcmp.ge.s32.totalorder %v8301_v4, 1  ;;  %v10004_v53 = vrot.slane %v8420_v27, 3  ;;  %v8537_v62 = vld [vmem:[%s9506_s5 + $0x80] sm:$0xff]  }
 0x123   :  { %9990 = vst [vmem:[#allocation34_spill] sm:$0xff] %v8429_v60  ;;  %v2571_v3 = vsel %vm9992_vm6, %v9991_v2, %v2570_v42  ;;  %v2574_v25 = vsel %vm9995_vm2, %v2569_v47, %v2573_v35  ;;  %v6802_v42 = vld [vmem:[%s9506_s5 + $0x30] sm:$0xff]   ;;  %v8449_v58 = vshrl.u32 %v8429_v60, 16  ;;  %v424_v2 = vadd.f32 %v5750_v46, %v8120_v26  ;;  %v415_v19 = vpop.f32.mrb[23].mxu0 }
 0x124   :  { %5932 = vmatmul.mubr.bf16.gmra.mrb[8].mxu1 %v2571_v3  ;;  %vm8452_vm6 = vcmp.le.s32.totalorder %v6742_v15, 8  ;;  %v495_v35 = vmax.f32 %v413_v18, 0.0  ;;  %v416_v47 = vadd.f32 %v8120_v26, %v415_v19  ;;  %v1572_v3 = vrot.slane %v8429_v60, 3  ;;  %5823 = vmatprep.subr.bf16.mxu0 %v6802_v42 }
 0x125   :  { %5935 = vmatprep.mubr.bf16.mxu1 %v2574_v25  ;;  %vm9998_vm2 = vcmp.le.s32.totalorder %v8301_v4, 8  ;;  %v8471_v15 = vshll.u32 %v8420_v27, 16  ;;  %v8474_v19 = vshll.u32 %v8429_v60, 16  ;;  %v498_v18 = vmax.f32 %v424_v2, 0.0  ;;  %v6804_v2 = vld [vmem:[%s9506_s5 + $0x38] sm:$0xff]   ;;  %5966 = vmatpush3.bf16.msra.mxu1 %v6797_v48 }
 0x126   :  { %vm8462_vm11 = vmand %vm9999_vm10, %vm9998_vm2  ;;  %v2575_v4 = vrot.slane %v8449_v58, 7  ;;  %v1474_v25 = vsel %vm9917_vm0, %v497_v29, 0.0  ;;  %v496_v9 = vmax.f32 %v416_v47, 0.0  ;;  %v10002_v46 = vrot.slane %v8355_v59, 3  ;;  %5967 = vmatprep.subr.bf16.mxu1 %v6800_v41  ;;  %5824 = vmatpush3.bf16.msra.mxu0 %v6802_v42 }
 0x127   :  { %vm10003_vm10 = vcmask 1044480   ;;  %v1475_v54 = vsel %vm8098_vm4, %v498_v18, 0.0  ;;  %v8490_v60 = vpack.c.bf16 %v498_v18, %v497_v29  ;;  %v5753_v18 = vpop.f32.mrb[24].mxu0  ;;  %5825 = vmatprep.subr.bf16.mxu0 %v6804_v2  ;;  %v1875_v39 = vrot.slane %v8396_v30, 3 }
 0x128   :  { %v1573_v20 = vsel %vm10003_vm10, %v10002_v46, %v1572_v3  ;;  %vm10005_vm2 = vmmov %vm10003_vm10  ;;  %v2576_v47 = vor.u32 %v2575_v4, %v8474_v19  ;;  %v1472_v46 = vsel %vm9912_vm13, %v495_v35, 0.0  ;;  %v8502_v59 = vpack.c.bf16 %v1475_v54, %v1474_v25 }
 0x129   :  { %v1575_v52 = vsel %vm10005_vm2, %v1572_v3, %v10004_v53  ;;  %10006 = vst [vmem:[#allocation35_spill] sm:$0xff] %v8490_v60  ;;  %5792 = vmatmul.mubr.bf16.gmra.mrb[48].mxu0 %v1573_v20  ;;  %vm1298_vm10 = vmand %vm8462_vm11, %vm8435_vm15  ;;  %v10007_v53 = vrot.slane %v8440_v0, 7  ;;  %v1473_v20 = vsel %vm8071_vm3, %v496_v9, 0.0  ;;  %v8506_v29 = vpack.c.bf16 %v496_v9, %v495_v35  ;;  %5968 = vmatpush3.bf16.msra.mxu1 %v6800_v41 }
 0x12a   :  { %5795 = vmatprep.mubr.bf16.mxu0 %v1575_v52  ;;  %v8511_v13 = vpack.c.bf16 %v1473_v20, %v1472_v46  ;;  %v437_v48 = vadd.f32 %v5753_v18, %v8120_v26  ;;  %v10009_v25 = vrot.slane %v8373_v36, 7  ;;  %vm10010_vm2 = vsmask.f32 256  ;;  %vm8527_vm0 = vmand %vm1298_vm10, %vm8452_vm6  ;;  %5969 = vmatprep.subr.bf16.mxu1 %v6803_v31 }
 0x12b   :  { %v2579_v3 = vor.u32 %v10007_v53, %v8471_v15  ;;  %10008 = vst [vmem:[#allocation36_spill] sm:$0xff] %v8506_v29  ;;  %v428_v53 = vpop.f32.mrb[25].mxu0  ;;  %v8518_v9 = vshrl.u32 %v8502_v59, 16  ;;  %v10011_v52 = vmov 0  ;;  %vm10016_vm15 = vcmask 1044480   ;;  %5826 = vmatpush3.bf16.msra.mxu0 %v6804_v2 }
 0x12c   :  { %v2577_v54 = vsel %vm10010_vm2, %v10009_v25, %v2576_v47  ;;  %v10012_v52 = vsel %vm8527_vm0, 4294967295, %v10011_v52  ;;  %v429_v35 = vadd.f32 %v8120_v26, %v428_v53  ;;  %v5754_v46 = vpop.f32.mrb[26].mxu0  ;;  %v1578_v47 = vrot.slane %v8502_v59, 3  ;;  %v8548_v25 = vld [vmem:[%s9506_s5 + $0x140] sm:$0xff]   ;;  %vm10017_vm11 = vmmov %vm10016_vm15  ;;  %5859 = vmatprep.subr.bf16.mxu0 %v8537_v62 }
 0x12d   :  { %10013 = vst [vmem:[#allocation37_spill] sm:$0xff] %v10012_v52  ;;  %5936 = vmatmul.mubr.bf16.gmra.mrb[12].mxu1 %v2577_v54  ;;  %v2580_v42 = vsel %vm10010_vm2, %v2575_v4, %v2579_v3  ;;  %v8540_v23 = vshrl.u32 %v8511_v13, 16  ;;  %v501_v50 = vmax.f32 %v437_v48, 0.0  ;;  %v431_v20 = vpop.f32.mrb[27].mxu0  ;;  %v1576_v18 = vrot.slane %v8511_v13, 3 }
 0x12e   :  { %5939 = vmatprep.mubr.bf16.mxu1 %v2580_v42  ;;  %v499_v53 = vmax.f32 %v429_v35, 0.0  ;;  %v432_v4 = vadd.f32 %v8120_v26, %v431_v20  ;;  %v2584_v3 = vrot.slane %v8518_v9, 7  ;;  %v6880_v48 = vmov 0.0   ;;  %5970 = vmatpush3.bf16.msra.mxu1 %v6803_v31 }
 0x12f   :  { %v1478_v54 = vsel %vm8527_vm0, %v501_v50, 0.0  ;;  %v8552_v46 = vpack.c.bf16 %v6880_v48, %v501_v50  ;;  %v10015_v42 = vrot.slane %v8420_v27, 3  ;;  %v1579_v26 = vsel %vm10017_vm11, %v1576_v18, %v1578_v47  ;;  %6003 = vmatprep.subr.bf16.mxu1 %v8548_v25 }
 0x130   :  { %v8559_v35 = vshll.u32 %v8502_v59, 16  ;;  %v8561_v20 = vpack.c.bf16 %v6880_v48, %v1478_v54  ;;  %v500_v60 = vmax.f32 %v432_v4, 0.0  ;;  %v2581_v8 = vrot.slane %v8540_v23, 7 }
 0x131   :  { %10014 = vst [vmem:[#allocation38_spill] sm:$0xff] %v8552_v46  ;;  %v1577_v41 = vsel %vm10016_vm15, %v10015_v42, %v1576_v18  ;;  %v8566_v50 = vshll.u32 %v8511_v13, 16  ;;  %vm10018_vm6 = vnez %v9920_v5  ;;  %vm10019_vm10 = vnez %v9923_v61  ;;  %vm10022_vm15 = vmmov %vm10010_vm2 }
 0x132   :  { %v1476_v27 = vsel %vm10018_vm6, %v499_v53, 0.0  ;;  %5796 = vmatmul.mubr.bf16.gmra.mrb[52].mxu0 %v1577_v41  ;;  %v8571_v2 = vshrl.u32 %v8561_v20, 16  ;;  %v1477_v18 = vsel %vm10019_vm10, %v500_v60, 0.0  ;;  %v8575_v54 = vpack.c.bf16 %v500_v60, %v499_v53  ;;  %vm10023_vm6 = vmmov %vm10017_vm11 }
 0x133   :  { %5799 = vmatprep.mubr.bf16.mxu0 %v1579_v26  ;;  %v2585_v4 = vor.u32 %v2584_v3, %v8559_v35  ;;  %v8579_v48 = vpack.c.bf16 %v1477_v18, %v1476_v27  ;;  %v2582_v42 = vor.u32 %v2581_v8, %v8566_v50  ;;  %v8583_v41 = vshll.u32 %v8561_v20, 16  ;;  %vm10024_vm10 = vmmov %vm10010_vm2 }
 0x134   :  { %10020 = vst [vmem:[#allocation39_spill] sm:$0xff] %v8575_v54  ;;  %v2590_v31 = vrot.slane %v8571_v2, 7  ;;  %v10021_v60 = vrot.slane %v8440_v0, 7  ;;  %v1582_v5 = vrot.slane %v8561_v20, 3  ;;  %v10025_v29 = vmov 0  }
 0x135   :  { %v8587_v46 = vshrl.u32 %v8579_v48, 16  ;;  %v1580_v26 = vrot.slane %v8579_v48, 3  ;;  %v2586_v27 = vsel %vm10022_vm15, %v2581_v8, %v2585_v4  ;;  %v8597_v61 = vshll.u32 %v8579_v48, 16  ;;  %vm10026_vm15 = vmmov %vm10010_vm2 }
 0x136   :  { %v2583_v53 = vsel %vm10010_vm2, %v10021_v60, %v2582_v42  ;;  %v2591_v18 = vor.u32 %v2590_v31, %v8583_v41 }
 0x137   :  { %5940 = vmatmul.mubr.bf16.gmra.mrb[16].mxu1 %v2583_v53  ;;  %v1581_v54 = vsel %vm10017_vm11, %v1578_v47, %v1580_v26  ;;  %v1583_v52 = vsel %vm10023_vm6, %v1580_v26, %v1582_v5  ;;  %v2587_v34 = vrot.slane %v8587_v46, 7  ;;  %v1926_v4 = vrot.slane %v8587_v46, 2 }
 0x138   :  { %5943 = vmatprep.mubr.bf16.mxu1 %v2586_v27  ;;  %v1929_v53 = vrot.slane %v8597_v61, 3  ;;  %v1935_v27 = vrot.slane %v8571_v2, 2  ;;  %v1938_v47 = vrot.slane %v8583_v41, 3  ;;  %vm10027_vm11 = vnez %v9670_v11 }
 0x139   :  { %v2588_v42 = vor.u32 %v2587_v34, %v8597_v61  ;;  %v2592_v60 = vsel %vm10010_vm2, %v2587_v34, %v2591_v18  ;;  %v1819_v34 = vrot.slane %v10025_v29, 2  ;;  %v1827_v18 = vrot.slane %v8183_v44, 2 }
 0x13a   :  { %5800 = vmatmul.mubr.bf16.gmra.mrb[56].mxu0 %v1581_v54  ;;  %v8609_v26 = vor.u32 %v1929_v53, %v1926_v4  ;;  %v1585_v54 = vsel %vm10023_vm6, %v1582_v5, %v8170_v22  ;;  %v2595_v5 = vsel %vm10026_vm15, %v2590_v31, %v8196_v1  ;;  %v1836_v53 = vrot.slane %v8252_v6, 2  ;;  %vm5270_vm15 = vmpackc.low %vm8220_vm12, %vm8205_vm8 }
 0x13b   :  { %5803 = vmatprep.mubr.bf16.mxu0 %v1583_v52  ;;  %v2589_v8 = vsel %vm10024_vm10, %v2584_v3, %v2588_v42  ;;  %v8614_v52 = vor.u32 %v1938_v47, %v1935_v27  ;;  %vm1815_vm10 = vsmask.f32 5376  ;;  %v1822_v3 = vrot.slane %v10025_v29, 3  ;;  %vm10032_vm8 = vmpackc.low %vm9958_vm7, %vm9956_vm14 }
 0x13c   :  { %v1830_v42 = vrot.slane %v8192_v56, 3  ;;  %v1839_v27 = vrot.slane %v8264_v57, 3  ;;  %v1848_v56 = vrot.slane %v8261_v43, 3  ;;  %vm10028_vm2 = vnez %v9667_v37 }
 0x13d   :  { %vm10029_vm6 = vmpackc.low %vm10027_vm11, %vm10028_vm2  ;;  %v1863_v37 = vrot.slane %v8307_v7, 2  ;;  %v3170_v7 = vrot.slane %v8583_v41, 1  ;;  %vm3134_vm11 = vsmask.f32 7424  ;;  %vm2210_vm2 = vsmask.f32 4352 }
 0x13e   :  { %v1831_v4 = vor.u32 %v1830_v42, %v1827_v18  ;;  %v1840_v31 = vor.u32 %v1839_v27, %v1836_v53  ;;  %v1854_v42 = vrot.slane %v8313_v49, 2  ;;  %v2259_v53 = vrot.slane %v8597_v61, 4 }
 0x13f   :  { %5944 = vmatmul.mubr.bf16.gmra.mrb[20].mxu1 %v2589_v8  ;;  %v8627_v8 = vor.u32 %v1822_v3, %v1819_v34  ;;  %v2262_v27 = vrot.slane %v8571_v2, 3  ;;  %vm10033_vm12 = vnez %v9782_v21  ;;  %v1899_v21 = vrot.slane %v8440_v0, 2 }
 0x140   :  { %5947 = vmatprep.mubr.bf16.mxu1 %v2592_v60  ;;  %v8623_v60 = vsel %vm1815_vm10, %v8609_v26, %v8614_v52  ;;  %v1841_v18 = vsel %vm1815_vm10, %v1831_v4, %v1840_v31  ;;  %vm3461_vm14 = vsmask.f32 3328 }
 0x141   :  { %v1832_v47 = vsel %vm1815_vm10, %v8627_v8, %v1831_v4  ;;  %v2258_v4 = vrot.slane %v8587_v46, 3 }
 0x142   :  { %5804 = vmatmul.mubr.bf16.gmra.mrb[60].mxu0 %v1585_v54  ;;  %v1845_v54 = vrot.slane %v8247_v51, 2 }
 0x143   :  { %5807 = vmatprep.mubr.bf16.mxu0 %v8170_v22 }
 0x144   :  { %v1849_v34 = vor.u32 %v1848_v56, %v1845_v54  ;;  %v8651_v56 = vrot.slane %v10025_v29, 4  ;;  %v2263_v54 = vrot.slane %v8583_v41, 4 }
 0x146   :  { %v1850_v11 = vsel %vm1815_vm10, %v1840_v31, %v1849_v34 }
 0x147   :  { %5948 = vmatmul.mubr.bf16.gmra.mrb[24].mxu1 %v2595_v5  ;;  %v1857_v5 = vrot.slane %v8331_v63, 3 }
 0x148   :  { %5951 = vmatprep.mubr.bf16.mxu1 %v8196_v1 }
 0x14a   :  { %5808 = vmatmul.mubr.bf16.gmra.mrb[64].mxu0 %v8170_v22  ;;  %v6811_v22 = vld [vmem:[%s9506_s5 + $0x88] sm:$0xff]  }
 0x14b   :  { %5827 = vmatprep.mubr.bf16.mxu0 %v1832_v47  ;;  %v5757_v47 = vpop.f32.mrb[28].mxu0 }
 0x14c   :  { %v444_v31 = vpop.f32.mrb[29].mxu0  ;;  %v10030_v47 = vrot.slane %v8597_v61, 1 }
 0x14d   :  { %v5758_v63 = vpop.f32.mrb[30].mxu0 }
 0x14e   :  { %v447_v31 = vpop.f32.mrb[31].mxu0  ;;  %v8691_v63 = vor.u32 %v3170_v7, %v8571_v2 }
 0x14f   :  { %5952 = vmatmul.mubr.bf16.gmra.mrb[28].mxu1 %v8196_v1  ;;  %v8672_v1 = vor.u32 %v2259_v53, %v2258_v4  ;;  %v6808_v53 = vld [vmem:[%s9506_s5 + $0x158] sm:$0xff]   ;;  %v3505_v31 = vrot.slane %v8587_v46, 4 }
 0x150   :  { %5971 = vmatprep.mubr.msk.bf16.mxu1 %vm10029_vm6, %v8153_v12  ;;  %v1866_v12 = vrot.slane %v8328_v32, 3  ;;  %v3169_v32 = vor.u32 %v10030_v47, %v8587_v46  ;;  %vm10031_vm6 = vmpackc.low %vm9949_vm9, %vm9948_vm1  ;;  %v1890_v47 = vrot.slane %v8449_v58, 2 }
 0x152   :  { %5828 = vmatmul.mubr.bf16.vlgmr.msra.gmra.mrb[36].mxu0 %v1841_v18  ;;  %v1858_v18 = vor.u32 %v1857_v5, %v1854_v42  ;;  %v1867_v49 = vor.u32 %v1866_v12, %v1863_v37  ;;  %v8679_v42 = vor.u32 %v8651_v56, %v1822_v3  ;;  %v2264_v5 = vor.u32 %v2263_v54, %v2262_v27  ;;  %v6815_v27 = vld [vmem:[%s9506_s5 + $0xa0] sm:$0xff]  }
 0x153   :  { %5831 = vmatprep.mubr.bf16.mxu0 %v1850_v11  ;;  %5860 = vmatpush3.bf16.msra.mxu0 %v8537_v62  ;;  %v6806_v62 = vld [vmem:[%s9506_s5 + $0x148] sm:$0xff]   ;;  %v6812_v11 = vld [vmem:[%s9506_s5 + $0x90] sm:$0xff]   ;;  %v8688_v4 = vsel %vm3134_vm11, %v3169_v32, %v3170_v7  ;;  %v1884_v3 = vrot.slane %v8393_v45, 3  ;;  %v1876_v12 = vor.u32 %v1875_v39, %v1872_v33  ;;  %v3509_v33 = vrot.slane %v8571_v2, 4 }
 0x154   :  { %5861 = vmatprep.subr.bf16.mxu0 %v6811_v22  ;;  %v8705_v40 = vsel %vm2210_vm2, %v8672_v1, %v2264_v5  ;;  %v1859_v7 = vsel %vm1815_vm10, %v1849_v34, %v1858_v18  ;;  %v1868_v32 = vsel %vm1815_vm10, %v1858_v18, %v1867_v49  ;;  %v5761_v34 = vpop.f32.mrb[32].mxu0 }
 0x155   :  { %v460_v37 = vpop.f32.mrb[33].mxu0 }
 0x156   :  { %v5762_v54 = vpop.f32.mrb[34].mxu0 }
 0x157   :  { %5972 = vmatmul.mubr.msk.bf16.vlgmr.msra.gmra.mrb[0].mxu1 %vm5270_vm15, %v8239_v28  ;;  %5862 = vmatpush3.bf16.msra.mxu0 %v6811_v22  ;;  %v8709_v28 = vsel %vm2210_vm2, %v2264_v5, %v8679_v42  ;;  %v8721_v22 = vrot.slane %v10025_v29, 5  ;;  %v1893_v5 = vrot.slane %v8474_v19, 3  ;;  %v10040_v54 = vld [vmem:[#allocation8_spill] sm:$0xff] }
 0x158   :  { %6004 = vmatpush3.bf16.msra.mxu1 %v8548_v25  ;;  %5975 = vmatprep.mubr.msk.bf16.mxu1 %vm10031_vm6, %v8233_v10  ;;  %v6807_v10 = vld [vmem:[%s9506_s5 + $0x150] sm:$0xff]   ;;  %v1881_v25 = vrot.slane %v8373_v36, 2  ;;  %vm10041_vm15 = vnez %v10040_v54  ;;  %v10049_v54 = vld [vmem:[#allocation33_spill] sm:$0xff] }
 0x159   :  { %6005 = vmatprep.subr.bf16.mxu1 %v6806_v62  ;;  %5863 = vmatprep.subr.bf16.mxu0 %v6812_v11  ;;  %v8748_v38 = vor.u32 %v8721_v22, %v8651_v56  ;;  %v1902_v56 = vrot.slane %v8471_v15, 3 }
 0x15a   :  { %5832 = vmatmul.mubr.bf16.gmra.mrb[40].mxu0 %v1859_v7  ;;  %v1885_v18 = vor.u32 %v1884_v3, %v1881_v25  ;;  %v6813_v25 = vld [vmem:[%s9506_s5 + $0x168] sm:$0xff]   ;;  %v6818_v3 = vld [vmem:[%s9506_s5 + $0xb0] sm:$0xff]  }
 0x15b   :  { %5835 = vmatprep.mubr.bf16.mxu0 %v1868_v32  ;;  %5864 = vmatpush3.bf16.msra.mxu0 %v6812_v11  ;;  %v463_v11 = vpop.f32.mrb[35].mxu0  ;;  %v1894_v32 = vor.u32 %v1893_v5, %v1890_v47  ;;  %v1903_v34 = vor.u32 %v1902_v56, %v1899_v21  ;;  %v10046_v47 = vld [vmem:[#allocation4_spill] sm:$0xff]  ;;  %v1908_v5 = vrot.slane %v8540_v23, 2  ;;  %v3824_v21 = vrot.slane %v8511_v13, 5 }
 0x15c   :  { %6006 = vmatpush3.bf16.msra.mxu1 %v6806_v62  ;;  %5865 = vmatprep.subr.bf16.mxu0 %v6814_v14  ;;  %v10034_v62 = vld [vmem:[#allocation7_spill] sm:$0xff]  ;;  %v1886_v7 = vsel %vm1815_vm10, %v1876_v12, %v1885_v18  ;;  %v1917_v56 = vrot.slane %v8518_v9, 2 }
 0x15d   :  { %6007 = vmatprep.subr.bf16.mxu1 %v6807_v10  ;;  %vm10035_vm1 = vnez %v10034_v62  ;;  %v10043_v11 = vld [vmem:[#allocation27_spill] sm:$0xff]  ;;  %v10044_v62 = vld [vmem:[#allocation5_spill] sm:$0xff] }
 0x15e   :  { %vm10036_vm9 = vmpackc.low %vm10033_vm12, %vm10035_vm1  ;;  %vm10045_vm12 = vnez %v10044_v62  ;;  %vm10047_vm1 = vnez %v10046_v47  ;;  %v10051_v62 = vld [vmem:[#allocation10_spill] sm:$0xff]  ;;  %v10055_v47 = vld [vmem:[#allocation13_spill] sm:$0xff] }
 0x15f   :  { %5976 = vmatmul.mubr.msk.bf16.gmra.mrb[4].mxu1 %vm10032_vm8, %v8290_v55  ;;  %5866 = vmatpush3.bf16.msra.mxu0 %v6814_v14  ;;  %v1877_v55 = vsel %vm1815_vm10, %v1867_v49, %v1876_v12  ;;  %v3506_v14 = vrot.slane %v8597_v61, 5  ;;  %v3510_v49 = vrot.slane %v8583_v41, 5  ;;  %vm3806_vm8 = vcmask 1042432  }
 0x160   :  { %5979 = vmatprep.mubr.msk.bf16.mxu1 %vm10036_vm9, %v8278_v24  ;;  %6008 = vmatpush3.bf16.msra.mxu1 %v6807_v10  ;;  %v6810_v24 = vld [vmem:[%s9506_s5 + $0x160] sm:$0xff]   ;;  %vm10048_vm9 = vmpackc.low %vm10045_vm12, %vm10047_vm1 }
 0x161   :  { %6009 = vmatprep.subr.bf16.mxu1 %v6808_v53  ;;  %5867 = vmatprep.subr.bf16.mxu0 %v6815_v27  ;;  %v8761_v39 = vor.u32 %v3506_v14, %v3505_v31  ;;  %v3511_v10 = vor.u32 %v3510_v49, %v3509_v33  ;;  %v3826_v31 = vrot.slane %v8502_v59, 5  ;;  %v1895_v14 = vsel %vm1815_vm10, %v1885_v18, %v1894_v32 }
 0x162   :  { %5836 = vmatmul.mubr.bf16.gmra.mrb[44].mxu0 %v1877_v55  ;;  %v6820_v55 = vld [vmem:[%s9506_s5 + $0xb8] sm:$0xff]   ;;  %v3830_v33 = vrot.slane %v8561_v20, 5  ;;  %v1904_v49 = vsel %vm1815_vm10, %v1894_v32, %v1903_v34  ;;  %v1920_v59 = vrot.slane %v8559_v35, 3 }
 0x163   :  { %5839 = vmatprep.mubr.bf16.mxu0 %v1886_v7  ;;  %5868 = vmatpush3.bf16.msra.mxu0 %v6815_v27  ;;  %v8771_v37 = vsel %vm3461_vm14, %v8761_v39, %v3511_v10  ;;  %v8775_v12 = vsel %vm3461_vm14, %v3511_v10, %v8748_v38  ;;  %v10038_v27 = vld [vmem:[#allocation9_spill] sm:$0xff]  ;;  %v1911_v7 = vrot.slane %v8566_v50, 3 }
 0x164   :  { %6010 = vmatpush3.bf16.msra.mxu1 %v6808_v53  ;;  %5869 = vmatprep.subr.bf16.mxu0 %v6817_v16  ;;  %v10037_v53 = vld [vmem:[#allocation29_spill] sm:$0xff]  ;;  %vm10039_vm7 = vnez %v10038_v27  ;;  %v1921_v27 = vor.u32 %v1920_v59, %v1917_v56  ;;  %v10060_v56 = vld [vmem:[#allocation36_spill] sm:$0xff] }
 0x165   :  { %6011 = vmatprep.subr.bf16.mxu1 %v6810_v24  ;;  %vm10042_vm6 = vmpackc.low %vm10039_vm7, %vm10041_vm15  ;;  %v1912_v32 = vor.u32 %v1911_v7, %v1908_v5  ;;  %vm10052_vm7 = vnez %v10051_v62  ;;  %v4162_v7 = vrot.slane %v8571_v2, 5  ;;  %v10070_v62 = vld [vmem:[#allocation39_spill] sm:$0xff] }
 0x166   :  { %vm10053_vm15 = vmpackc.low %vm9988_vm5, %vm10052_vm7  ;;  %v1931_v2 = vsel %vm1815_vm10, %v1921_v27, %v8609_v26  ;;  %v10076_v26 = vld [vmem:[#allocation38_spill] sm:$0xff] }
 0x167   :  { %5980 = vmatmul.mubr.msk.bf16.gmra.mrb[8].mxu1 %vm10042_vm6, %v10037_v53  ;;  %5870 = vmatpush3.bf16.msra.mxu0 %v6817_v16  ;;  %v3828_v16 = vrot.slane %v8579_v48, 5  ;;  %v8808_v48 = vsel %vm3806_vm8, %v3824_v21, %v3826_v31  ;;  %v6819_v53 = vld [vmem:[%s9506_s5 + $0x178] sm:$0xff]   ;;  %vm10056_vm6 = vnez %v10055_v47  ;;  %v1913_v5 = vsel %vm1815_vm10, %v1903_v34, %v1912_v32  ;;  %vm10063_vm5 = vmpackc.low %vm8071_vm3, %vm9912_vm13  ;;  %v10073_v47 = vld [vmem:[#allocation2_spill] sm:$0xff] }
 0x168   :  { %5983 = vmatprep.mubr.msk.bf16.mxu1 %vm10048_vm9, %v10043_v11  ;;  %6012 = vmatpush3.bf16.msra.mxu1 %v6810_v24  ;;  %v6816_v24 = vld [vmem:[%s9506_s5 + $0x170] sm:$0xff]   ;;  %v4163_v34 = vrot.slane %v8583_v41, 6  ;;  %vm6881_vm3 = vmmov 1   ;;  %v3140_v11 = vrot.slane %v8261_v43, 1 }
 0x169   :  { %6013 = vmatprep.subr.bf16.mxu1 %v6813_v25  ;;  %5871 = vmatprep.subr.bf16.mxu0 %v6818_v3  ;;  %v8811_v18 = vsel %vm3806_vm8, %v3826_v31, %v3828_v16  ;;  %v8816_v10 = vsel %vm3806_vm8, %v3828_v16, %v3830_v33  ;;  %v8837_v31 = vld [vmem:[%s9506_s5 + $0x180] sm:$0xff]   ;;  %v1922_v16 = vsel %vm1815_vm10, %v1912_v32, %v1921_v27  ;;  %v10064_v32 = vld [vmem:[#allocation35_spill] sm:$0xff]  ;;  %vm5303_vm13 = vmpackc.low %vm6881_vm3, %vm8527_vm0 }
 0x16a   :  { %5840 = vmatmul.mubr.bf16.gmra.mrb[48].mxu0 %v1895_v14  ;;  %v4159_v14 = vrot.slane %v8597_v61, 6  ;;  %v1949_v27 = vsel %vm1815_vm10, %v8614_v52, %v8627_v8 }
 0x16b   :  { %5843 = vmatprep.mubr.bf16.mxu0 %v1904_v49  ;;  %5872 = vmatpush3.bf16.msra.mxu0 %v6818_v3  ;;  %v10054_v3 = vld [vmem:[#allocation31_spill] sm:$0xff]  ;;  %v3137_v49 = vrot.slane %v8264_v57, 1 }
 0x16c   :  { %6014 = vmatpush3.bf16.msra.mxu1 %v6813_v25  ;;  %5873 = vmatprep.subr.bf16.mxu0 %v6820_v55  ;;  %v10057_v25 = vld [vmem:[#allocation12_spill] sm:$0xff] }
 0x16d   :  { %6015 = vmatprep.subr.bf16.mxu1 %v6816_v24  ;;  %vm10058_vm12 = vnez %v10057_v25  ;;  %v10077_v25 = vld [vmem:[#allocation19_spill] sm:$0xff] }
 0x16e   :  { %vm10059_vm1 = vmpackc.low %vm10056_vm6, %vm10058_vm12  ;;  %vm10074_vm6 = vnez %v10073_v47  ;;  %v10080_v47 = vld [vmem:[#allocation26_spill] sm:$0xff] }
 0x16f   :  { %5984 = vmatmul.mubr.msk.bf16.gmra.mrb[12].mxu1 %vm10053_vm15, %v10049_v54  ;;  %5874 = vmatpush3.bf16.msra.mxu0 %v6820_v55  ;;  %v4158_v55 = vrot.slane %v8587_v46, 5  ;;  %v10066_v46 = vld [vmem:[#allocation15_spill] sm:$0xff]  ;;  %v8859_v54 = vor.u32 %v4163_v34, %v4162_v7  ;;  %vm4114_vm15 = vsmask.f32 2304  ;;  %v2218_v7 = vrot.slane %v8252_v6, 3 }
 0x170   :  { %5987 = vmatprep.mubr.msk.bf16.mxu1 %vm10059_vm1, %v10054_v3  ;;  %6016 = vmatpush3.bf16.msra.mxu1 %v6816_v24  ;;  %vm10067_vm9 = vnez %v10066_v46  ;;  %v10071_v3 = vld [vmem:[#allocation18_spill] sm:$0xff]  ;;  %v2219_v34 = vrot.slane %v8264_v57, 4  ;;  %v2223_v24 = vrot.slane %v8261_v43, 4 }
 0x171   :  { %6017 = vmatprep.subr.bf16.mxu1 %v6819_v53  ;;  %v8851_v59 = vor.u32 %v4159_v14, %v4158_v55  ;;  %vm10068_vm7 = vmpackc.low %vm8098_vm4, %vm10067_vm9  ;;  %vm10072_vm4 = vnez %v10071_v3  ;;  %v10078_v55 = vmov 0.0|0.0   ;;  %v3135_v14 = vrot.slane %v10077_v25, 1 }
 0x172   :  { %5844 = vmatmul.mubr.bf16.gmra.mrb[52].mxu0 %v1913_v5  ;;  %vm10075_vm12 = vmpackc.low %vm10072_vm4, %vm10074_vm6  ;;  %v2215_v5 = vrot.slane %v10077_v25, 4  ;;  %v3832_v13 = vrot.slane %v10078_v55, 5 }
 0x173   :  { %5847 = vmatprep.mubr.bf16.mxu0 %v1922_v16  ;;  %v8866_v41 = vsel %vm4114_vm15, %v8851_v59, %v8859_v54 }
 0x174   :  { %6018 = vmatpush3.bf16.msra.mxu1 %v6819_v53  ;;  %v2220_v53 = vor.u32 %v2219_v34, %v2218_v7  ;;  %v10082_v7 = vld [vmem:[#allocation25_spill] sm:$0xff] }
 0x175   :  { %6051 = vmatprep.subr.bf16.mxu1 %v8837_v31  ;;  %v2231_v34 = vrot.slane %v10082_v7, 4 }
 0x177   :  { %5988 = vmatmul.mubr.msk.bf16.gmra.mrb[16].mxu1 %vm10063_vm5, %v10060_v56  ;;  %v2222_v56 = vrot.slane %v8247_v51, 3 }
 0x178   :  { %5991 = vmatprep.mubr.msk.bf16.mxu1 %vm10068_vm7, %v10064_v32  ;;  %v3136_v32 = vor.u32 %v3135_v14, %v8183_v44 }
 0x179   :  { %v2224_v46 = vor.u32 %v2223_v24, %v2222_v56  ;;  %v6822_v24 = vld [vmem:[%s9506_s5 + $0x188] sm:$0xff]  }
 0x17a   :  { %5848 = vmatmul.mubr.bf16.gmra.mrb[56].mxu0 %v1931_v2  ;;  %v3138_v2 = vsel %vm3134_vm11, %v3136_v32, %v3137_v49 }
 0x17b   :  { %5851 = vmatprep.mubr.bf16.mxu0 %v8623_v60  ;;  %v2214_v60 = vrot.slane %v8183_v44, 3 }
 0x17d   :  { %v2216_v16 = vor.u32 %v2215_v5, %v2214_v60  ;;  %v2225_v60 = vsel %vm2210_vm2, %v2220_v53, %v2224_v46  ;;  %v10081_v5 = vld [vmem:[#allocation23_spill] sm:$0xff] }
 0x17e   :  { %v2230_v14 = vrot.slane %v10081_v5, 3 }
 0x17f   :  { %5992 = vmatmul.mubr.msk.bf16.gmra.mrb[20].mxu1 %vm10075_vm12, %v10070_v62  ;;  %v2217_v52 = vsel %vm2210_vm2, %v8679_v42, %v2216_v16  ;;  %v10079_v62 = vld [vmem:[#allocation24_spill] sm:$0xff] }
 0x180   :  { %5995 = vmatprep.mubr.msk.bf16.mxu1 %vm5303_vm13, %v10076_v26  ;;  %v2226_v3 = vrot.slane %v10079_v62, 3  ;;  %v2227_v26 = vrot.slane %v10080_v47, 4 }
 0x182   :  { %5852 = vmatmul.mubr.bf16.gmra.mrb[60].mxu0 %v1949_v27  ;;  %v3139_v27 = vor.u32 %v3137_v49, %v8252_v6  ;;  %v2228_v56 = vor.u32 %v2227_v26, %v2226_v3  ;;  %v2232_v49 = vor.u32 %v2231_v34, %v2230_v14  ;;  %v2234_v3 = vrot.slane %v8382_v17, 3 }
 0x183   :  { %5855 = vmatprep.mubr.bf16.mxu0 %v8627_v8  ;;  %v2235_v26 = vrot.slane %v8396_v30, 4  ;;  %v3149_v14 = vrot.slane %v8396_v30, 1 }
 0x184   :  { %v3141_v32 = vsel %vm3134_vm11, %v3139_v27, %v3140_v11  ;;  %v2233_v27 = vsel %vm2210_vm2, %v2228_v56, %v2232_v49 }
 0x187   :  { %5996 = vmatmul.mubr.bf16.gmra.mrb[24].mxu1 %v10078_v55 }
 0x188   :  { %5999 = vmatprep.mubr.bf16.mxu1 %v10078_v55 }
 0x18a   :  { %5856 = vmatmul.mubr.bf16.gmra.mrb[64].mxu0 %v8627_v8  ;;  %v2221_v8 = vsel %vm2210_vm2, %v2216_v16, %v2220_v53  ;;  %v3142_v16 = vor.u32 %v3140_v11, %v8247_v51  ;;  %v6823_v11 = vld [vmem:[%s9506_s5 + $0x190] sm:$0xff]  }
 0x18b   :  { %5875 = vmatprep.mubr.bf16.mxu0 %v2217_v52  ;;  %v3143_v52 = vrot.slane %v10080_v47, 1 }
 0x18d   :  { %v3144_v53 = vsel %vm3134_vm11, %v3142_v16, %v3143_v52  ;;  %v2236_v16 = vor.u32 %v2235_v26, %v2234_v3  ;;  %v2243_v3 = vrot.slane %v8474_v19, 4  ;;  %v6825_v26 = vld [vmem:[%s9506_s5 + $0x1a0] sm:$0xff]  }
 0x18f   :  { %6000 = vmatmul.mubr.bf16.gmra.mrb[28].mxu1 %v10078_v55 }
 0x190   :  { %6019 = vmatprep.mubr.bf16.mxu1 %v3138_v2  ;;  %v2229_v2 = vsel %vm2210_vm2, %v2224_v46, %v2228_v56  ;;  %v2239_v46 = vrot.slane %v8393_v45, 4 }
 0x192   :  { %5876 = vmatmul.mubr.bf16.vlgmr.msra.gmra.mrb[36].mxu0 %v2221_v8  ;;  %v3146_v8 = vrot.slane %v10082_v7, 1 }
 0x193   :  { %5879 = vmatprep.mubr.bf16.mxu0 %v2225_v60  ;;  %v3145_v60 = vor.u32 %v3143_v52, %v10079_v62 }
 0x194   :  { %v3148_v34 = vor.u32 %v3146_v8, %v10081_v5 }
 0x195   :  { %v3147_v56 = vsel %vm3134_vm11, %v3145_v60, %v3146_v8  ;;  %v3151_v60 = vor.u32 %v3149_v14, %v8382_v17 }
 0x196   :  { %v3150_v52 = vsel %vm3134_vm11, %v3148_v34, %v3149_v14 }
 0x197   :  { %6020 = vmatmul.mubr.bf16.vlgmr.msra.gmra.mrb[0].mxu1 %v3141_v32  ;;  %v6824_v32 = vld [vmem:[%s9506_s5 + $0x198] sm:$0xff]  }
 0x198   :  { %6052 = vmatpush3.bf16.msra.mxu1 %v8837_v31  ;;  %6023 = vmatprep.mubr.bf16.mxu1 %v3144_v53  ;;  %v2238_v31 = vrot.slane %v8373_v36, 3 }
 0x199   :  { %6053 = vmatprep.subr.bf16.mxu1 %v6822_v24 }
 0x19a   :  { %5880 = vmatmul.mubr.bf16.gmra.mrb[40].mxu0 %v2229_v2  ;;  %v2240_v53 = vor.u32 %v2239_v46, %v2238_v31  ;;  %v2237_v2 = vsel %vm2210_vm2, %v2232_v49, %v2236_v16  ;;  %v2247_v49 = vrot.slane %v8471_v15, 4  ;;  %v3155_v31 = vrot.slane %v8474_v19, 1 }
 0x19b   :  { %5883 = vmatprep.mubr.bf16.mxu0 %v2233_v27  ;;  %v2242_v27 = vrot.slane %v8449_v58, 3 }
 0x19c   :  { %6054 = vmatpush3.bf16.msra.mxu1 %v6822_v24  ;;  %v3152_v24 = vrot.slane %v8393_v45, 1  ;;  %v2241_v8 = vsel %vm2210_vm2, %v2236_v16, %v2240_v53 }
 0x19d   :  { %6055 = vmatprep.subr.bf16.mxu1 %v6823_v11  ;;  %v2244_v34 = vor.u32 %v2243_v3, %v2242_v27  ;;  %v2251_v27 = vrot.slane %v8566_v50, 4  ;;  %v6827_v3 = vld [vmem:[%s9506_s5 + $0x1b0] sm:$0xff]  }
 0x19e   :  { %v3154_v46 = vor.u32 %v3152_v24, %v8373_v36  ;;  %v3153_v16 = vsel %vm3134_vm11, %v3151_v60, %v3152_v24  ;;  %v3157_v60 = vor.u32 %v3155_v31, %v8449_v58 }
 0x19f   :  { %6024 = vmatmul.mubr.bf16.gmra.mrb[4].mxu1 %v3147_v56  ;;  %v6826_v56 = vld [vmem:[%s9506_s5 + $0x1a8] sm:$0xff]  }
 0x1a0   :  { %6027 = vmatprep.mubr.bf16.mxu1 %v3150_v52  ;;  %6056 = vmatpush3.bf16.msra.mxu1 %v6823_v11  ;;  %v2246_v11 = vrot.slane %v8440_v0, 3  ;;  %v3156_v14 = vsel %vm3134_vm11, %v3154_v46, %v3155_v31 }
 0x1a1   :  { %6057 = vmatprep.subr.bf16.mxu1 %v6824_v32 }
 0x1a2   :  { %5884 = vmatmul.mubr.bf16.gmra.mrb[44].mxu0 %v2237_v2  ;;  %v2248_v52 = vor.u32 %v2247_v49, %v2246_v11  ;;  %v2245_v2 = vsel %vm2210_vm2, %v2240_v53, %v2244_v34  ;;  %v2255_v53 = vrot.slane %v8559_v35, 4  ;;  %v3161_v11 = vrot.slane %v8566_v50, 1 }
 0x1a3   :  { %5887 = vmatprep.mubr.bf16.mxu0 %v2241_v8  ;;  %v2250_v8 = vrot.slane %v8540_v23, 3 }
 0x1a4   :  { %6058 = vmatpush3.bf16.msra.mxu1 %v6824_v32  ;;  %v3158_v32 = vrot.slane %v8471_v15, 1  ;;  %v2249_v24 = vsel %vm2210_vm2, %v2244_v34, %v2248_v52 }
 0x1a5   :  { %6059 = vmatprep.subr.bf16.mxu1 %v6825_v26  ;;  %v2252_v46 = vor.u32 %v2251_v27, %v2250_v8  ;;  %v6829_v8 = vld [vmem:[%s9506_s5 + $0x1c0] sm:$0xff]  }
 0x1a6   :  { %v3160_v49 = vor.u32 %v3158_v32, %v8440_v0  ;;  %v3159_v34 = vsel %vm3134_vm11, %v3157_v60, %v3158_v32  ;;  %v3163_v32 = vor.u32 %v3161_v11, %v8540_v23 }
 0x1a7   :  { %6028 = vmatmul.mubr.bf16.gmra.mrb[8].mxu1 %v3153_v16  ;;  %v6828_v16 = vld [vmem:[%s9506_s5 + $0x1b8] sm:$0xff]  }
 0x1a8   :  { %6031 = vmatprep.mubr.bf16.mxu1 %v3156_v14  ;;  %6060 = vmatpush3.bf16.msra.mxu1 %v6825_v26  ;;  %v2254_v26 = vrot.slane %v8518_v9, 3  ;;  %v3162_v31 = vsel %vm3134_vm11, %v3160_v49, %v3161_v11  ;;  %v3463_v49 = vrot.slane %v10077_v25, 5 }
 0x1a9   :  { %6061 = vmatprep.subr.bf16.mxu1 %v6826_v56 }
 0x1aa   :  { %5888 = vmatmul.mubr.bf16.gmra.mrb[48].mxu0 %v2245_v2  ;;  %v2256_v14 = vor.u32 %v2255_v53, %v2254_v26  ;;  %v2253_v2 = vsel %vm2210_vm2, %v2248_v52, %v2252_v46  ;;  %v10083_v52 = vrot.slane %v8597_v61, 1  ;;  %v3173_v53 = vrot.slane %v10025_v29, 1 }
 0x1ab   :  { %5891 = vmatprep.mubr.bf16.mxu0 %v2249_v24  ;;  %v3465_v61 = vrot.slane %v8252_v6, 4 }
 0x1ac   :  { %6062 = vmatpush3.bf16.msra.mxu1 %v6826_v56  ;;  %v3164_v56 = vrot.slane %v8559_v35, 1  ;;  %v2257_v27 = vsel %vm2210_vm2, %v2252_v46, %v2256_v14  ;;  %v2261_v26 = vsel %vm2210_vm2, %v2256_v14, %v8672_v1  ;;  %v3174_v11 = vsel %vm3134_vm11, %v8691_v63, %v3173_v53 }
 0x1ad   :  { %6063 = vmatprep.subr.bf16.mxu1 %v6827_v3  ;;  %v3466_v1 = vrot.slane %v8264_v57, 5  ;;  %v3469_v63 = vrot.slane %v8247_v51, 4  ;;  %v3474_v14 = vrot.slane %v10080_v47, 5 }
 0x1ae   :  { %v3166_v24 = vor.u32 %v3164_v56, %v8518_v9 }
 0x1af   :  { %6032 = vmatmul.mubr.bf16.gmra.mrb[12].mxu1 %v3159_v34  ;;  %v3473_v34 = vrot.slane %v10079_v62, 4 }
 0x1b0   :  { %6035 = vmatprep.mubr.bf16.mxu1 %v3162_v31  ;;  %6064 = vmatpush3.bf16.msra.mxu1 %v6827_v3  ;;  %v3165_v3 = vsel %vm3134_vm11, %v3163_v32, %v3164_v56  ;;  %v3168_v60 = vsel %vm3134_vm11, %v3166_v24, %v10083_v52  ;;  %v3478_v32 = vrot.slane %v10082_v7, 5  ;;  %v3482_v52 = vrot.slane %v8396_v30, 5 }
 0x1b1   :  { %6065 = vmatprep.subr.bf16.mxu1 %v6828_v16 }
 0x1b2   :  { %5892 = vmatmul.mubr.bf16.gmra.mrb[52].mxu0 %v2253_v2  ;;  %v3475_v2 = vor.u32 %v3474_v14, %v3473_v34  ;;  %v3493_v14 = vrot.slane %v8440_v0, 4 }
 0x1b3   :  { %5895 = vmatprep.mubr.bf16.mxu0 %v2257_v27  ;;  %v3477_v27 = vrot.slane %v10081_v5, 4 }
 0x1b4   :  { %6066 = vmatpush3.bf16.msra.mxu1 %v6828_v16 }
 0x1b5   :  { %6099 = vmatprep.subr.bf16.mxu1 %v6829_v8 }
 0x1b7   :  { %6036 = vmatmul.mubr.bf16.gmra.mrb[16].mxu1 %v3165_v3  ;;  %v3481_v3 = vrot.slane %v8382_v17, 4 }
 0x1b8   :  { %6039 = vmatprep.mubr.bf16.mxu1 %v3168_v60  ;;  %v6831_v60 = vld [vmem:[%s9506_s5 + $0x1d0] sm:$0xff]  }
 0x1ba   :  { %5896 = vmatmul.mubr.bf16.gmra.mrb[56].mxu0 %v2261_v26  ;;  %v3479_v26 = vor.u32 %v3478_v32, %v3477_v27  ;;  %v6835_v27 = vld [vmem:[%s9506_s5 + $0x1f0] sm:$0xff]  }
 0x1bb   :  { %5899 = vmatprep.mubr.bf16.mxu0 %v8705_v40  ;;  %v3462_v40 = vrot.slane %v8183_v44, 4 }
 0x1bd   :  { %v3464_v46 = vor.u32 %v3463_v49, %v3462_v40  ;;  %v3489_v49 = vrot.slane %v8449_v58, 4 }
 0x1bf   :  { %6040 = vmatmul.mubr.bf16.gmra.mrb[20].mxu1 %v8688_v4  ;;  %v3467_v4 = vor.u32 %v3466_v1, %v3465_v61  ;;  %v3480_v61 = vsel %vm3461_vm14, %v3475_v2, %v3479_v26  ;;  %v3485_v1 = vrot.slane %v8373_v36, 4 }
 0x1c0   :  { %6043 = vmatprep.mubr.bf16.mxu1 %v3174_v11  ;;  %v6832_v11 = vld [vmem:[%s9506_s5 + $0x1d8] sm:$0xff]  }
 0x1c1   :  { %v3468_v16 = vsel %vm3461_vm14, %v3464_v46, %v3467_v4  ;;  %v6833_v46 = vld [vmem:[%s9506_s5 + $0x1e0] sm:$0xff]  }
 0x1c2   :  { %5900 = vmatmul.mubr.bf16.gmra.mrb[60].mxu0 %v8709_v28  ;;  %v3470_v28 = vrot.slane %v8261_v43, 5 }
 0x1c3   :  { %5903 = vmatprep.mubr.bf16.mxu0 %v8679_v42 }
 0x1c4   :  { %v3471_v31 = vor.u32 %v3470_v28, %v3469_v63 }
 0x1c6   :  { %v3472_v56 = vsel %vm3461_vm14, %v3467_v4, %v3471_v31  ;;  %v3476_v24 = vsel %vm3461_vm14, %v3471_v31, %v3475_v2  ;;  %v3490_v4 = vrot.slane %v8474_v19, 5  ;;  %v3494_v31 = vrot.slane %v8471_v15, 5 }
 0x1c7   :  { %6044 = vmatmul.mubr.bf16.gmra.mrb[24].mxu1 %v3173_v53 }
 0x1c8   :  { %6047 = vmatprep.mubr.bf16.mxu1 %v3173_v53  ;;  %v3491_v28 = vor.u32 %v3490_v4, %v3489_v49  ;;  %v3495_v32 = vor.u32 %v3494_v31, %v3493_v14  ;;  %v10085_v4 = vld [vmem:[#allocation3_spill] sm:$0xff]  ;;  %v10088_v31 = vld [vmem:[#allocation22_spill] sm:$0xff] }
 0x1ca   :  { %5904 = vmatmul.mubr.bf16.gmra.mrb[64].mxu0 %v8679_v42  ;;  %v6830_v42 = vld [vmem:[%s9506_s5 + $0x1c8] sm:$0xff]  }
 0x1cf   :  { %6048 = vmatmul.mubr.bf16.gmra.mrb[28].mxu1 %v3173_v53  ;;  %v3483_v53 = vor.u32 %v3482_v52, %v3481_v3  ;;  %v6836_v3 = vld [vmem:[%s9506_s5 + $0x1f8] sm:$0xff]   ;;  %v3496_v52 = vsel %vm3461_vm14, %v3491_v28, %v3495_v32 }
 0x1d0   :  { %6067 = vmatprep.mubr.bf16.mxu1 %v3468_v16  ;;  %v6834_v16 = vld [vmem:[%s9506_s5 + $0x1e8] sm:$0xff]  }
 0x1d1   :  { %v3484_v40 = vsel %vm3461_vm14, %v3479_v26, %v3483_v53  ;;  %v3502_v26 = vrot.slane %v8559_v35, 5 }
 0x1d7   :  { %6068 = vmatmul.mubr.bf16.vlgmr.msra.gmra.mrb[0].mxu1 %v3472_v56  ;;  %v3498_v56 = vrot.slane %v8566_v50, 5 }
 0x1d8   :  { %6100 = vmatpush3.bf16.msra.mxu1 %v6829_v8  ;;  %6071 = vmatprep.mubr.bf16.mxu1 %v3476_v24  ;;  %v3486_v8 = vrot.slane %v8393_v45, 5 }
 0x1d9   :  { %6101 = vmatprep.subr.bf16.mxu1 %v6830_v42 }
 0x1da   :  { %v3487_v63 = vor.u32 %v3486_v8, %v3485_v1 }
 0x1dc   :  { %6102 = vmatpush3.bf16.msra.mxu1 %v6830_v42  ;;  %v3488_v34 = vsel %vm3461_vm14, %v3483_v53, %v3487_v63  ;;  %v3492_v2 = vsel %vm3461_vm14, %v3487_v63, %v3491_v28  ;;  %v3497_v42 = vrot.slane %v8540_v23, 4  ;;  %v10086_v28 = vld [vmem:[#allocation20_spill] sm:$0xff] }
 0x1dd   :  { %6103 = vmatprep.subr.bf16.mxu1 %v6831_v60 }
 0x1de   :  { %v3499_v24 = vor.u32 %v3498_v56, %v3497_v42  ;;  %v10089_v42 = vld [vmem:[#allocation30_spill] sm:$0xff] }
 0x1df   :  { %6072 = vmatmul.mubr.bf16.gmra.mrb[4].mxu1 %v3480_v61  ;;  %v3816_v56 = vrot.slane %v10089_v42, 5  ;;  %v4122_v42 = vrot.slane %v8247_v51, 5 }
 0x1e0   :  { %6075 = vmatprep.mubr.bf16.mxu1 %v3484_v40  ;;  %6104 = vmatpush3.bf16.msra.mxu1 %v6831_v60  ;;  %v3501_v60 = vrot.slane %v8518_v9, 4  ;;  %v3500_v53 = vsel %vm3461_vm14, %v3495_v32, %v3499_v24  ;;  %v10084_v40 = vld [vmem:[#allocation21_spill] sm:$0xff] }
 0x1e1   :  { %6105 = vmatprep.subr.bf16.mxu1 %v6832_v11  ;;  %v3808_v49 = vrot.slane %v10084_v40, 5  ;;  %v6847_v40 = vld [vmem:[%s9509_s7 + $0x10] sm:$0xff]  }
 0x1e2   :  { %v3503_v61 = vor.u32 %v3502_v26, %v3501_v60  ;;  %v10090_v60 = vld [vmem:[#allocation28_spill] sm:$0xff] }
 0x1e3   :  { %v3818_v26 = vrot.slane %v10090_v60, 5  ;;  %v4143_v60 = vrot.slane %v8474_v19, 6  ;;  %v4150_v19 = vrot.slane %v8540_v23, 5 }
 0x1e4   :  { %6106 = vmatpush3.bf16.msra.mxu1 %v6832_v11  ;;  %v6837_v11 = vld [vmem:[%s9506_s5 + $0x200] sm:$0xff]   ;;  %v3504_v1 = vsel %vm3461_vm14, %v3499_v24, %v3503_v61  ;;  %v3508_v8 = vsel %vm3461_vm14, %v3503_v61, %v8761_v39  ;;  %v3810_v39 = vrot.slane %v10086_v28, 5  ;;  %v6848_v28 = vld [vmem:[%s9509_s7 + $0x18] sm:$0xff]  }
 0x1e5   :  { %6107 = vmatprep.subr.bf16.mxu1 %v6833_v46 }
 0x1e7   :  { %6076 = vmatmul.mubr.bf16.gmra.mrb[8].mxu1 %v3488_v34 }
 0x1e8   :  { %6079 = vmatprep.mubr.bf16.mxu1 %v3492_v2  ;;  %6108 = vmatpush3.bf16.msra.mxu1 %v6833_v46  ;;  %v3807_v46 = vrot.slane %v10085_v4, 5  ;;  %v3814_v2 = vrot.slane %v10088_v31, 5  ;;  %v6843_v4 = vld [vmem:[%s9506_s5 + $0x230] sm:$0xff]   ;;  %v4119_v31 = vrot.slane %v8264_v57, 6 }
 0x1e9   :  { %6109 = vmatprep.subr.bf16.mxu1 %v6834_v16 }
 0x1ea   :  { %v3809_v63 = vsel %vm3806_vm8, %v3807_v46, %v3808_v49  ;;  %v3817_v24 = vsel %vm3806_vm8, %v3814_v2, %v3816_v56  ;;  %v10092_v46 = vld [vmem:[#allocation32_spill] sm:$0xff] }
 0x1ec   :  { %6110 = vmatpush3.bf16.msra.mxu1 %v6834_v16  ;;  %v10087_v16 = vld [vmem:[#allocation6_spill] sm:$0xff] }
 0x1ed   :  { %6111 = vmatprep.subr.bf16.mxu1 %v6835_v27  ;;  %v3812_v34 = vrot.slane %v10087_v16, 5 }
 0x1ef   :  { %6080 = vmatmul.mubr.bf16.gmra.mrb[12].mxu1 %v3496_v52  ;;  %v3813_v14 = vsel %vm3806_vm8, %v3810_v39, %v3812_v34  ;;  %v3815_v32 = vsel %vm3806_vm8, %v3812_v34, %v3814_v2  ;;  %v6845_v52 = vld [vmem:[%s9509_s7] sm:$0xff]  }
 0x1f0   :  { %6083 = vmatprep.mubr.bf16.mxu1 %v3500_v53  ;;  %6112 = vmatpush3.bf16.msra.mxu1 %v6835_v27  ;;  %v6840_v27 = vld [vmem:[%s9506_s5 + $0x218] sm:$0xff]   ;;  %v6846_v53 = vld [vmem:[%s9509_s7 + $0x8] sm:$0xff]   ;;  %v6849_v34 = vld [vmem:[%s9509_s7 + $0x20] sm:$0xff]  }
 0x1f1   :  { %6113 = vmatprep.subr.bf16.mxu1 %v6836_v3  ;;  %6195 = vmatprep.subr.bf16.mxu0 %v6845_v52 }
 0x1f2   :  { %6196 = vmatpush3.bf16.msra.mxu0 %v6845_v52  ;;  %v4139_v52 = vrot.slane %v8393_v45, 6  ;;  %v4147_v45 = vrot.slane %v8471_v15, 6  ;;  %v4154_v15 = vrot.slane %v8518_v9, 5 }
 0x1f3   :  { %6197 = vmatprep.subr.bf16.mxu0 %v6846_v53 }
 0x1f4   :  { %6114 = vmatpush3.bf16.msra.mxu1 %v6836_v3  ;;  %v6841_v3 = vld [vmem:[%s9506_s5 + $0x220] sm:$0xff]  }
 0x1f5   :  { %6147 = vmatprep.subr.bf16.mxu1 %v6837_v11 }
 0x1f6   :  { %6198 = vmatpush3.bf16.msra.mxu0 %v6846_v53 }
 0x1f7   :  { %6084 = vmatmul.mubr.bf16.gmra.mrb[16].mxu1 %v3504_v1  ;;  %v6842_v1 = vld [vmem:[%s9506_s5 + $0x228] sm:$0xff]   ;;  %6199 = vmatprep.subr.bf16.mxu0 %v6847_v40 }
 0x1f8   :  { %6087 = vmatprep.mubr.bf16.mxu1 %v3508_v8  ;;  %v3819_v8 = vsel %vm3806_vm8, %v3816_v56, %v3818_v26 }
 0x1fa   :  { %6200 = vmatpush3.bf16.msra.mxu0 %v6847_v40 }
 0x1fb   :  { %6201 = vmatprep.subr.bf16.mxu0 %v6848_v28 }
 0x1fe   :  { %6202 = vmatpush3.bf16.msra.mxu0 %v6848_v28 }
 0x1ff   :  { %6088 = vmatmul.mubr.bf16.gmra.mrb[20].mxu1 %v8771_v37  ;;  %v6838_v37 = vld [vmem:[%s9506_s5 + $0x208] sm:$0xff]   ;;  %6203 = vmatprep.subr.bf16.mxu0 %v6849_v34 }
 0x200   :  { %6091 = vmatprep.mubr.bf16.mxu1 %v8775_v12  ;;  %v3811_v12 = vsel %vm3806_vm8, %v3808_v49, %v3810_v39  ;;  %v6844_v39 = vld [vmem:[%s9506_s5 + $0x238] sm:$0xff]  }
 0x202   :  { %6204 = vmatpush3.bf16.msra.mxu0 %v6849_v34 }
 0x207   :  { %6092 = vmatmul.mubr.bf16.gmra.mrb[24].mxu1 %v8748_v38 }
 0x208   :  { %6095 = vmatprep.mubr.bf16.mxu1 %v8748_v38 }
 0x20f   :  { %6096 = vmatmul.mubr.bf16.gmra.mrb[28].mxu1 %v8748_v38  ;;  %v6839_v38 = vld [vmem:[%s9506_s5 + $0x210] sm:$0xff]  }
 0x210   :  { %6115 = vmatprep.mubr.bf16.mxu1 %v3809_v63  ;;  %v3822_v63 = vrot.slane %v10092_v46, 5 }
 0x217   :  { %6116 = vmatmul.mubr.bf16.vlgmr.msra.gmra.mrb[0].mxu1 %v3811_v12  ;;  %v6850_v12 = vld [vmem:[%s9509_s7 + $0x28] sm:$0xff]  }
 0x218   :  { %6148 = vmatpush3.bf16.msra.mxu1 %v6837_v11  ;;  %6119 = vmatprep.mubr.bf16.mxu1 %v3813_v14  ;;  %v10091_v11 = vld [vmem:[#allocation34_spill] sm:$0xff]  ;;  %v6851_v14 = vld [vmem:[%s9509_s7 + $0x30] sm:$0xff]  }
 0x219   :  { %6149 = vmatprep.subr.bf16.mxu1 %v6838_v37  ;;  %v3820_v61 = vrot.slane %v10091_v11, 5  ;;  %6205 = vmatprep.subr.bf16.mxu0 %v6850_v12 }
 0x21a   :  { %6206 = vmatpush3.bf16.msra.mxu0 %v6850_v12 }
 0x21b   :  { %v3821_v49 = vsel %vm3806_vm8, %v3818_v26, %v3820_v61  ;;  %v3823_v16 = vsel %vm3806_vm8, %v3820_v61, %v3822_v63  ;;  %6207 = vmatprep.subr.bf16.mxu0 %v6851_v14 }
 0x21c   :  { %6150 = vmatpush3.bf16.msra.mxu1 %v6838_v37  ;;  %v3825_v37 = vsel %vm3806_vm8, %v3822_v63, %v3824_v21  ;;  %v3833_v21 = vsel %vm3806_vm8, %v3830_v33, %v3832_v13  ;;  %v4126_v33 = vrot.slane %v10079_v62, 5  ;;  %v4155_v63 = vrot.slane %v8559_v35, 6 }
 0x21d   :  { %6151 = vmatprep.subr.bf16.mxu1 %v6839_v38  ;;  %v4167_v35 = vrot.slane %v10025_v29, 6 }
 0x21e   :  { %6208 = vmatpush3.bf16.msra.mxu0 %v6851_v14 }
 0x21f   :  { %6120 = vmatmul.mubr.bf16.gmra.mrb[4].mxu1 %v3815_v32  ;;  %v4135_v32 = vrot.slane %v8396_v30, 6 }
 0x220   :  { %6123 = vmatprep.mubr.bf16.mxu1 %v3817_v24  ;;  %6152 = vmatpush3.bf16.msra.mxu1 %v6839_v38  ;;  %v4118_v38 = vrot.slane %v8252_v6, 5  ;;  %v4127_v6 = vrot.slane %v10080_v47, 6 }
 0x221   :  { %6153 = vmatprep.subr.bf16.mxu1 %v6840_v27 }
 0x222   :  { %v4120_v2 = vor.u32 %v4119_v31, %v4118_v38  ;;  %v4128_v56 = vor.u32 %v4127_v6, %v4126_v33 }
 0x224   :  { %6154 = vmatpush3.bf16.msra.mxu1 %v6840_v27  ;;  %v4131_v27 = vrot.slane %v10082_v7, 6  ;;  %v4142_v7 = vrot.slane %v8449_v58, 5 }
 0x225   :  { %6155 = vmatprep.subr.bf16.mxu1 %v6841_v3 }
 0x226   :  { %v4144_v26 = vor.u32 %v4143_v60, %v4142_v7 }
 0x227   :  { %6124 = vmatmul.mubr.bf16.gmra.mrb[8].mxu1 %v3819_v8 }
 0x228   :  { %6127 = vmatprep.mubr.bf16.mxu1 %v3821_v49  ;;  %6156 = vmatpush3.bf16.msra.mxu1 %v6841_v3  ;;  %v4138_v3 = vrot.slane %v8373_v36, 5  ;;  %v4146_v36 = vrot.slane %v8440_v0, 5 }
 0x229   :  { %6157 = vmatprep.subr.bf16.mxu1 %v6842_v1 }
 0x22a   :  { %v4148_v40 = vor.u32 %v4147_v45, %v4146_v36 }
 0x22c   :  { %6158 = vmatpush3.bf16.msra.mxu1 %v6842_v1  ;;  %v4151_v1 = vrot.slane %v8566_v50, 6  ;;  %v4149_v0 = vsel %vm4114_vm15, %v4144_v26, %v4148_v40 }
 0x22d   :  { %6159 = vmatprep.subr.bf16.mxu1 %v6843_v4 }
 0x22e   :  { %v4152_v49 = vor.u32 %v4151_v1, %v4150_v19 }
 0x22f   :  { %6128 = vmatmul.mubr.bf16.gmra.mrb[12].mxu1 %v3823_v16 }
 0x230   :  { %6131 = vmatprep.mubr.bf16.mxu1 %v3825_v37  ;;  %6160 = vmatpush3.bf16.msra.mxu1 %v6843_v4  ;;  %v4153_v23 = vsel %vm4114_vm15, %v4148_v40, %v4152_v49 }
 0x231   :  { %6161 = vmatprep.subr.bf16.mxu1 %v6844_v39 }
 0x234   :  { %6162 = vmatpush3.bf16.msra.mxu1 %v6844_v39  ;;  %v4156_v39 = vor.u32 %v4155_v63, %v4154_v15 }
 0x236   :  { %v4157_v37 = vsel %vm4114_vm15, %v4152_v49, %v4156_v39  ;;  %v4161_v9 = vsel %vm4114_vm15, %v4156_v39, %v8851_v59 }
 0x237   :  { %6132 = vmatmul.mubr.bf16.gmra.mrb[16].mxu1 %v8808_v48  ;;  %v4115_v48 = vrot.slane %v8183_v44, 5 }
 0x238   :  { %6135 = vmatprep.mubr.bf16.mxu1 %v8811_v18  ;;  %v4116_v18 = vrot.slane %v10077_v25, 6  ;;  %v4130_v25 = vrot.slane %v10081_v5, 5 }
 0x23a   :  { %v4117_v55 = vor.u32 %v4116_v18, %v4115_v48  ;;  %v4132_v62 = vor.u32 %v4131_v27, %v4130_v25  ;;  %v6852_v27 = vld [vmem:[%s9509_s7 + $0x38] sm:$0xff]  }
 0x23b   :  { %6209 = vmatprep.subr.bf16.mxu0 %v6852_v27 }
 0x23c   :  { %v4121_v20 = vsel %vm4114_vm15, %v4117_v55, %v4120_v2  ;;  %v4133_v47 = vsel %vm4114_vm15, %v4128_v56, %v4132_v62  ;;  %6210 = vmatpush3.bf16.msra.mxu0 %v6852_v27 }
 0x23f   :  { %6136 = vmatmul.mubr.bf16.gmra.mrb[20].mxu1 %v8816_v10  ;;  %v4123_v10 = vrot.slane %v8261_v43, 6  ;;  %v4134_v43 = vrot.slane %v8382_v17, 5  ;;  %v4140_v17 = vor.u32 %v4139_v52, %v4138_v3 }
 0x240   :  { %6139 = vmatprep.mubr.bf16.mxu1 %v3833_v21 }
 0x241   :  { %v4124_v57 = vor.u32 %v4123_v10, %v4122_v42  ;;  %v4136_v24 = vor.u32 %v4135_v32, %v4134_v43  ;;  %v4145_v58 = vsel %vm4114_vm15, %v4140_v17, %v4144_v26  ;;  %v9234_v32 = vld [vmem:[%s9511_s6] ss:$0 sm:$0xff] }
 0x243   :  { %v4125_v44 = vsel %vm4114_vm15, %v4120_v2, %v4124_v57  ;;  %v4129_v51 = vsel %vm4114_vm15, %v4124_v57, %v4128_v56  ;;  %v4137_v5 = vsel %vm4114_vm15, %v4132_v62, %v4136_v24  ;;  %v4141_v11 = vsel %vm4114_vm15, %v4136_v24, %v4140_v17 }
 0x247   :  { %6140 = vmatmul.mubr.bf16.gmra.mrb[24].mxu1 %v3832_v13 }
 0x248   :  { %6143 = vmatprep.mubr.bf16.mxu1 %v3832_v13 }
 0x24f   :  { %6144 = vmatmul.mubr.bf16.gmra.mrb[28].mxu1 %v3832_v13  ;;  %v4168_v13 = vor.u32 %v4167_v35, %v8721_v22 }
 0x250   :  { %6163 = vmatprep.mubr.bf16.mxu1 %v4121_v20 }
 0x251   :  { %v4169_v48 = vsel %vm4114_vm15, %v8859_v54, %v4168_v13 }
 0x257   :  { %6164 = vmatmul.mubr.bf16.vlgmr.msra.gmra.mrb[0].mxu1 %v4125_v44 }
 0x258   :  { %6167 = vmatprep.mubr.bf16.mxu1 %v4129_v51  ;;  %v6853_v51 = vld [vmem:[%s9510_s9] sm:$0xff]  }
 0x259   :  { %6243 = vmatprep.subr.bf16.mxu0 %v6853_v51 }
 0x25f   :  { %6168 = vmatmul.mubr.bf16.gmra.mrb[4].mxu1 %v4133_v47 }
 0x260   :  { %6171 = vmatprep.mubr.bf16.mxu1 %v4137_v5 }
 0x265   :  { %v9143_v30 = vpop.f32.mrb[36].mxu0 }
 0x266   :  { %v9145_v53 = vpop.f32.mrb[37].mxu0 }
 0x267   :  { %6172 = vmatmul.mubr.bf16.gmra.mrb[8].mxu1 %v4141_v11  ;;  %v9150_v61 = vpop.f32.mrb[38].mxu0 }
 0x268   :  { %6175 = vmatprep.mubr.bf16.mxu1 %v4145_v58  ;;  %v9155_v8 = vpop.f32.mrb[39].mxu0 }
 0x26d   :  { %v9157_v4 = vpop.f32.mrb[40].mxu0 }
 0x26e   :  { %v9159_v46 = vpop.f32.mrb[41].mxu0 }
 0x26f   :  { %6176 = vmatmul.mubr.bf16.gmra.mrb[12].mxu1 %v4149_v0  ;;  %v9164_v28 = vpop.f32.mrb[42].mxu0 }
 0x270   :  { %6179 = vmatprep.mubr.bf16.mxu1 %v4153_v23  ;;  %v9167_v50 = vpop.f32.mrb[43].mxu0  ;;  %v6854_v23 = vld [vmem:[%s9510_s9 + $0x8] sm:$0xff]  }
 0x275   :  { %v9169_v16 = vpop.f32.mrb[44].mxu0 }
 0x276   :  { %v9171_v34 = vpop.f32.mrb[45].mxu0 }
 0x277   :  { %6180 = vmatmul.mubr.bf16.gmra.mrb[16].mxu1 %v4157_v37  ;;  %v9174_v12 = vpop.f32.mrb[46].mxu0 }
 0x278   :  { %6183 = vmatprep.mubr.bf16.mxu1 %v4161_v9  ;;  %v9179_v14 = vpop.f32.mrb[47].mxu0 }
 0x27d   :  { %v9182_v21 = vpop.f32.mrb[48].mxu0 }
 0x27e   :  { %v9184_v38 = vpop.f32.mrb[49].mxu0 }
 0x27f   :  { %6184 = vmatmul.mubr.bf16.gmra.mrb[20].mxu1 %v8866_v41  ;;  %v9187_v31 = vpop.f32.mrb[50].mxu0 }
 0x280   :  { %6187 = vmatprep.mubr.bf16.mxu1 %v4169_v48  ;;  %v9191_v59 = vpop.f32.mrb[51].mxu0 }
 0x285   :  { %v9193_v29 = vpop.f32.mrb[52].mxu0 }
 0x286   :  { %v9195_v18 = vpop.f32.mrb[53].mxu0 }
 0x287   :  { %6188 = vmatmul.mubr.bf16.gmra.mrb[24].mxu1 %v4168_v13  ;;  %v9197_v22 = vpop.f32.mrb[54].mxu0 }
 0x288   :  { %v9199_v2 = vpop.f32.mrb[55].mxu0  ;;  %6191 = vmatprep.mubr.bf16.mxu1 %v4168_v13 }
 0x28d   :  { %v9201_v55 = vpop.f32.mrb[56].mxu0 }
 0x28e   :  { %v9203_v41 = vpop.f32.mrb[57].mxu0 }
 0x28f   :  { %6192 = vmatmul.mubr.bf16.gmra.mrb[28].mxu1 %v4168_v13  ;;  %v9205_v42 = vpop.f32.mrb[58].mxu0 }
 0x290   :  { %v9207_v54 = vpop.f32.mrb[59].mxu0 }
 0x295   :  { %v9209_v10 = vpop.f32.mrb[60].mxu0 }
 0x296   :  { %v9211_v20 = vpop.f32.mrb[61].mxu0 }
 0x297   :  { %v9213_v33 = vpop.f32.mrb[62].mxu0 }
 0x298   :  { %v9215_v6 = vpop.f32.mrb[63].mxu0 }
 0x29d   :  { %v9217_v57 = vpop.f32.mrb[64].mxu0 }
 0x29e   :  { %v9219_v56 = vpop.f32.mrb[65].mxu0 }
 0x29f   :  { %v9221_v44 = vpop.f32.mrb[66].mxu0 }
 0x2a0   :  { %v9223_v25 = vpop.f32.mrb[67].mxu0 }
 0x32a   :  { %v6165_v43 = vpop.f32.mrb[0].mxu1 }
 0x32b   :  { %v6291_v62 = vadd.f32 %v6165_v43, %v9143_v30  ;;  %v4280_v24 = vpop.f32.mrb[1].mxu1 }
 0x32c   :  { %v6292_v47 = vadd.f32 %v4280_v24, %v9145_v53  ;;  %v6166_v3 = vpop.f32.mrb[2].mxu1 }
 0x32d   :  { %v4448_v52 = vadd.f32 %v6291_v62, %v9234_v32  ;;  %v6293_v5 = vadd.f32 %v6166_v3, %v9150_v61  ;;  %v4283_v7 = vpop.f32.mrb[3].mxu1 }
 0x32e   :  { %v4446_v60 = vadd.f32 %v6292_v47, %v9234_v32  ;;  %v6294_v17 = vadd.f32 %v4283_v7, %v9155_v8  ;;  %v6856_v7 = vld [vmem:[%s9510_s9 + $0x18] sm:$0xff]  }
 0x32f   :  { %v4449_v26 = vadd.f32 %v6293_v5, %v9234_v32  ;;  %v4480_v36 = vmax.f32 %v4448_v52, 0.0 }
 0x330   :  { %v4447_v11 = vadd.f32 %v6294_v17, %v9234_v32  ;;  %v4478_v30 = vmax.f32 %v4446_v60, 0.0 }
 0x331   :  { %v4481_v45 = vmax.f32 %v4449_v26, 0.0 }
 0x332   :  { %v4479_v58 = vmax.f32 %v4447_v11, 0.0  ;;  %v6169_v19 = vpop.f32.mrb[4].mxu1 }
 0x333   :  { %v4511_v53 = vpack.c.bf16 %v4481_v45, %v4480_v36  ;;  %v6295_v1 = vadd.f32 %v6169_v19, %v9157_v4  ;;  %v4296_v40 = vpop.f32.mrb[5].mxu1 }
 0x334   :  { %v6296_v61 = vadd.f32 %v4296_v40, %v9159_v46  ;;  %v6170_v49 = vpop.f32.mrb[6].mxu1  ;;  %v4510_v0 = vpack.c.bf16 %v4479_v58, %v4478_v30 }
 0x335   :  { %v4452_v15 = vadd.f32 %v6295_v1, %v9234_v32  ;;  %v6297_v8 = vadd.f32 %v6170_v49, %v9164_v28  ;;  %v4299_v63 = vpop.f32.mrb[7].mxu1  ;;  %v6855_v28 = vld [vmem:[%s9510_s9 + $0x10] sm:$0xff]  }
 0x336   :  { %v4450_v39 = vadd.f32 %v6296_v61, %v9234_v32  ;;  %v6298_v37 = vadd.f32 %v4299_v63, %v9167_v50  ;;  %6211 = vmatprep.mubr.bf16.mxu0 %v4510_v0 }
 0x337   :  { %v4453_v4 = vadd.f32 %v6297_v8, %v9234_v32  ;;  %6212 = vmatmul.mubr.bf16.vlgmr.msra.gmra.mrb[68].mxu0 %v4511_v53  ;;  %v4484_v9 = vmax.f32 %v4452_v15, 0.0  ;;  %v6858_v15 = vld [vmem:[%s9510_s9 + $0x28] sm:$0xff]  }
 0x338   :  { %v4451_v46 = vadd.f32 %v6298_v37, %v9234_v32  ;;  %6244 = vmatpush3.bf16.msra.mxu0 %v6853_v51  ;;  %v4482_v13 = vmax.f32 %v4450_v39, 0.0 }
 0x339   :  { %v4485_v35 = vmax.f32 %v4453_v4, 0.0  ;;  %6245 = vmatprep.subr.bf16.mxu0 %v6854_v23 }
 0x33a   :  { %v4483_v48 = vmax.f32 %v4451_v46, 0.0  ;;  %v6173_v27 = vpop.f32.mrb[8].mxu1 }
 0x33b   :  { %v6299_v43 = vadd.f32 %v6173_v27, %v9169_v16  ;;  %v4312_v50 = vpop.f32.mrb[9].mxu1  ;;  %v4513_v62 = vpack.c.bf16 %v4485_v35, %v4484_v9 }
 0x33c   :  { %v6300_v24 = vadd.f32 %v4312_v50, %v9171_v34  ;;  %v6174_v47 = vpop.f32.mrb[10].mxu1  ;;  %v4512_v3 = vpack.c.bf16 %v4483_v48, %v4482_v13  ;;  %6246 = vmatpush3.bf16.msra.mxu0 %v6854_v23 }
 0x33d   :  { %v4456_v51 = vadd.f32 %v6299_v43, %v9234_v32  ;;  %v6301_v52 = vadd.f32 %v6174_v47, %v9174_v12  ;;  %v4315_v5 = vpop.f32.mrb[11].mxu1  ;;  %6247 = vmatprep.subr.bf16.mxu0 %v6855_v28  ;;  %v6857_v12 = vld [vmem:[%s9510_s9 + $0x20] sm:$0xff]  }
 0x33e   :  { %v4454_v60 = vadd.f32 %v6300_v24, %v9234_v32  ;;  %v6302_v16 = vadd.f32 %v4315_v5, %v9179_v14  ;;  %6215 = vmatprep.mubr.bf16.mxu0 %v4512_v3 }
 0x33f   :  { %v4457_v34 = vadd.f32 %v6301_v52, %v9234_v32  ;;  %6216 = vmatmul.mubr.bf16.gmra.mrb[72].mxu0 %v4513_v62  ;;  %v4488_v26 = vmax.f32 %v4456_v51, 0.0  ;;  %v6860_v62 = vld [vmem:[%s9510_s9 + $0x38] sm:$0xff]  }
 0x340   :  { %v4455_v17 = vadd.f32 %v6302_v16, %v9234_v32  ;;  %6248 = vmatpush3.bf16.msra.mxu0 %v6855_v28  ;;  %v4486_v36 = vmax.f32 %v4454_v60, 0.0 }
 0x341   :  { %v4489_v11 = vmax.f32 %v4457_v34, 0.0  ;;  %6249 = vmatprep.subr.bf16.mxu0 %v6856_v7 }
 0x342   :  { %v4487_v45 = vmax.f32 %v4455_v17, 0.0  ;;  %v6177_v30 = vpop.f32.mrb[12].mxu1 }
 0x343   :  { %v6303_v58 = vadd.f32 %v6177_v30, %v9182_v21  ;;  %v4328_v14 = vpop.f32.mrb[13].mxu1  ;;  %v4515_v19 = vpack.c.bf16 %v4489_v11, %v4488_v26 }
 0x344   :  { %v6304_v53 = vadd.f32 %v4328_v14, %v9184_v38  ;;  %v6178_v1 = vpop.f32.mrb[14].mxu1  ;;  %v4514_v40 = vpack.c.bf16 %v4487_v45, %v4486_v36  ;;  %6250 = vmatpush3.bf16.msra.mxu0 %v6856_v7 }
 0x345   :  { %v4460_v61 = vadd.f32 %v6303_v58, %v9234_v32  ;;  %v6305_v49 = vadd.f32 %v6178_v1, %v9187_v31  ;;  %v4331_v0 = vpop.f32.mrb[15].mxu1  ;;  %6251 = vmatprep.subr.bf16.mxu0 %v6857_v12  ;;  %v6859_v31 = vld [vmem:[%s9510_s9 + $0x30] sm:$0xff]  }
 0x346   :  { %v4458_v8 = vadd.f32 %v6304_v53, %v9234_v32  ;;  %v6306_v21 = vadd.f32 %v4331_v0, %v9191_v59  ;;  %6219 = vmatprep.mubr.bf16.mxu0 %v4514_v40 }
 0x347   :  { %v4461_v38 = vadd.f32 %v6305_v49, %v9234_v32  ;;  %6220 = vmatmul.mubr.bf16.gmra.mrb[76].mxu0 %v4515_v19  ;;  %v4492_v23 = vmax.f32 %v4460_v61, 0.0 }
 0x348   :  { %v4459_v63 = vadd.f32 %v6306_v21, %v9234_v32  ;;  %6252 = vmatpush3.bf16.msra.mxu0 %v6857_v12  ;;  %v4490_v37 = vmax.f32 %v4458_v8, 0.0 }
 0x349   :  { %v4493_v39 = vmax.f32 %v4461_v38, 0.0  ;;  %6253 = vmatprep.subr.bf16.mxu0 %v6858_v15 }
 0x34a   :  { %v4491_v4 = vmax.f32 %v4459_v63, 0.0  ;;  %v6181_v46 = vpop.f32.mrb[16].mxu1 }
 0x34b   :  { %v6307_v9 = vadd.f32 %v6181_v46, %v9193_v29  ;;  %v4344_v59 = vpop.f32.mrb[17].mxu1  ;;  %v4517_v35 = vpack.c.bf16 %v4493_v39, %v4492_v23 }
 0x34c   :  { %v6308_v28 = vadd.f32 %v4344_v59, %v9195_v18  ;;  %v6182_v13 = vpop.f32.mrb[18].mxu1  ;;  %v4516_v48 = vpack.c.bf16 %v4491_v4, %v4490_v37  ;;  %6254 = vmatpush3.bf16.msra.mxu0 %v6858_v15 }
 0x34d   :  { %v4464_v27 = vadd.f32 %v6307_v9, %v9234_v32  ;;  %v6309_v43 = vadd.f32 %v6182_v13, %v9197_v22  ;;  %v4347_v50 = vpop.f32.mrb[19].mxu1  ;;  %6255 = vmatprep.subr.bf16.mxu0 %v6859_v31 }
 0x34e   :  { %v4462_v24 = vadd.f32 %v6308_v28, %v9234_v32  ;;  %v6310_v29 = vadd.f32 %v4347_v50, %v9199_v2  ;;  %6223 = vmatprep.mubr.bf16.mxu0 %v4516_v48 }
 0x34f   :  { %v4465_v18 = vadd.f32 %v6309_v43, %v9234_v32  ;;  %6224 = vmatmul.mubr.bf16.gmra.mrb[80].mxu0 %v4517_v35  ;;  %v4496_v3 = vmax.f32 %v4464_v27, 0.0 }
 0x350   :  { %v4463_v47 = vadd.f32 %v6310_v29, %v9234_v32  ;;  %6256 = vmatpush3.bf16.msra.mxu0 %v6859_v31  ;;  %v4494_v22 = vmax.f32 %v4462_v24, 0.0 }
 0x351   :  { %v4497_v51 = vmax.f32 %v4465_v18, 0.0  ;;  %6257 = vmatprep.subr.bf16.mxu0 %v6860_v62 }
 0x352   :  { %v4495_v52 = vmax.f32 %v4463_v47, 0.0  ;;  %v6185_v5 = vpop.f32.mrb[20].mxu1  ;;  %v6865_v47 = vld [vmem:[%s9505_s1 + $0x98] sm:$0xff]  }
 0x353   :  { %v6311_v7 = vadd.f32 %v6185_v5, %v9201_v55  ;;  %v4360_v60 = vpop.f32.mrb[21].mxu1  ;;  %v4519_v16 = vpack.c.bf16 %v4497_v51, %v4496_v3  ;;  %v6866_v3 = vld [vmem:[%s9505_s1 + $0xa0] sm:$0xff]   ;;  %v6867_v51 = vld [vmem:[%s9505_s1 + $0xa8] sm:$0xff]  }
 0x354   :  { %v6312_v34 = vadd.f32 %v4360_v60, %v9203_v41  ;;  %v6186_v2 = vpop.f32.mrb[22].mxu1  ;;  %v4518_v17 = vpack.c.bf16 %v4495_v52, %v4494_v22  ;;  %6258 = vmatpush3.bf16.msra.mxu0 %v6860_v62  ;;  %v6868_v22 = vld [vmem:[%s9505_s1 + $0xb0] sm:$0xff]   ;;  %v6869_v52 = vld [vmem:[%s9505_s1 + $0xb8] sm:$0xff]   ;;  %v6870_v5 = vld [vmem:[%s9505_s1 + $0xc0] sm:$0xff]  }
 0x355   :  { %v4468_v26 = vadd.f32 %v6311_v7, %v9234_v32  ;;  %v6313_v11 = vadd.f32 %v6186_v2, %v9205_v42  ;;  %v4363_v12 = vpop.f32.mrb[23].mxu1  ;;  %v6871_v7 = vld [vmem:[%s9505_s1 + $0xc8] sm:$0xff]   ;;  %v6872_v60 = vld [vmem:[%s9505_s1 + $0xd0] sm:$0xff]  }
 0x356   :  { %v4466_v36 = vadd.f32 %v6312_v34, %v9234_v32  ;;  %v6314_v45 = vadd.f32 %v4363_v12, %v9207_v54  ;;  %6227 = vmatprep.mubr.bf16.mxu0 %v4518_v17  ;;  %v6874_v34 = vld [vmem:[%s9505_s1 + $0xe0] sm:$0xff]   ;;  %v6875_v2 = vld [vmem:[%s9505_s1 + $0xe8] sm:$0xff]   ;;  %v6876_v17 = vld [vmem:[%s9505_s1 + $0xf0] sm:$0xff]  }
 0x357   :  { %v4469_v30 = vadd.f32 %v6313_v11, %v9234_v32  ;;  %6228 = vmatmul.mubr.bf16.gmra.mrb[84].mxu0 %v4519_v16  ;;  %v4500_v58 = vmax.f32 %v4468_v26, 0.0  ;;  %v6873_v16 = vld [vmem:[%s9505_s1 + $0xd8] sm:$0xff]   ;;  %v5403_v11 = vld [vmem:[%s9512_s8] ss:$0 sm:$0xff] }
 0x358   :  { %v4467_v55 = vadd.f32 %v6314_v45, %v9234_v32  ;;  %v4498_v14 = vmax.f32 %v4466_v36, 0.0  ;;  %v6877_v26 = vld [vmem:[%s9505_s1 + $0xf8] sm:$0xff]   ;;  %v5412_v12 = vld [vmem:[%s9513_s10] ss:$0 sm:$0xff] }
 0x359   :  { %v4501_v41 = vmax.f32 %v4469_v30, 0.0  ;;  %v9375_v36 = vadd.f32 %v5412_v12, %v5403_v11 }
 0x35a   :  { %v4499_v19 = vmax.f32 %v4467_v55, 0.0  ;;  %v6189_v53 = vpop.f32.mrb[24].mxu1 }
 0x35b   :  { %v6315_v1 = vadd.f32 %v6189_v53, %v9209_v10  ;;  %v4376_v40 = vpop.f32.mrb[25].mxu1  ;;  %v4521_v42 = vpack.c.bf16 %v4501_v41, %v4500_v58 }
 0x35c   :  { %v6316_v61 = vadd.f32 %v4376_v40, %v9211_v20  ;;  %v6190_v49 = vpop.f32.mrb[26].mxu1  ;;  %v4520_v0 = vpack.c.bf16 %v4499_v19, %v4498_v14 }
 0x35d   :  { %v4472_v54 = vadd.f32 %v6315_v1, %v9234_v32  ;;  %v6317_v15 = vadd.f32 %v6190_v49, %v9213_v33  ;;  %v4379_v8 = vpop.f32.mrb[27].mxu1 }
 0x35e   :  { %v4470_v21 = vadd.f32 %v6316_v61, %v9234_v32  ;;  %v6318_v38 = vadd.f32 %v4379_v8, %v9215_v6  ;;  %6231 = vmatprep.mubr.bf16.mxu0 %v4520_v0 }
 0x35f   :  { %v4473_v63 = vadd.f32 %v6317_v15, %v9234_v32  ;;  %6232 = vmatmul.mubr.bf16.gmra.mrb[88].mxu0 %v4521_v42  ;;  %v4504_v23 = vmax.f32 %v4472_v54, 0.0 }
 0x360   :  { %v4471_v10 = vadd.f32 %v6318_v38, %v9234_v32  ;;  %v4502_v20 = vmax.f32 %v4470_v21, 0.0 }
 0x361   :  { %v4505_v39 = vmax.f32 %v4473_v63, 0.0 }
 0x362   :  { %v4503_v31 = vmax.f32 %v4471_v10, 0.0  ;;  %v6193_v37 = vpop.f32.mrb[28].mxu1 }
 0x363   :  { %v6319_v4 = vadd.f32 %v6193_v37, %v9217_v57  ;;  %v4392_v46 = vpop.f32.mrb[29].mxu1  ;;  %v4523_v33 = vpack.c.bf16 %v4505_v39, %v4504_v23 }
 0x364   :  { %v6320_v9 = vadd.f32 %v4392_v46, %v9219_v56  ;;  %v6194_v59 = vpop.f32.mrb[30].mxu1  ;;  %v4522_v35 = vpack.c.bf16 %v4503_v31, %v4502_v20 }
 0x365   :  { %v4476_v6 = vadd.f32 %v6319_v4, %v9234_v32  ;;  %v6321_v28 = vadd.f32 %v6194_v59, %v9221_v44  ;;  %v4395_v13 = vpop.f32.mrb[31].mxu1  ;;  %v6862_v44 = vld [vmem:[%s9505_s1 + $0x80] sm:$0xff]  }
 0x366   :  { %v4474_v48 = vadd.f32 %v6320_v9, %v9234_v32  ;;  %v6322_v27 = vadd.f32 %v4395_v13, %v9223_v25  ;;  %6235 = vmatprep.mubr.bf16.mxu0 %v4522_v35  ;;  %v6863_v25 = vld [vmem:[%s9505_s1 + $0x88] sm:$0xff]  }
 0x367   :  { %v4477_v43 = vadd.f32 %v6321_v28, %v9234_v32  ;;  %6236 = vmatmul.mubr.bf16.gmra.mrb[92].mxu0 %v4523_v33  ;;  %v4508_v50 = vmax.f32 %v4476_v6, 0.0 }
 0x368   :  { %v4475_v57 = vadd.f32 %v6322_v27, %v9234_v32  ;;  %v4506_v56 = vmax.f32 %v4474_v48, 0.0  ;;  %v6864_v32 = vld [vmem:[%s9505_s1 + $0x90] sm:$0xff]  }
 0x369   :  { %v4509_v62 = vmax.f32 %v4477_v43, 0.0 }
 0x36a   :  { %v4507_v24 = vmax.f32 %v4475_v57, 0.0 }
 0x36b   :  { %v4525_v29 = vpack.c.bf16 %v4509_v62, %v4508_v50 }
 0x36c   :  { %v4524_v18 = vpack.c.bf16 %v4507_v24, %v4506_v56 }
 0x36e   :  { %6239 = vmatprep.mubr.bf16.mxu0 %v4524_v18 }
 0x36f   :  { %6240 = vmatmul.mubr.bf16.gmra.mrb[96].mxu0 %v4525_v29 }
 0x370   :  { %6259 = vmatprep.mubr.bf16.mxu0 %v6862_v44 }
 0x377   :  { %6260 = vmatmul.mubr.bf16.vlgmr.msra.gmra.mrb[68].mxu0 %v6863_v25 }
 0x378   :  { %6263 = vmatprep.mubr.bf16.mxu0 %v6864_v32 }
 0x37f   :  { %6264 = vmatmul.mubr.bf16.gmra.mrb[72].mxu0 %v6865_v47 }
 0x380   :  { %6267 = vmatprep.mubr.bf16.mxu0 %v6866_v3 }
 0x387   :  { %6268 = vmatmul.mubr.bf16.gmra.mrb[76].mxu0 %v6867_v51 }
 0x388   :  { %6271 = vmatprep.mubr.bf16.mxu0 %v6868_v22 }
 0x38f   :  { %6272 = vmatmul.mubr.bf16.gmra.mrb[80].mxu0 %v6869_v52 }
 0x390   :  { %6275 = vmatprep.mubr.bf16.mxu0 %v6870_v5 }
 0x397   :  { %6276 = vmatmul.mubr.bf16.gmra.mrb[84].mxu0 %v6871_v7 }
 0x398   :  { %6279 = vmatprep.mubr.bf16.mxu0 %v6872_v60 }
 0x39f   :  { %6280 = vmatmul.mubr.bf16.gmra.mrb[88].mxu0 %v6873_v16 }
 0x3a0   :  { %6283 = vmatprep.mubr.bf16.mxu0 %v6874_v34 }
 0x3a7   :  { %6284 = vmatmul.mubr.bf16.gmra.mrb[92].mxu0 %v6875_v2 }
 0x3a8   :  { %6287 = vmatprep.mubr.bf16.mxu0 %v6876_v17 }
 0x3af   :  { %6288 = vmatmul.mubr.bf16.gmra.mrb[96].mxu0 %v6877_v26 }
 0x44a   :  { %v6261_v45 = vpop.f32.mrb[68].mxu0 }
 0x44b   :  { %v6323_v30 = vadd.f32 %v6261_v45, %v5403_v11  ;;  %v4863_v55 = vpop.f32.mrb[69].mxu0 }
 0x44c   :  { %v6325_v58 = vadd.f32 %v5403_v11, %v4863_v55  ;;  %v6262_v41 = vpop.f32.mrb[70].mxu0 }
 0x44d   :  { %v6324_v14 = vadd.f32 %v6323_v30, %v5412_v12  ;;  %v6328_v19 = vadd.f32 %v9375_v36, %v6262_v41  ;;  %v4866_v53 = vpop.f32.mrb[71].mxu0 }
 0x44e   :  { %v6326_v1 = vadd.f32 %v6325_v58, %v5412_v12  ;;  %v6330_v40 = vadd.f32 %v9375_v36, %v4866_v53 }
 0x44f   :  { %v5024_v42 = vmax.f32 %v6324_v14, 0.0  ;;  %v5025_v61 = vmax.f32 %v6328_v19, 0.0 }
 0x450   :  { %v5022_v49 = vmax.f32 %v6326_v1, 0.0  ;;  %v5023_v0 = vmax.f32 %v6330_v40, 0.0 }
 0x451   :  { %5056 = vst [vmem:[%s9514_s11 + $0x10] sm:$0xff] %v5024_v42  ;;  %5057 = vst [vmem:[%s9514_s11 + $0x18] sm:$0xff] %v5025_v61 }
 0x452   :  { %5054 = vst [vmem:[%s9514_s11] sm:$0xff] %v5022_v49  ;;  %5055 = vst [vmem:[%s9514_s11 + $0x8] sm:$0xff] %v5023_v0  ;;  %v6265_v54 = vpop.f32.mrb[72].mxu0 }
 0x453   :  { %v6332_v15 = vadd.f32 %v9375_v36, %v6265_v54  ;;  %v4879_v8 = vpop.f32.mrb[73].mxu0 }
 0x454   :  { %v6334_v21 = vadd.f32 %v9375_v36, %v4879_v8  ;;  %v6266_v38 = vpop.f32.mrb[74].mxu0 }
 0x455   :  { %v5028_v63 = vmax.f32 %v6332_v15, 0.0  ;;  %v6336_v10 = vadd.f32 %v9375_v36, %v6266_v38  ;;  %v4882_v23 = vpop.f32.mrb[75].mxu0 }
 0x456   :  { %v5026_v39 = vmax.f32 %v6334_v21, 0.0  ;;  %v6338_v20 = vadd.f32 %v9375_v36, %v4882_v23 }
 0x457   :  { %5060 = vst [vmem:[%s9514_s11 + $0x30] sm:$0xff] %v5028_v63  ;;  %v5029_v31 = vmax.f32 %v6336_v10, 0.0 }
 0x458   :  { %5058 = vst [vmem:[%s9514_s11 + $0x20] sm:$0xff] %v5026_v39  ;;  %v5027_v37 = vmax.f32 %v6338_v20, 0.0 }
 0x459   :  { %5061 = vst [vmem:[%s9514_s11 + $0x38] sm:$0xff] %v5029_v31 }
 0x45a   :  { %5059 = vst [vmem:[%s9514_s11 + $0x28] sm:$0xff] %v5027_v37  ;;  %v6269_v4 = vpop.f32.mrb[76].mxu0 }
 0x45b   :  { %v6340_v46 = vadd.f32 %v9375_v36, %v6269_v4  ;;  %v4895_v33 = vpop.f32.mrb[77].mxu0 }
 0x45c   :  { %v6342_v9 = vadd.f32 %v9375_v36, %v4895_v33  ;;  %v6270_v59 = vpop.f32.mrb[78].mxu0 }
 0x45d   :  { %v5032_v35 = vmax.f32 %v6340_v46, 0.0  ;;  %v6344_v6 = vadd.f32 %v9375_v36, %v6270_v59  ;;  %v4898_v28 = vpop.f32.mrb[79].mxu0 }
 0x45e   :  { %v5030_v13 = vmax.f32 %v6342_v9, 0.0  ;;  %v6346_v48 = vadd.f32 %v9375_v36, %v4898_v28 }
 0x45f   :  { %5064 = vst [vmem:[%s9514_s11 + $0x50] sm:$0xff] %v5032_v35  ;;  %v5033_v27 = vmax.f32 %v6344_v6, 0.0 }
 0x460   :  { %5062 = vst [vmem:[%s9514_s11 + $0x40] sm:$0xff] %v5030_v13  ;;  %v5031_v43 = vmax.f32 %v6346_v48, 0.0 }
 0x461   :  { %5065 = vst [vmem:[%s9514_s11 + $0x58] sm:$0xff] %v5033_v27 }
 0x462   :  { %5063 = vst [vmem:[%s9514_s11 + $0x48] sm:$0xff] %v5031_v43  ;;  %v6273_v57 = vpop.f32.mrb[80].mxu0 }
 0x463   :  { %v6348_v50 = vadd.f32 %v9375_v36, %v6273_v57  ;;  %v4911_v62 = vpop.f32.mrb[81].mxu0 }
 0x464   :  { %v6350_v56 = vadd.f32 %v9375_v36, %v4911_v62  ;;  %v6274_v24 = vpop.f32.mrb[82].mxu0 }
 0x465   :  { %v5036_v29 = vmax.f32 %v6348_v50, 0.0  ;;  %v6352_v18 = vadd.f32 %v9375_v36, %v6274_v24  ;;  %v4914_v44 = vpop.f32.mrb[83].mxu0 }
 0x466   :  { %v5034_v25 = vmax.f32 %v6350_v56, 0.0  ;;  %v6354_v32 = vadd.f32 %v9375_v36, %v4914_v44 }
 0x467   :  { %5068 = vst [vmem:[%s9514_s11 + $0x70] sm:$0xff] %v5036_v29  ;;  %v5037_v47 = vmax.f32 %v6352_v18, 0.0 }
 0x468   :  { %5066 = vst [vmem:[%s9514_s11 + $0x60] sm:$0xff] %v5034_v25  ;;  %v5035_v3 = vmax.f32 %v6354_v32, 0.0 }
 0x469   :  { %5069 = vst [vmem:[%s9514_s11 + $0x78] sm:$0xff] %v5037_v47 }
 0x46a   :  { %5067 = vst [vmem:[%s9514_s11 + $0x68] sm:$0xff] %v5035_v3  ;;  %v6277_v51 = vpop.f32.mrb[84].mxu0 }
 0x46b   :  { %v6356_v22 = vadd.f32 %v9375_v36, %v6277_v51  ;;  %v4927_v52 = vpop.f32.mrb[85].mxu0 }
 0x46c   :  { %v6358_v5 = vadd.f32 %v9375_v36, %v4927_v52  ;;  %v6278_v7 = vpop.f32.mrb[86].mxu0 }
 0x46d   :  { %v5040_v60 = vmax.f32 %v6356_v22, 0.0  ;;  %v6360_v16 = vadd.f32 %v9375_v36, %v6278_v7  ;;  %v4930_v34 = vpop.f32.mrb[87].mxu0 }
 0x46e   :  { %v5038_v2 = vmax.f32 %v6358_v5, 0.0  ;;  %v6362_v17 = vadd.f32 %v9375_v36, %v4930_v34 }
 0x46f   :  { %5072 = vst [vmem:[%s9514_s11 + $0x90] sm:$0xff] %v5040_v60  ;;  %v5041_v26 = vmax.f32 %v6360_v16, 0.0 }
 0x470   :  { %5070 = vst [vmem:[%s9514_s11 + $0x80] sm:$0xff] %v5038_v2  ;;  %v5039_v11 = vmax.f32 %v6362_v17, 0.0 }
 0x471   :  { %5073 = vst [vmem:[%s9514_s11 + $0x98] sm:$0xff] %v5041_v26 }
 0x472   :  { %5071 = vst [vmem:[%s9514_s11 + $0x88] sm:$0xff] %v5039_v11  ;;  %v6281_v12 = vpop.f32.mrb[88].mxu0 }
 0x473   :  { %v6364_v45 = vadd.f32 %v9375_v36, %v6281_v12  ;;  %v4943_v30 = vpop.f32.mrb[89].mxu0 }
 0x474   :  { %v6366_v55 = vadd.f32 %v9375_v36, %v4943_v30  ;;  %v6282_v58 = vpop.f32.mrb[90].mxu0 }
 0x475   :  { %v5044_v41 = vmax.f32 %v6364_v45, 0.0  ;;  %v6368_v14 = vadd.f32 %v9375_v36, %v6282_v58  ;;  %v4946_v19 = vpop.f32.mrb[91].mxu0 }
 0x476   :  { %v5042_v53 = vmax.f32 %v6366_v55, 0.0  ;;  %v6370_v1 = vadd.f32 %v9375_v36, %v4946_v19 }
 0x477   :  { %5076 = vst [vmem:[%s9514_s11 + $0xb0] sm:$0xff] %v5044_v41  ;;  %v5045_v40 = vmax.f32 %v6368_v14, 0.0 }
 0x478   :  { %5074 = vst [vmem:[%s9514_s11 + $0xa0] sm:$0xff] %v5042_v53  ;;  %v5043_v42 = vmax.f32 %v6370_v1, 0.0 }
 0x479   :  { %5077 = vst [vmem:[%s9514_s11 + $0xb8] sm:$0xff] %v5045_v40 }
 0x47a   :  { %5075 = vst [vmem:[%s9514_s11 + $0xa8] sm:$0xff] %v5043_v42  ;;  %v6285_v61 = vpop.f32.mrb[92].mxu0 }
 0x47b   :  { %v6372_v49 = vadd.f32 %v9375_v36, %v6285_v61  ;;  %v4959_v0 = vpop.f32.mrb[93].mxu0 }
 0x47c   :  { %v6374_v54 = vadd.f32 %v9375_v36, %v4959_v0  ;;  %v6286_v15 = vpop.f32.mrb[94].mxu0 }
 0x47d   :  { %v5048_v8 = vmax.f32 %v6372_v49, 0.0  ;;  %v6376_v21 = vadd.f32 %v9375_v36, %v6286_v15  ;;  %v4962_v38 = vpop.f32.mrb[95].mxu0 }
 0x47e   :  { %v5046_v63 = vmax.f32 %v6374_v54, 0.0  ;;  %v6378_v10 = vadd.f32 %v9375_v36, %v4962_v38 }
 0x47f   :  { %5080 = vst [vmem:[%s9514_s11 + $0xd0] sm:$0xff] %v5048_v8  ;;  %v5049_v23 = vmax.f32 %v6376_v21, 0.0 }
 0x480   :  { %5078 = vst [vmem:[%s9514_s11 + $0xc0] sm:$0xff] %v5046_v63  ;;  %v5047_v39 = vmax.f32 %v6378_v10, 0.0 }
 0x481   :  { %5081 = vst [vmem:[%s9514_s11 + $0xd8] sm:$0xff] %v5049_v23 }
 0x482   :  { %5079 = vst [vmem:[%s9514_s11 + $0xc8] sm:$0xff] %v5047_v39  ;;  %v6289_v20 = vpop.f32.mrb[96].mxu0 }
 0x483   :  { %v6380_v31 = vadd.f32 %v9375_v36, %v6289_v20  ;;  %v4975_v37 = vpop.f32.mrb[97].mxu0 }
 0x484   :  { %v6382_v4 = vadd.f32 %v9375_v36, %v4975_v37  ;;  %v6290_v46 = vpop.f32.mrb[98].mxu0 }
 0x485   :  { %v5052_v33 = vmax.f32 %v6380_v31, 0.0  ;;  %v6384_v9 = vadd.f32 %v9375_v36, %v6290_v46  ;;  %v4978_v59 = vpop.f32.mrb[99].mxu0 }
 0x486   :  { %v5050_v35 = vmax.f32 %v6382_v4, 0.0  ;;  %v6386_v6 = vadd.f32 %v9375_v36, %v4978_v59 }
 0x487   :  { %5084 = vst [vmem:[%s9514_s11 + $0xf0] sm:$0xff] %v5052_v33  ;;  %v5053_v28 = vmax.f32 %v6384_v9, 0.0 }
 0x488   :  { %5082 = vst [vmem:[%s9514_s11 + $0xe0] sm:$0xff] %v5050_v35  ;;  %v5051_v13 = vmax.f32 %v6386_v6, 0.0 }
 0x489   :  { %5085 = vst [vmem:[%s9514_s11 + $0xf8] sm:$0xff] %v5053_v28 }
 0x48a   :  { %5083 = vst [vmem:[%s9514_s11 + $0xe8] sm:$0xff] %v5051_v13 }

</bundles_post_ra>
